<compile_context>
chip_gen: v5e
topology: v5e:2x2
jax: 0.10.0
libtpu: 0.0.40
codegen_flags: <defaults>
</compile_context>

<pallas_src>
import jax
import jax.numpy as jnp
from jax import lax
from jax.experimental import pallas as pl
from jax.experimental.pallas import tpu as pltpu

K = 7          # spatial kernel size of the gate conv
PAD = (K - 1) // 2
RH = 8         # conv row-strip height (one sublane tile)


def _make_spatial_gate_kernel(nb, C, H, W):
    HW = H * W
    PH = H + 2 * PAD            # padded height for the "same" conv
    PW = W + 2 * PAD            # padded width
    NS = H // RH                # number of full 8-row strips
    REM = H - NS * RH           # tail rows (< 8)

    def kernel(w_ref, bn_ref, x_ref, o_ref, pad_ref, cols_ref, gate_ref):
        """One block of nb batch elements per grid step.

        w_ref    : SMEM (2*K*K,) f32 — flattened conv weight, order [c, kh, kw]
        bn_ref   : SMEM (2,)     f32 — [bn_scale, bn_shift] (folded BN affine)
        x_ref    : VMEM (nb, C, H*W)  — lane-dense view of the input block
        o_ref    : VMEM (nb, C, H*W)  — lane-dense view of the output block
        pad_ref  : VMEM (nb, 2, PH, PW) f32 — zero-padded pooled maps
        cols_ref : VMEM (2*K, nb, PH, W) f32 — kw-shifted column slices
        gate_ref : VMEM (nb, H, W) f32 — sigmoid gate (2-D spatial form)
        """
        # ---- ChannelPool: max & mean over C, lane-dense over HW ---------
        xf = x_ref[...].astype(jnp.float32)                     # (nb, C, HW)
        cmax = jnp.max(xf, axis=1)                               # (nb, HW)
        cmean = jnp.sum(xf, axis=1) * (1.0 / C)                  # (nb, HW)

        # ---- zero only the PAD border bands (megacore-safe: every step) -
        pad_ref[:, :, 0:PAD, :] = jnp.zeros((nb, 2, PAD, PW), jnp.float32)
        pad_ref[:, :, PAD + H:PH, :] = jnp.zeros((nb, 2, PAD, PW), jnp.float32)
        pad_ref[:, :, PAD:PAD + H, 0:PAD] = jnp.zeros((nb, 2, H, PAD), jnp.float32)
        pad_ref[:, :, PAD:PAD + H, PAD + W:PW] = jnp.zeros((nb, 2, H, PAD), jnp.float32)

        # ---- interior of the padded pooled maps: one store per map ------
        pad_ref[:, 0, PAD:PAD + H, PAD:PAD + W] = cmax.reshape(nb, H, W)
        pad_ref[:, 1, PAD:PAD + H, PAD:PAD + W] = cmean.reshape(nb, H, W)

        # ---- hoist the lane-unaligned kw shifts: 2*K column slices ------
        for c in range(2):
            for kw in range(K):
                cols_ref[c * K + kw] = pad_ref[:, c, :, pl.ds(kw, W)]

        # ---- 7x7 conv (2 -> 1) + BN + sigmoid, strip-mined over rows ----
        wvals = [w_ref[i] for i in range(2 * K * K)]             # hoist SMEM reads
        bn_scale = bn_ref[0]
        bn_shift = bn_ref[1]

        def conv_strip(r0, rows):
            # Only cheap sublane-offset loads inside the hot MAC loop.
            acc = jnp.zeros((nb, rows, W), jnp.float32)
            for c in range(2):
                for kw in range(K):
                    col = c * K + kw
                    for kh in range(K):
                        wv = wvals[c * K * K + kh * K + kw]
                        acc = acc + wv * cols_ref[col, :, pl.ds(r0 + kh, rows), :]
            return jax.nn.sigmoid(acc * bn_scale + bn_shift)

        if NS > 0:
            if NS <= 8:
                # few strips: static unroll
                for s in range(NS):
                    r0 = s * RH
                    gate_ref[:, pl.ds(r0, RH), :] = conv_strip(r0, RH)
            else:
                # many strips: rolled loop, live set stays at a few vregs
                def strip_body(s, carry):
                    r0 = pl.multiple_of(s * RH, RH)
                    gate_ref[:, pl.ds(r0, RH), :] = conv_strip(r0, RH)
                    return carry
                lax.fori_loop(0, NS, strip_body, 0)
        if REM > 0:
            r0 = NS * RH
            gate_ref[:, pl.ds(r0, REM), :] = conv_strip(r0, REM)

        # ---- flatten gate once + lane-dense gate-apply over H*W ---------
        gate_flat = gate_ref[...].reshape(nb, 1, HW)             # single relayout
        # re-read x from the VMEM block (cheap) instead of keeping it live
        # across the conv section
        o_ref[...] = (x_ref[...].astype(jnp.float32) * gate_flat).astype(o_ref.dtype)

    return kernel


def spatial_gate(x, conv_w, bn_gamma, bn_beta, bn_mean, bn_var, eps=1e-5):
    """x: (N, C, H, W); conv_w: (1, 2, K, K); bn_*: scalars (eval-mode BN)."""
    N, C, H, W = x.shape
    HW = H * W
    PH, PW = H + 2 * PAD, W + 2 * PAD

    # Fold parameters (plain-JAX glue).
    w_flat = conv_w.reshape(2 * K * K).astype(jnp.float32)
    bn_scale = bn_gamma / jnp.sqrt(bn_var + eps)
    bn_shift = bn_beta - bn_mean * bn_scale
    bn = jnp.stack([jnp.asarray(bn_scale), jnp.asarray(bn_shift)]).astype(jnp.float32)

    # Lane-dense view of x: free reshape of contiguous trailing dims.
    x_flat = x.reshape(N, C, HW)

    # (8,128)-tile-padded VMEM byte estimate.
    def _tiled_bytes(rows, cols, itemsize=4, lead=1):
        return lead * (-(-rows // 8) * 8) * (-(-cols // 128) * 128) * itemsize

    # ---- generation-aware VMEM budget --------------------------------------
    try:
        vmem_phys = int(pltpu.get_tpu_info().vmem_capacity_bytes)
    except Exception:
        vmem_phys = 64 << 20        # conservative (v7x) fallback
    vmem_cap = (vmem_phys * 3) // 4  # ~48 MiB on v7x, ~96 MiB on v5e/v6e

    def _est(nb):
        blk = _tiled_bytes(C, HW, x.dtype.itemsize, lead=nb)
        scratch = (_tiled_bytes(PH, PW, 4, lead=nb * 2)        # pad
                   + _tiled_bytes(PH, W, 4, lead=nb * 2 * K)   # cols
                   + _tiled_bytes(H, W, 4, lead=nb))           # gate
        return 4 * blk + scratch     # double-buffered in + out + scratch

    # ---- choose nb: ~2 MiB blocks, >= 2 grid steps, fits VMEM budget -------
    per_elem = _tiled_bytes(C, HW, x.dtype.itemsize)
    nb_cap = max(1, (2 << 20) // max(per_elem, 1))
    if N >= 2:
        nb_cap = min(nb_cap, N // 2)          # keep >= 2 grid steps (v7x megacore)
    nb_cap = max(1, min(nb_cap, N))
    nb = 1
    for d in range(1, nb_cap + 1):
        if N % d == 0 and _est(d) <= vmem_cap // 2:
            nb = d

    est = _est(nb)
    vmem_limit = int(min(max(2 * est, 8 << 20), vmem_cap))

    kernel = _make_spatial_gate_kernel(nb, C, H, W)

    out_flat = pl.pallas_call(
        kernel,
        out_shape=jax.ShapeDtypeStruct((N, C, HW), x.dtype),
        grid_spec=pltpu.PrefetchScalarGridSpec(
            num_scalar_prefetch=0,
            grid=(N // nb,),
            in_specs=[
                pl.BlockSpec(memory_space=pltpu.MemorySpace.SMEM),      # w_flat
                pl.BlockSpec(memory_space=pltpu.MemorySpace.SMEM),      # bn
                pl.BlockSpec((nb, C, HW), lambda n: (n, 0, 0)),         # x_flat
            ],
            out_specs=pl.BlockSpec((nb, C, HW), lambda n: (n, 0, 0)),
            scratch_shapes=[
                pltpu.VMEM((nb, 2, PH, PW), jnp.float32),     # padded pooled maps
                pltpu.VMEM((2 * K, nb, PH, W), jnp.float32),  # kw-shifted columns
                pltpu.VMEM((nb, H, W), jnp.float32),          # sigmoid gate
            ],
        ),
        compiler_params=pltpu.CompilerParams(
            dimension_semantics=("parallel",),
            vmem_limit_bytes=vmem_limit,
        ),
    )(w_flat, bn, x_flat)

    return out_flat.reshape(N, C, H, W)


def spatial_gate_ref(x, conv_w, bn_gamma, bn_beta, bn_mean, bn_var, eps=1e-5):
    """Pure-JAX reference mirroring the PyTorch module (BN eval mode)."""
    cmax = jnp.max(x, axis=1, keepdims=True)
    cmean = jnp.mean(x, axis=1, keepdims=True)
    comp = jnp.concatenate([cmax, cmean], axis=1)            # (N, 2, H, W)
    conv = lax.conv_general_dilated(
        comp, conv_w, window_strides=(1, 1),
        padding=[(PAD, PAD), (PAD, PAD)],
        dimension_numbers=("NCHW", "OIHW", "NCHW"))
    y = (conv - bn_mean) / jnp.sqrt(bn_var + eps) * bn_gamma + bn_beta
    return x * jax.nn.sigmoid(y)


if __name__ == "__main__":
    key = jax.random.PRNGKey(0)
    k_x, k_w, k_g, k_b, k_m, k_v = jax.random.split(key, 6)

    N, C, H, W = 2, 4, 16, 16
    x = jax.random.normal(k_x, (N, C, H, W), dtype=jnp.float32)

    # Deterministic synthetic parameters (shapes from the module's __init__).
    conv_w = jax.random.normal(k_w, (1, 2, K, K), dtype=jnp.float32) * 0.1
    bn_gamma = 1.0 + 0.1 * jax.random.normal(k_g, (), dtype=jnp.float32)
    bn_beta = 0.1 * jax.random.normal(k_b, (), dtype=jnp.float32)
    bn_mean = 0.1 * jax.random.normal(k_m, (), dtype=jnp.float32)
    bn_var = 1.0 + 0.1 * jnp.abs(jax.random.normal(k_v, (), dtype=jnp.float32))

    out = spatial_gate(x, conv_w, bn_gamma, bn_beta, bn_mean, bn_var)
    out = jax.block_until_ready(out)

    ref = spatial_gate_ref(x, conv_w, bn_gamma, bn_beta, bn_mean, bn_var)
    assert out.shape == (N, C, H, W)
    assert jnp.allclose(out, ref, rtol=1e-5, atol=1e-5), (
        float(jnp.max(jnp.abs(out - ref))))

    print("KERNEL_OK")
</pallas_src>

<mosaic_0001>
module attributes {stable_mosaic.version = 11 : i64} {
  func.func @kernel(%arg0: i32, %arg1: memref<98xf32, #tpu.memory_space<smem>>, %arg2: memref<2xf32, #tpu.memory_space<smem>>, %arg3: memref<1x4x256xf32, #tpu.memory_space<vmem>>, %arg4: memref<1x4x256xf32, #tpu.memory_space<vmem>>, %arg5: memref<1x2x22x22xf32, #tpu.memory_space<vmem>>, %arg6: memref<14x1x22x16xf32, #tpu.memory_space<vmem>>, %arg7: memref<1x16x16xf32, #tpu.memory_space<vmem>>) attributes {dimension_semantics = [#tpu.dimension_semantics<parallel>], iteration_bounds = array<i64: 2>, scalar_prefetch = 0 : i64, scratch_operands = 3 : i64, tpu.core_type = #tpu.core_type<tc>, window_params = [{transform_indices = @transform_0, window_bounds = array<i64: 98>}, {transform_indices = @transform_1, window_bounds = array<i64: 2>}, {transform_indices = @transform_2, window_bounds = array<i64: 1, 4, 256>}, {transform_indices = @transform_3, window_bounds = array<i64: 1, 4, 256>}]} {
    %c0 = arith.constant 0 : index
    %c0_0 = arith.constant 0 : index
    %c0_1 = arith.constant 0 : index
    %0 = vector.load %arg3[%c0, %c0_0, %c0_1] : memref<1x4x256xf32, #tpu.memory_space<vmem>>, vector<1x4x256xf32>
    %cst = arith.constant dense<0xFF800000> : vector<1x256xf32>
    %1 = vector.multi_reduction <maximumf>, %0, %cst [1] : vector<1x4x256xf32> to vector<1x256xf32>
    %cst_2 = arith.constant dense<0.000000e+00> : vector<1x256xf32>
    %2 = vector.multi_reduction <add>, %0, %cst_2 [1] : vector<1x4x256xf32> to vector<1x256xf32>
    %cst_3 = arith.constant 2.500000e-01 : f32
    %3 = vector.broadcast %cst_3 : f32 to vector<1x256xf32>
    %4 = arith.mulf %2, %3 : vector<1x256xf32>
    %cst_4 = arith.constant 0.000000e+00 : f32
    %5 = vector.broadcast %cst_4 : f32 to vector<1x2x3x22xf32>
    %c0_5 = arith.constant 0 : index
    %c0_6 = arith.constant 0 : index
    %c0_7 = arith.constant 0 : index
    %c0_8 = arith.constant 0 : index
    %6 = vector.load %arg5[%c0_5, %c0_6, %c0_7, %c0_8] : memref<1x2x22x22xf32, #tpu.memory_space<vmem>>, vector<1x2x3x22xf32>
    tpu.vector_store %arg5[%c0_5, %c0_6, %c0_7, %c0_8], %5 {strides = array<i32>} : memref<1x2x22x22xf32, #tpu.memory_space<vmem>>, vector<1x2x3x22xf32>,
    %cst_9 = arith.constant 0.000000e+00 : f32
    %7 = vector.broadcast %cst_9 : f32 to vector<1x2x3x22xf32>
    %c0_10 = arith.constant 0 : index
    %c0_11 = arith.constant 0 : index
    %c19 = arith.constant 19 : index
    %c0_12 = arith.constant 0 : index
    %8 = vector.load %arg5[%c0_10, %c0_11, %c19, %c0_12] : memref<1x2x22x22xf32, #tpu.memory_space<vmem>>, vector<1x2x3x22xf32>
    tpu.vector_store %arg5[%c0_10, %c0_11, %c19, %c0_12], %7 {strides = array<i32>} : memref<1x2x22x22xf32, #tpu.memory_space<vmem>>, vector<1x2x3x22xf32>,
    %cst_13 = arith.constant 0.000000e+00 : f32
    %9 = vector.broadcast %cst_13 : f32 to vector<1x2x16x3xf32>
    %c0_14 = arith.constant 0 : index
    %c0_15 = arith.constant 0 : index
    %c3 = arith.constant 3 : index
    %c0_16 = arith.constant 0 : index
    %10 = vector.load %arg5[%c0_14, %c0_15, %c3, %c0_16] : memref<1x2x22x22xf32, #tpu.memory_space<vmem>>, vector<1x2x16x3xf32>
    tpu.vector_store %arg5[%c0_14, %c0_15, %c3, %c0_16], %9 {strides = array<i32>} : memref<1x2x22x22xf32, #tpu.memory_space<vmem>>, vector<1x2x16x3xf32>,
    %cst_17 = arith.constant 0.000000e+00 : f32
    %11 = vector.broadcast %cst_17 : f32 to vector<1x2x16x3xf32>
    %c0_18 = arith.constant 0 : index
    %c0_19 = arith.constant 0 : index
    %c3_20 = arith.constant 3 : index
    %c19_21 = arith.constant 19 : index
    %12 = vector.load %arg5[%c0_18, %c0_19, %c3_20, %c19_21] : memref<1x2x22x22xf32, #tpu.memory_space<vmem>>, vector<1x2x16x3xf32>
    tpu.vector_store %arg5[%c0_18, %c0_19, %c3_20, %c19_21], %11 {strides = array<i32>} : memref<1x2x22x22xf32, #tpu.memory_space<vmem>>, vector<1x2x16x3xf32>,
    %13 = vector.shape_cast %1 : vector<1x256xf32> to vector<1x16x16xf32>
    %c0_22 = arith.constant 0 : index
    %c0_23 = arith.constant 0 : index
    %c3_24 = arith.constant 3 : index
    %c3_25 = arith.constant 3 : index
    %14 = vector.load %arg5[%c0_22, %c0_23, %c3_24, %c3_25] : memref<1x2x22x22xf32, #tpu.memory_space<vmem>>, vector<1x1x16x16xf32>
    %15 = vector.shape_cast %14 : vector<1x1x16x16xf32> to vector<1x16x16xf32>
    %16 = vector.shape_cast %13 : vector<1x16x16xf32> to vector<1x1x16x16xf32>
    tpu.vector_store %arg5[%c0_22, %c0_23, %c3_24, %c3_25], %16 {strides = array<i32>} : memref<1x2x22x22xf32, #tpu.memory_space<vmem>>, vector<1x1x16x16xf32>,
    %17 = vector.shape_cast %4 : vector<1x256xf32> to vector<1x16x16xf32>
    %c0_26 = arith.constant 0 : index
    %c1 = arith.constant 1 : index
    %c3_27 = arith.constant 3 : index
    %c3_28 = arith.constant 3 : index
    %18 = vector.load %arg5[%c0_26, %c1, %c3_27, %c3_28] : memref<1x2x22x22xf32, #tpu.memory_space<vmem>>, vector<1x1x16x16xf32>
    %19 = vector.shape_cast %18 : vector<1x1x16x16xf32> to vector<1x16x16xf32>
    %20 = vector.shape_cast %17 : vector<1x16x16xf32> to vector<1x1x16x16xf32>
    tpu.vector_store %arg5[%c0_26, %c1, %c3_27, %c3_28], %20 {strides = array<i32>} : memref<1x2x22x22xf32, #tpu.memory_space<vmem>>, vector<1x1x16x16xf32>,
    %c0_29 = arith.constant 0 : index
    %c0_30 = arith.constant 0 : index
    %c0_31 = arith.constant 0 : index
    %c0_32 = arith.constant 0 : index
    %21 = vector.load %arg5[%c0_29, %c0_30, %c0_31, %c0_32] : memref<1x2x22x22xf32, #tpu.memory_space<vmem>>, vector<1x1x22x16xf32>
    %22 = vector.shape_cast %21 : vector<1x1x22x16xf32> to vector<1x22x16xf32>
    %c0_33 = arith.constant 0 : index
    %c0_34 = arith.constant 0 : index
    %c0_35 = arith.constant 0 : index
    %c0_36 = arith.constant 0 : index
    %23 = vector.load %arg6[%c0_33, %c0_34, %c0_35, %c0_36] : memref<14x1x22x16xf32, #tpu.memory_space<vmem>>, vector<1x1x22x16xf32>
    %24 = vector.shape_cast %23 : vector<1x1x22x16xf32> to vector<1x22x16xf32>
    %25 = vector.shape_cast %22 : vector<1x22x16xf32> to vector<1x1x22x16xf32>
    tpu.vector_store %arg6[%c0_33, %c0_34, %c0_35, %c0_36], %25 {strides = array<i32>} : memref<14x1x22x16xf32, #tpu.memory_space<vmem>>, vector<1x1x22x16xf32>,
    %c0_37 = arith.constant 0 : index
    %c0_38 = arith.constant 0 : index
    %c0_39 = arith.constant 0 : index
    %c1_40 = arith.constant 1 : index
    %26 = vector.load %arg5[%c0_37, %c0_38, %c0_39, %c1_40] : memref<1x2x22x22xf32, #tpu.memory_space<vmem>>, vector<1x1x22x16xf32>
    %27 = vector.shape_cast %26 : vector<1x1x22x16xf32> to vector<1x22x16xf32>
    %c1_41 = arith.constant 1 : index
    %c0_42 = arith.constant 0 : index
    %c0_43 = arith.constant 0 : index
    %c0_44 = arith.constant 0 : index
    %28 = vector.load %arg6[%c1_41, %c0_42, %c0_43, %c0_44] : memref<14x1x22x16xf32, #tpu.memory_space<vmem>>, vector<1x1x22x16xf32>
    %29 = vector.shape_cast %28 : vector<1x1x22x16xf32> to vector<1x22x16xf32>
    %30 = vector.shape_cast %27 : vector<1x22x16xf32> to vector<1x1x22x16xf32>
    tpu.vector_store %arg6[%c1_41, %c0_42, %c0_43, %c0_44], %30 {strides = array<i32>} : memref<14x1x22x16xf32, #tpu.memory_space<vmem>>, vector<1x1x22x16xf32>,
    %c0_45 = arith.constant 0 : index
    %c0_46 = arith.constant 0 : index
    %c0_47 = arith.constant 0 : index
    %c2 = arith.constant 2 : index
    %31 = vector.load %arg5[%c0_45, %c0_46, %c0_47, %c2] : memref<1x2x22x22xf32, #tpu.memory_space<vmem>>, vector<1x1x22x16xf32>
    %32 = vector.shape_cast %31 : vector<1x1x22x16xf32> to vector<1x22x16xf32>
    %c2_48 = arith.constant 2 : index
    %c0_49 = arith.constant 0 : index
    %c0_50 = arith.constant 0 : index
    %c0_51 = arith.constant 0 : index
    %33 = vector.load %arg6[%c2_48, %c0_49, %c0_50, %c0_51] : memref<14x1x22x16xf32, #tpu.memory_space<vmem>>, vector<1x1x22x16xf32>
    %34 = vector.shape_cast %33 : vector<1x1x22x16xf32> to vector<1x22x16xf32>
    %35 = vector.shape_cast %32 : vector<1x22x16xf32> to vector<1x1x22x16xf32>
    tpu.vector_store %arg6[%c2_48, %c0_49, %c0_50, %c0_51], %35 {strides = array<i32>} : memref<14x1x22x16xf32, #tpu.memory_space<vmem>>, vector<1x1x22x16xf32>,
    %c0_52 = arith.constant 0 : index
    %c0_53 = arith.constant 0 : index
    %c0_54 = arith.constant 0 : index
    %c3_55 = arith.constant 3 : index
    %36 = vector.load %arg5[%c0_52, %c0_53, %c0_54, %c3_55] : memref<1x2x22x22xf32, #tpu.memory_space<vmem>>, vector<1x1x22x16xf32>
    %37 = vector.shape_cast %36 : vector<1x1x22x16xf32> to vector<1x22x16xf32>
    %c3_56 = arith.constant 3 : index
    %c0_57 = arith.constant 0 : index
    %c0_58 = arith.constant 0 : index
    %c0_59 = arith.constant 0 : index
    %38 = vector.load %arg6[%c3_56, %c0_57, %c0_58, %c0_59] : memref<14x1x22x16xf32, #tpu.memory_space<vmem>>, vector<1x1x22x16xf32>
    %39 = vector.shape_cast %38 : vector<1x1x22x16xf32> to vector<1x22x16xf32>
    %40 = vector.shape_cast %37 : vector<1x22x16xf32> to vector<1x1x22x16xf32>
    tpu.vector_store %arg6[%c3_56, %c0_57, %c0_58, %c0_59], %40 {strides = array<i32>} : memref<14x1x22x16xf32, #tpu.memory_space<vmem>>, vector<1x1x22x16xf32>,
    %c0_60 = arith.constant 0 : index
    %c0_61 = arith.constant 0 : index
    %c0_62 = arith.constant 0 : index
    %c4 = arith.constant 4 : index
    %41 = vector.load %arg5[%c0_60, %c0_61, %c0_62, %c4] : memref<1x2x22x22xf32, #tpu.memory_space<vmem>>, vector<1x1x22x16xf32>
    %42 = vector.shape_cast %41 : vector<1x1x22x16xf32> to vector<1x22x16xf32>
    %c4_63 = arith.constant 4 : index
    %c0_64 = arith.constant 0 : index
    %c0_65 = arith.constant 0 : index
    %c0_66 = arith.constant 0 : index
    %43 = vector.load %arg6[%c4_63, %c0_64, %c0_65, %c0_66] : memref<14x1x22x16xf32, #tpu.memory_space<vmem>>, vector<1x1x22x16xf32>
    %44 = vector.shape_cast %43 : vector<1x1x22x16xf32> to vector<1x22x16xf32>
    %45 = vector.shape_cast %42 : vector<1x22x16xf32> to vector<1x1x22x16xf32>
    tpu.vector_store %arg6[%c4_63, %c0_64, %c0_65, %c0_66], %45 {strides = array<i32>} : memref<14x1x22x16xf32, #tpu.memory_space<vmem>>, vector<1x1x22x16xf32>,
    %c0_67 = arith.constant 0 : index
    %c0_68 = arith.constant 0 : index
    %c0_69 = arith.constant 0 : index
    %c5 = arith.constant 5 : index
    %46 = vector.load %arg5[%c0_67, %c0_68, %c0_69, %c5] : memref<1x2x22x22xf32, #tpu.memory_space<vmem>>, vector<1x1x22x16xf32>
    %47 = vector.shape_cast %46 : vector<1x1x22x16xf32> to vector<1x22x16xf32>
    %c5_70 = arith.constant 5 : index
    %c0_71 = arith.constant 0 : index
    %c0_72 = arith.constant 0 : index
    %c0_73 = arith.constant 0 : index
    %48 = vector.load %arg6[%c5_70, %c0_71, %c0_72, %c0_73] : memref<14x1x22x16xf32, #tpu.memory_space<vmem>>, vector<1x1x22x16xf32>
    %49 = vector.shape_cast %48 : vector<1x1x22x16xf32> to vector<1x22x16xf32>
    %50 = vector.shape_cast %47 : vector<1x22x16xf32> to vector<1x1x22x16xf32>
    tpu.vector_store %arg6[%c5_70, %c0_71, %c0_72, %c0_73], %50 {strides = array<i32>} : memref<14x1x22x16xf32, #tpu.memory_space<vmem>>, vector<1x1x22x16xf32>,
    %c0_74 = arith.constant 0 : index
    %c0_75 = arith.constant 0 : index
    %c0_76 = arith.constant 0 : index
    %c6 = arith.constant 6 : index
    %51 = vector.load %arg5[%c0_74, %c0_75, %c0_76, %c6] : memref<1x2x22x22xf32, #tpu.memory_space<vmem>>, vector<1x1x22x16xf32>
    %52 = vector.shape_cast %51 : vector<1x1x22x16xf32> to vector<1x22x16xf32>
    %c6_77 = arith.constant 6 : index
    %c0_78 = arith.constant 0 : index
    %c0_79 = arith.constant 0 : index
    %c0_80 = arith.constant 0 : index
    %53 = vector.load %arg6[%c6_77, %c0_78, %c0_79, %c0_80] : memref<14x1x22x16xf32, #tpu.memory_space<vmem>>, vector<1x1x22x16xf32>
    %54 = vector.shape_cast %53 : vector<1x1x22x16xf32> to vector<1x22x16xf32>
    %55 = vector.shape_cast %52 : vector<1x22x16xf32> to vector<1x1x22x16xf32>
    tpu.vector_store %arg6[%c6_77, %c0_78, %c0_79, %c0_80], %55 {strides = array<i32>} : memref<14x1x22x16xf32, #tpu.memory_space<vmem>>, vector<1x1x22x16xf32>,
    %c0_81 = arith.constant 0 : index
    %c1_82 = arith.constant 1 : index
    %c0_83 = arith.constant 0 : index
    %c0_84 = arith.constant 0 : index
    %56 = vector.load %arg5[%c0_81, %c1_82, %c0_83, %c0_84] : memref<1x2x22x22xf32, #tpu.memory_space<vmem>>, vector<1x1x22x16xf32>
    %57 = vector.shape_cast %56 : vector<1x1x22x16xf32> to vector<1x22x16xf32>
    %c7 = arith.constant 7 : index
    %c0_85 = arith.constant 0 : index
    %c0_86 = arith.constant 0 : index
    %c0_87 = arith.constant 0 : index
    %58 = vector.load %arg6[%c7, %c0_85, %c0_86, %c0_87] : memref<14x1x22x16xf32, #tpu.memory_space<vmem>>, vector<1x1x22x16xf32>
    %59 = vector.shape_cast %58 : vector<1x1x22x16xf32> to vector<1x22x16xf32>
    %60 = vector.shape_cast %57 : vector<1x22x16xf32> to vector<1x1x22x16xf32>
    tpu.vector_store %arg6[%c7, %c0_85, %c0_86, %c0_87], %60 {strides = array<i32>} : memref<14x1x22x16xf32, #tpu.memory_space<vmem>>, vector<1x1x22x16xf32>,
    %c0_88 = arith.constant 0 : index
    %c1_89 = arith.constant 1 : index
    %c0_90 = arith.constant 0 : index
    %c1_91 = arith.constant 1 : index
    %61 = vector.load %arg5[%c0_88, %c1_89, %c0_90, %c1_91] : memref<1x2x22x22xf32, #tpu.memory_space<vmem>>, vector<1x1x22x16xf32>
    %62 = vector.shape_cast %61 : vector<1x1x22x16xf32> to vector<1x22x16xf32>
    %c8 = arith.constant 8 : index
    %c0_92 = arith.constant 0 : index
    %c0_93 = arith.constant 0 : index
    %c0_94 = arith.constant 0 : index
    %63 = vector.load %arg6[%c8, %c0_92, %c0_93, %c0_94] : memref<14x1x22x16xf32, #tpu.memory_space<vmem>>, vector<1x1x22x16xf32>
    %64 = vector.shape_cast %63 : vector<1x1x22x16xf32> to vector<1x22x16xf32>
    %65 = vector.shape_cast %62 : vector<1x22x16xf32> to vector<1x1x22x16xf32>
    tpu.vector_store %arg6[%c8, %c0_92, %c0_93, %c0_94], %65 {strides = array<i32>} : memref<14x1x22x16xf32, #tpu.memory_space<vmem>>, vector<1x1x22x16xf32>,
    %c0_95 = arith.constant 0 : index
    %c1_96 = arith.constant 1 : index
    %c0_97 = arith.constant 0 : index
    %c2_98 = arith.constant 2 : index
    %66 = vector.load %arg5[%c0_95, %c1_96, %c0_97, %c2_98] : memref<1x2x22x22xf32, #tpu.memory_space<vmem>>, vector<1x1x22x16xf32>
    %67 = vector.shape_cast %66 : vector<1x1x22x16xf32> to vector<1x22x16xf32>
    %c9 = arith.constant 9 : index
    %c0_99 = arith.constant 0 : index
    %c0_100 = arith.constant 0 : index
    %c0_101 = arith.constant 0 : index
    %68 = vector.load %arg6[%c9, %c0_99, %c0_100, %c0_101] : memref<14x1x22x16xf32, #tpu.memory_space<vmem>>, vector<1x1x22x16xf32>
    %69 = vector.shape_cast %68 : vector<1x1x22x16xf32> to vector<1x22x16xf32>
    %70 = vector.shape_cast %67 : vector<1x22x16xf32> to vector<1x1x22x16xf32>
    tpu.vector_store %arg6[%c9, %c0_99, %c0_100, %c0_101], %70 {strides = array<i32>} : memref<14x1x22x16xf32, #tpu.memory_space<vmem>>, vector<1x1x22x16xf32>,
    %c0_102 = arith.constant 0 : index
    %c1_103 = arith.constant 1 : index
    %c0_104 = arith.constant 0 : index
    %c3_105 = arith.constant 3 : index
    %71 = vector.load %arg5[%c0_102, %c1_103, %c0_104, %c3_105] : memref<1x2x22x22xf32, #tpu.memory_space<vmem>>, vector<1x1x22x16xf32>
    %72 = vector.shape_cast %71 : vector<1x1x22x16xf32> to vector<1x22x16xf32>
    %c10 = arith.constant 10 : index
    %c0_106 = arith.constant 0 : index
    %c0_107 = arith.constant 0 : index
    %c0_108 = arith.constant 0 : index
    %73 = vector.load %arg6[%c10, %c0_106, %c0_107, %c0_108] : memref<14x1x22x16xf32, #tpu.memory_space<vmem>>, vector<1x1x22x16xf32>
    %74 = vector.shape_cast %73 : vector<1x1x22x16xf32> to vector<1x22x16xf32>
    %75 = vector.shape_cast %72 : vector<1x22x16xf32> to vector<1x1x22x16xf32>
    tpu.vector_store %arg6[%c10, %c0_106, %c0_107, %c0_108], %75 {strides = array<i32>} : memref<14x1x22x16xf32, #tpu.memory_space<vmem>>, vector<1x1x22x16xf32>,
    %c0_109 = arith.constant 0 : index
    %c1_110 = arith.constant 1 : index
    %c0_111 = arith.constant 0 : index
    %c4_112 = arith.constant 4 : index
    %76 = vector.load %arg5[%c0_109, %c1_110, %c0_111, %c4_112] : memref<1x2x22x22xf32, #tpu.memory_space<vmem>>, vector<1x1x22x16xf32>
    %77 = vector.shape_cast %76 : vector<1x1x22x16xf32> to vector<1x22x16xf32>
    %c11 = arith.constant 11 : index
    %c0_113 = arith.constant 0 : index
    %c0_114 = arith.constant 0 : index
    %c0_115 = arith.constant 0 : index
    %78 = vector.load %arg6[%c11, %c0_113, %c0_114, %c0_115] : memref<14x1x22x16xf32, #tpu.memory_space<vmem>>, vector<1x1x22x16xf32>
    %79 = vector.shape_cast %78 : vector<1x1x22x16xf32> to vector<1x22x16xf32>
    %80 = vector.shape_cast %77 : vector<1x22x16xf32> to vector<1x1x22x16xf32>
    tpu.vector_store %arg6[%c11, %c0_113, %c0_114, %c0_115], %80 {strides = array<i32>} : memref<14x1x22x16xf32, #tpu.memory_space<vmem>>, vector<1x1x22x16xf32>,
    %c0_116 = arith.constant 0 : index
    %c1_117 = arith.constant 1 : index
    %c0_118 = arith.constant 0 : index
    %c5_119 = arith.constant 5 : index
    %81 = vector.load %arg5[%c0_116, %c1_117, %c0_118, %c5_119] : memref<1x2x22x22xf32, #tpu.memory_space<vmem>>, vector<1x1x22x16xf32>
    %82 = vector.shape_cast %81 : vector<1x1x22x16xf32> to vector<1x22x16xf32>
    %c12 = arith.constant 12 : index
    %c0_120 = arith.constant 0 : index
    %c0_121 = arith.constant 0 : index
    %c0_122 = arith.constant 0 : index
    %83 = vector.load %arg6[%c12, %c0_120, %c0_121, %c0_122] : memref<14x1x22x16xf32, #tpu.memory_space<vmem>>, vector<1x1x22x16xf32>
    %84 = vector.shape_cast %83 : vector<1x1x22x16xf32> to vector<1x22x16xf32>
    %85 = vector.shape_cast %82 : vector<1x22x16xf32> to vector<1x1x22x16xf32>
    tpu.vector_store %arg6[%c12, %c0_120, %c0_121, %c0_122], %85 {strides = array<i32>} : memref<14x1x22x16xf32, #tpu.memory_space<vmem>>, vector<1x1x22x16xf32>,
    %c0_123 = arith.constant 0 : index
    %c1_124 = arith.constant 1 : index
    %c0_125 = arith.constant 0 : index
    %c6_126 = arith.constant 6 : index
    %86 = vector.load %arg5[%c0_123, %c1_124, %c0_125, %c6_126] : memref<1x2x22x22xf32, #tpu.memory_space<vmem>>, vector<1x1x22x16xf32>
    %87 = vector.shape_cast %86 : vector<1x1x22x16xf32> to vector<1x22x16xf32>
    %c13 = arith.constant 13 : index
    %c0_127 = arith.constant 0 : index
    %c0_128 = arith.constant 0 : index
    %c0_129 = arith.constant 0 : index
    %88 = vector.load %arg6[%c13, %c0_127, %c0_128, %c0_129] : memref<14x1x22x16xf32, #tpu.memory_space<vmem>>, vector<1x1x22x16xf32>
    %89 = vector.shape_cast %88 : vector<1x1x22x16xf32> to vector<1x22x16xf32>
    %90 = vector.shape_cast %87 : vector<1x22x16xf32> to vector<1x1x22x16xf32>
    tpu.vector_store %arg6[%c13, %c0_127, %c0_128, %c0_129], %90 {strides = array<i32>} : memref<14x1x22x16xf32, #tpu.memory_space<vmem>>, vector<1x1x22x16xf32>,
    %c0_130 = arith.constant 0 : index
    %91 = memref.load %arg1[%c0_130] : memref<98xf32, #tpu.memory_space<smem>>
    %c1_131 = arith.constant 1 : index
    %92 = memref.load %arg1[%c1_131] : memref<98xf32, #tpu.memory_space<smem>>
    %c2_132 = arith.constant 2 : index
    %93 = memref.load %arg1[%c2_132] : memref<98xf32, #tpu.memory_space<smem>>
    %c3_133 = arith.constant 3 : index
    %94 = memref.load %arg1[%c3_133] : memref<98xf32, #tpu.memory_space<smem>>
    %c4_134 = arith.constant 4 : index
    %95 = memref.load %arg1[%c4_134] : memref<98xf32, #tpu.memory_space<smem>>
    %c5_135 = arith.constant 5 : index
    %96 = memref.load %arg1[%c5_135] : memref<98xf32, #tpu.memory_space<smem>>
    %c6_136 = arith.constant 6 : index
    %97 = memref.load %arg1[%c6_136] : memref<98xf32, #tpu.memory_space<smem>>
    %c7_137 = arith.constant 7 : index
    %98 = memref.load %arg1[%c7_137] : memref<98xf32, #tpu.memory_space<smem>>
    %c8_138 = arith.constant 8 : index
    %99 = memref.load %arg1[%c8_138] : memref<98xf32, #tpu.memory_space<smem>>
    %c9_139 = arith.constant 9 : index
    %100 = memref.load %arg1[%c9_139] : memref<98xf32, #tpu.memory_space<smem>>
    %c10_140 = arith.constant 10 : index
    %101 = memref.load %arg1[%c10_140] : memref<98xf32, #tpu.memory_space<smem>>
    %c11_141 = arith.constant 11 : index
    %102 = memref.load %arg1[%c11_141] : memref<98xf32, #tpu.memory_space<smem>>
    %c12_142 = arith.constant 12 : index
    %103 = memref.load %arg1[%c12_142] : memref<98xf32, #tpu.memory_space<smem>>
    %c13_143 = arith.constant 13 : index
    %104 = memref.load %arg1[%c13_143] : memref<98xf32, #tpu.memory_space<smem>>
    %c14 = arith.constant 14 : index
    %105 = memref.load %arg1[%c14] : memref<98xf32, #tpu.memory_space<smem>>
    %c15 = arith.constant 15 : index
    %106 = memref.load %arg1[%c15] : memref<98xf32, #tpu.memory_space<smem>>
    %c16 = arith.constant 16 : index
    %107 = memref.load %arg1[%c16] : memref<98xf32, #tpu.memory_space<smem>>
    %c17 = arith.constant 17 : index
    %108 = memref.load %arg1[%c17] : memref<98xf32, #tpu.memory_space<smem>>
    %c18 = arith.constant 18 : index
    %109 = memref.load %arg1[%c18] : memref<98xf32, #tpu.memory_space<smem>>
    %c19_144 = arith.constant 19 : index
    %110 = memref.load %arg1[%c19_144] : memref<98xf32, #tpu.memory_space<smem>>
    %c20 = arith.constant 20 : index
    %111 = memref.load %arg1[%c20] : memref<98xf32, #tpu.memory_space<smem>>
    %c21 = arith.constant 21 : index
    %112 = memref.load %arg1[%c21] : memref<98xf32, #tpu.memory_space<smem>>
    %c22 = arith.constant 22 : index
    %113 = memref.load %arg1[%c22] : memref<98xf32, #tpu.memory_space<smem>>
    %c23 = arith.constant 23 : index
    %114 = memref.load %arg1[%c23] : memref<98xf32, #tpu.memory_space<smem>>
    %c24 = arith.constant 24 : index
    %115 = memref.load %arg1[%c24] : memref<98xf32, #tpu.memory_space<smem>>
    %c25 = arith.constant 25 : index
    %116 = memref.load %arg1[%c25] : memref<98xf32, #tpu.memory_space<smem>>
    %c26 = arith.constant 26 : index
    %117 = memref.load %arg1[%c26] : memref<98xf32, #tpu.memory_space<smem>>
    %c27 = arith.constant 27 : index
    %118 = memref.load %arg1[%c27] : memref<98xf32, #tpu.memory_space<smem>>
    %c28 = arith.constant 28 : index
    %119 = memref.load %arg1[%c28] : memref<98xf32, #tpu.memory_space<smem>>
    %c29 = arith.constant 29 : index
    %120 = memref.load %arg1[%c29] : memref<98xf32, #tpu.memory_space<smem>>
    %c30 = arith.constant 30 : index
    %121 = memref.load %arg1[%c30] : memref<98xf32, #tpu.memory_space<smem>>
    %c31 = arith.constant 31 : index
    %122 = memref.load %arg1[%c31] : memref<98xf32, #tpu.memory_space<smem>>
    %c32 = arith.constant 32 : index
    %123 = memref.load %arg1[%c32] : memref<98xf32, #tpu.memory_space<smem>>
    %c33 = arith.constant 33 : index
    %124 = memref.load %arg1[%c33] : memref<98xf32, #tpu.memory_space<smem>>
    %c34 = arith.constant 34 : index
    %125 = memref.load %arg1[%c34] : memref<98xf32, #tpu.memory_space<smem>>
    %c35 = arith.constant 35 : index
    %126 = memref.load %arg1[%c35] : memref<98xf32, #tpu.memory_space<smem>>
    %c36 = arith.constant 36 : index
    %127 = memref.load %arg1[%c36] : memref<98xf32, #tpu.memory_space<smem>>
    %c37 = arith.constant 37 : index
    %128 = memref.load %arg1[%c37] : memref<98xf32, #tpu.memory_space<smem>>
    %c38 = arith.constant 38 : index
    %129 = memref.load %arg1[%c38] : memref<98xf32, #tpu.memory_space<smem>>
    %c39 = arith.constant 39 : index
    %130 = memref.load %arg1[%c39] : memref<98xf32, #tpu.memory_space<smem>>
    %c40 = arith.constant 40 : index
    %131 = memref.load %arg1[%c40] : memref<98xf32, #tpu.memory_space<smem>>
    %c41 = arith.constant 41 : index
    %132 = memref.load %arg1[%c41] : memref<98xf32, #tpu.memory_space<smem>>
    %c42 = arith.constant 42 : index
    %133 = memref.load %arg1[%c42] : memref<98xf32, #tpu.memory_space<smem>>
    %c43 = arith.constant 43 : index
    %134 = memref.load %arg1[%c43] : memref<98xf32, #tpu.memory_space<smem>>
    %c44 = arith.constant 44 : index
    %135 = memref.load %arg1[%c44] : memref<98xf32, #tpu.memory_space<smem>>
    %c45 = arith.constant 45 : index
    %136 = memref.load %arg1[%c45] : memref<98xf32, #tpu.memory_space<smem>>
    %c46 = arith.constant 46 : index
    %137 = memref.load %arg1[%c46] : memref<98xf32, #tpu.memory_space<smem>>
    %c47 = arith.constant 47 : index
    %138 = memref.load %arg1[%c47] : memref<98xf32, #tpu.memory_space<smem>>
    %c48 = arith.constant 48 : index
    %139 = memref.load %arg1[%c48] : memref<98xf32, #tpu.memory_space<smem>>
    %c49 = arith.constant 49 : index
    %140 = memref.load %arg1[%c49] : memref<98xf32, #tpu.memory_space<smem>>
    %c50 = arith.constant 50 : index
    %141 = memref.load %arg1[%c50] : memref<98xf32, #tpu.memory_space<smem>>
    %c51 = arith.constant 51 : index
    %142 = memref.load %arg1[%c51] : memref<98xf32, #tpu.memory_space<smem>>
    %c52 = arith.constant 52 : index
    %143 = memref.load %arg1[%c52] : memref<98xf32, #tpu.memory_space<smem>>
    %c53 = arith.constant 53 : index
    %144 = memref.load %arg1[%c53] : memref<98xf32, #tpu.memory_space<smem>>
    %c54 = arith.constant 54 : index
    %145 = memref.load %arg1[%c54] : memref<98xf32, #tpu.memory_space<smem>>
    %c55 = arith.constant 55 : index
    %146 = memref.load %arg1[%c55] : memref<98xf32, #tpu.memory_space<smem>>
    %c56 = arith.constant 56 : index
    %147 = memref.load %arg1[%c56] : memref<98xf32, #tpu.memory_space<smem>>
    %c57 = arith.constant 57 : index
    %148 = memref.load %arg1[%c57] : memref<98xf32, #tpu.memory_space<smem>>
    %c58 = arith.constant 58 : index
    %149 = memref.load %arg1[%c58] : memref<98xf32, #tpu.memory_space<smem>>
    %c59 = arith.constant 59 : index
    %150 = memref.load %arg1[%c59] : memref<98xf32, #tpu.memory_space<smem>>
    %c60 = arith.constant 60 : index
    %151 = memref.load %arg1[%c60] : memref<98xf32, #tpu.memory_space<smem>>
    %c61 = arith.constant 61 : index
    %152 = memref.load %arg1[%c61] : memref<98xf32, #tpu.memory_space<smem>>
    %c62 = arith.constant 62 : index
    %153 = memref.load %arg1[%c62] : memref<98xf32, #tpu.memory_space<smem>>
    %c63 = arith.constant 63 : index
    %154 = memref.load %arg1[%c63] : memref<98xf32, #tpu.memory_space<smem>>
    %c64 = arith.constant 64 : index
    %155 = memref.load %arg1[%c64] : memref<98xf32, #tpu.memory_space<smem>>
    %c65 = arith.constant 65 : index
    %156 = memref.load %arg1[%c65] : memref<98xf32, #tpu.memory_space<smem>>
    %c66 = arith.constant 66 : index
    %157 = memref.load %arg1[%c66] : memref<98xf32, #tpu.memory_space<smem>>
    %c67 = arith.constant 67 : index
    %158 = memref.load %arg1[%c67] : memref<98xf32, #tpu.memory_space<smem>>
    %c68 = arith.constant 68 : index
    %159 = memref.load %arg1[%c68] : memref<98xf32, #tpu.memory_space<smem>>
    %c69 = arith.constant 69 : index
    %160 = memref.load %arg1[%c69] : memref<98xf32, #tpu.memory_space<smem>>
    %c70 = arith.constant 70 : index
    %161 = memref.load %arg1[%c70] : memref<98xf32, #tpu.memory_space<smem>>
    %c71 = arith.constant 71 : index
    %162 = memref.load %arg1[%c71] : memref<98xf32, #tpu.memory_space<smem>>
    %c72 = arith.constant 72 : index
    %163 = memref.load %arg1[%c72] : memref<98xf32, #tpu.memory_space<smem>>
    %c73 = arith.constant 73 : index
    %164 = memref.load %arg1[%c73] : memref<98xf32, #tpu.memory_space<smem>>
    %c74 = arith.constant 74 : index
    %165 = memref.load %arg1[%c74] : memref<98xf32, #tpu.memory_space<smem>>
    %c75 = arith.constant 75 : index
    %166 = memref.load %arg1[%c75] : memref<98xf32, #tpu.memory_space<smem>>
    %c76 = arith.constant 76 : index
    %167 = memref.load %arg1[%c76] : memref<98xf32, #tpu.memory_space<smem>>
    %c77 = arith.constant 77 : index
    %168 = memref.load %arg1[%c77] : memref<98xf32, #tpu.memory_space<smem>>
    %c78 = arith.constant 78 : index
    %169 = memref.load %arg1[%c78] : memref<98xf32, #tpu.memory_space<smem>>
    %c79 = arith.constant 79 : index
    %170 = memref.load %arg1[%c79] : memref<98xf32, #tpu.memory_space<smem>>
    %c80 = arith.constant 80 : index
    %171 = memref.load %arg1[%c80] : memref<98xf32, #tpu.memory_space<smem>>
    %c81 = arith.constant 81 : index
    %172 = memref.load %arg1[%c81] : memref<98xf32, #tpu.memory_space<smem>>
    %c82 = arith.constant 82 : index
    %173 = memref.load %arg1[%c82] : memref<98xf32, #tpu.memory_space<smem>>
    %c83 = arith.constant 83 : index
    %174 = memref.load %arg1[%c83] : memref<98xf32, #tpu.memory_space<smem>>
    %c84 = arith.constant 84 : index
    %175 = memref.load %arg1[%c84] : memref<98xf32, #tpu.memory_space<smem>>
    %c85 = arith.constant 85 : index
    %176 = memref.load %arg1[%c85] : memref<98xf32, #tpu.memory_space<smem>>
    %c86 = arith.constant 86 : index
    %177 = memref.load %arg1[%c86] : memref<98xf32, #tpu.memory_space<smem>>
    %c87 = arith.constant 87 : index
    %178 = memref.load %arg1[%c87] : memref<98xf32, #tpu.memory_space<smem>>
    %c88 = arith.constant 88 : index
    %179 = memref.load %arg1[%c88] : memref<98xf32, #tpu.memory_space<smem>>
    %c89 = arith.constant 89 : index
    %180 = memref.load %arg1[%c89] : memref<98xf32, #tpu.memory_space<smem>>
    %c90 = arith.constant 90 : index
    %181 = memref.load %arg1[%c90] : memref<98xf32, #tpu.memory_space<smem>>
    %c91 = arith.constant 91 : index
    %182 = memref.load %arg1[%c91] : memref<98xf32, #tpu.memory_space<smem>>
    %c92 = arith.constant 92 : index
    %183 = memref.load %arg1[%c92] : memref<98xf32, #tpu.memory_space<smem>>
    %c93 = arith.constant 93 : index
    %184 = memref.load %arg1[%c93] : memref<98xf32, #tpu.memory_space<smem>>
    %c94 = arith.constant 94 : index
    %185 = memref.load %arg1[%c94] : memref<98xf32, #tpu.memory_space<smem>>
    %c95 = arith.constant 95 : index
    %186 = memref.load %arg1[%c95] : memref<98xf32, #tpu.memory_space<smem>>
    %c96 = arith.constant 96 : index
    %187 = memref.load %arg1[%c96] : memref<98xf32, #tpu.memory_space<smem>>
    %c97 = arith.constant 97 : index
    %188 = memref.load %arg1[%c97] : memref<98xf32, #tpu.memory_space<smem>>
    %c0_145 = arith.constant 0 : index
    %189 = memref.load %arg2[%c0_145] : memref<2xf32, #tpu.memory_space<smem>>
    %c1_146 = arith.constant 1 : index
    %190 = memref.load %arg2[%c1_146] : memref<2xf32, #tpu.memory_space<smem>>
    %cst_147 = arith.constant 0.000000e+00 : f32
    %191 = vector.broadcast %cst_147 : f32 to vector<1x8x16xf32>
    %c0_148 = arith.constant 0 : index
    %c0_149 = arith.constant 0 : index
    %c0_150 = arith.constant 0 : index
    %c0_151 = arith.constant 0 : index
    %192 = vector.load %arg6[%c0_148, %c0_149, %c0_150, %c0_151] : memref<14x1x22x16xf32, #tpu.memory_space<vmem>>, vector<1x1x8x16xf32>
    %193 = vector.shape_cast %192 : vector<1x1x8x16xf32> to vector<1x8x16xf32>
    %194 = vector.broadcast %91 : f32 to vector<1x8x16xf32>
    %195 = arith.mulf %194, %193 : vector<1x8x16xf32>
    %196 = arith.addf %191, %195 : vector<1x8x16xf32>
    %c0_152 = arith.constant 0 : index
    %c0_153 = arith.constant 0 : index
    %c1_154 = arith.constant 1 : index
    %c0_155 = arith.constant 0 : index
    %197 = vector.load %arg6[%c0_152, %c0_153, %c1_154, %c0_155] : memref<14x1x22x16xf32, #tpu.memory_space<vmem>>, vector<1x1x8x16xf32>
    %198 = vector.shape_cast %197 : vector<1x1x8x16xf32> to vector<1x8x16xf32>
    %199 = vector.broadcast %98 : f32 to vector<1x8x16xf32>
    %200 = arith.mulf %199, %198 : vector<1x8x16xf32>
    %201 = arith.addf %196, %200 : vector<1x8x16xf32>
    %c0_156 = arith.constant 0 : index
    %c0_157 = arith.constant 0 : index
    %c2_158 = arith.constant 2 : index
    %c0_159 = arith.constant 0 : index
    %202 = vector.load %arg6[%c0_156, %c0_157, %c2_158, %c0_159] : memref<14x1x22x16xf32, #tpu.memory_space<vmem>>, vector<1x1x8x16xf32>
    %203 = vector.shape_cast %202 : vector<1x1x8x16xf32> to vector<1x8x16xf32>
    %204 = vector.broadcast %105 : f32 to vector<1x8x16xf32>
    %205 = arith.mulf %204, %203 : vector<1x8x16xf32>
    %206 = arith.addf %201, %205 : vector<1x8x16xf32>
    %c0_160 = arith.constant 0 : index
    %c0_161 = arith.constant 0 : index
    %c3_162 = arith.constant 3 : index
    %c0_163 = arith.constant 0 : index
    %207 = vector.load %arg6[%c0_160, %c0_161, %c3_162, %c0_163] : memref<14x1x22x16xf32, #tpu.memory_space<vmem>>, vector<1x1x8x16xf32>
    %208 = vector.shape_cast %207 : vector<1x1x8x16xf32> to vector<1x8x16xf32>
    %209 = vector.broadcast %112 : f32 to vector<1x8x16xf32>
    %210 = arith.mulf %209, %208 : vector<1x8x16xf32>
    %211 = arith.addf %206, %210 : vector<1x8x16xf32>
    %c0_164 = arith.constant 0 : index
    %c0_165 = arith.constant 0 : index
    %c4_166 = arith.constant 4 : index
    %c0_167 = arith.constant 0 : index
    %212 = vector.load %arg6[%c0_164, %c0_165, %c4_166, %c0_167] : memref<14x1x22x16xf32, #tpu.memory_space<vmem>>, vector<1x1x8x16xf32>
    %213 = vector.shape_cast %212 : vector<1x1x8x16xf32> to vector<1x8x16xf32>
    %214 = vector.broadcast %119 : f32 to vector<1x8x16xf32>
    %215 = arith.mulf %214, %213 : vector<1x8x16xf32>
    %216 = arith.addf %211, %215 : vector<1x8x16xf32>
    %c0_168 = arith.constant 0 : index
    %c0_169 = arith.constant 0 : index
    %c5_170 = arith.constant 5 : index
    %c0_171 = arith.constant 0 : index
    %217 = vector.load %arg6[%c0_168, %c0_169, %c5_170, %c0_171] : memref<14x1x22x16xf32, #tpu.memory_space<vmem>>, vector<1x1x8x16xf32>
    %218 = vector.shape_cast %217 : vector<1x1x8x16xf32> to vector<1x8x16xf32>
    %219 = vector.broadcast %126 : f32 to vector<1x8x16xf32>
    %220 = arith.mulf %219, %218 : vector<1x8x16xf32>
    %221 = arith.addf %216, %220 : vector<1x8x16xf32>
    %c0_172 = arith.constant 0 : index
    %c0_173 = arith.constant 0 : index
    %c6_174 = arith.constant 6 : index
    %c0_175 = arith.constant 0 : index
    %222 = vector.load %arg6[%c0_172, %c0_173, %c6_174, %c0_175] : memref<14x1x22x16xf32, #tpu.memory_space<vmem>>, vector<1x1x8x16xf32>
    %223 = vector.shape_cast %222 : vector<1x1x8x16xf32> to vector<1x8x16xf32>
    %224 = vector.broadcast %133 : f32 to vector<1x8x16xf32>
    %225 = arith.mulf %224, %223 : vector<1x8x16xf32>
    %226 = arith.addf %221, %225 : vector<1x8x16xf32>
    %c1_176 = arith.constant 1 : index
    %c0_177 = arith.constant 0 : index
    %c0_178 = arith.constant 0 : index
    %c0_179 = arith.constant 0 : index
    %227 = vector.load %arg6[%c1_176, %c0_177, %c0_178, %c0_179] : memref<14x1x22x16xf32, #tpu.memory_space<vmem>>, vector<1x1x8x16xf32>
    %228 = vector.shape_cast %227 : vector<1x1x8x16xf32> to vector<1x8x16xf32>
    %229 = vector.broadcast %92 : f32 to vector<1x8x16xf32>
    %230 = arith.mulf %229, %228 : vector<1x8x16xf32>
    %231 = arith.addf %226, %230 : vector<1x8x16xf32>
    %c1_180 = arith.constant 1 : index
    %c0_181 = arith.constant 0 : index
    %c1_182 = arith.constant 1 : index
    %c0_183 = arith.constant 0 : index
    %232 = vector.load %arg6[%c1_180, %c0_181, %c1_182, %c0_183] : memref<14x1x22x16xf32, #tpu.memory_space<vmem>>, vector<1x1x8x16xf32>
    %233 = vector.shape_cast %232 : vector<1x1x8x16xf32> to vector<1x8x16xf32>
    %234 = vector.broadcast %99 : f32 to vector<1x8x16xf32>
    %235 = arith.mulf %234, %233 : vector<1x8x16xf32>
    %236 = arith.addf %231, %235 : vector<1x8x16xf32>
    %c1_184 = arith.constant 1 : index
    %c0_185 = arith.constant 0 : index
    %c2_186 = arith.constant 2 : index
    %c0_187 = arith.constant 0 : index
    %237 = vector.load %arg6[%c1_184, %c0_185, %c2_186, %c0_187] : memref<14x1x22x16xf32, #tpu.memory_space<vmem>>, vector<1x1x8x16xf32>
    %238 = vector.shape_cast %237 : vector<1x1x8x16xf32> to vector<1x8x16xf32>
    %239 = vector.broadcast %106 : f32 to vector<1x8x16xf32>
    %240 = arith.mulf %239, %238 : vector<1x8x16xf32>
    %241 = arith.addf %236, %240 : vector<1x8x16xf32>
    %c1_188 = arith.constant 1 : index
    %c0_189 = arith.constant 0 : index
    %c3_190 = arith.constant 3 : index
    %c0_191 = arith.constant 0 : index
    %242 = vector.load %arg6[%c1_188, %c0_189, %c3_190, %c0_191] : memref<14x1x22x16xf32, #tpu.memory_space<vmem>>, vector<1x1x8x16xf32>
    %243 = vector.shape_cast %242 : vector<1x1x8x16xf32> to vector<1x8x16xf32>
    %244 = vector.broadcast %113 : f32 to vector<1x8x16xf32>
    %245 = arith.mulf %244, %243 : vector<1x8x16xf32>
    %246 = arith.addf %241, %245 : vector<1x8x16xf32>
    %c1_192 = arith.constant 1 : index
    %c0_193 = arith.constant 0 : index
    %c4_194 = arith.constant 4 : index
    %c0_195 = arith.constant 0 : index
    %247 = vector.load %arg6[%c1_192, %c0_193, %c4_194, %c0_195] : memref<14x1x22x16xf32, #tpu.memory_space<vmem>>, vector<1x1x8x16xf32>
    %248 = vector.shape_cast %247 : vector<1x1x8x16xf32> to vector<1x8x16xf32>
    %249 = vector.broadcast %120 : f32 to vector<1x8x16xf32>
    %250 = arith.mulf %249, %248 : vector<1x8x16xf32>
    %251 = arith.addf %246, %250 : vector<1x8x16xf32>
    %c1_196 = arith.constant 1 : index
    %c0_197 = arith.constant 0 : index
    %c5_198 = arith.constant 5 : index
    %c0_199 = arith.constant 0 : index
    %252 = vector.load %arg6[%c1_196, %c0_197, %c5_198, %c0_199] : memref<14x1x22x16xf32, #tpu.memory_space<vmem>>, vector<1x1x8x16xf32>
    %253 = vector.shape_cast %252 : vector<1x1x8x16xf32> to vector<1x8x16xf32>
    %254 = vector.broadcast %127 : f32 to vector<1x8x16xf32>
    %255 = arith.mulf %254, %253 : vector<1x8x16xf32>
    %256 = arith.addf %251, %255 : vector<1x8x16xf32>
    %c1_200 = arith.constant 1 : index
    %c0_201 = arith.constant 0 : index
    %c6_202 = arith.constant 6 : index
    %c0_203 = arith.constant 0 : index
    %257 = vector.load %arg6[%c1_200, %c0_201, %c6_202, %c0_203] : memref<14x1x22x16xf32, #tpu.memory_space<vmem>>, vector<1x1x8x16xf32>
    %258 = vector.shape_cast %257 : vector<1x1x8x16xf32> to vector<1x8x16xf32>
    %259 = vector.broadcast %134 : f32 to vector<1x8x16xf32>
    %260 = arith.mulf %259, %258 : vector<1x8x16xf32>
    %261 = arith.addf %256, %260 : vector<1x8x16xf32>
    %c2_204 = arith.constant 2 : index
    %c0_205 = arith.constant 0 : index
    %c0_206 = arith.constant 0 : index
    %c0_207 = arith.constant 0 : index
    %262 = vector.load %arg6[%c2_204, %c0_205, %c0_206, %c0_207] : memref<14x1x22x16xf32, #tpu.memory_space<vmem>>, vector<1x1x8x16xf32>
    %263 = vector.shape_cast %262 : vector<1x1x8x16xf32> to vector<1x8x16xf32>
    %264 = vector.broadcast %93 : f32 to vector<1x8x16xf32>
    %265 = arith.mulf %264, %263 : vector<1x8x16xf32>
    %266 = arith.addf %261, %265 : vector<1x8x16xf32>
    %c2_208 = arith.constant 2 : index
    %c0_209 = arith.constant 0 : index
    %c1_210 = arith.constant 1 : index
    %c0_211 = arith.constant 0 : index
    %267 = vector.load %arg6[%c2_208, %c0_209, %c1_210, %c0_211] : memref<14x1x22x16xf32, #tpu.memory_space<vmem>>, vector<1x1x8x16xf32>
    %268 = vector.shape_cast %267 : vector<1x1x8x16xf32> to vector<1x8x16xf32>
    %269 = vector.broadcast %100 : f32 to vector<1x8x16xf32>
    %270 = arith.mulf %269, %268 : vector<1x8x16xf32>
    %271 = arith.addf %266, %270 : vector<1x8x16xf32>
    %c2_212 = arith.constant 2 : index
    %c0_213 = arith.constant 0 : index
    %c2_214 = arith.constant 2 : index
    %c0_215 = arith.constant 0 : index
    %272 = vector.load %arg6[%c2_212, %c0_213, %c2_214, %c0_215] : memref<14x1x22x16xf32, #tpu.memory_space<vmem>>, vector<1x1x8x16xf32>
    %273 = vector.shape_cast %272 : vector<1x1x8x16xf32> to vector<1x8x16xf32>
    %274 = vector.broadcast %107 : f32 to vector<1x8x16xf32>
    %275 = arith.mulf %274, %273 : vector<1x8x16xf32>
    %276 = arith.addf %271, %275 : vector<1x8x16xf32>
    %c2_216 = arith.constant 2 : index
    %c0_217 = arith.constant 0 : index
    %c3_218 = arith.constant 3 : index
    %c0_219 = arith.constant 0 : index
    %277 = vector.load %arg6[%c2_216, %c0_217, %c3_218, %c0_219] : memref<14x1x22x16xf32, #tpu.memory_space<vmem>>, vector<1x1x8x16xf32>
    %278 = vector.shape_cast %277 : vector<1x1x8x16xf32> to vector<1x8x16xf32>
    %279 = vector.broadcast %114 : f32 to vector<1x8x16xf32>
    %280 = arith.mulf %279, %278 : vector<1x8x16xf32>
    %281 = arith.addf %276, %280 : vector<1x8x16xf32>
    %c2_220 = arith.constant 2 : index
    %c0_221 = arith.constant 0 : index
    %c4_222 = arith.constant 4 : index
    %c0_223 = arith.constant 0 : index
    %282 = vector.load %arg6[%c2_220, %c0_221, %c4_222, %c0_223] : memref<14x1x22x16xf32, #tpu.memory_space<vmem>>, vector<1x1x8x16xf32>
    %283 = vector.shape_cast %282 : vector<1x1x8x16xf32> to vector<1x8x16xf32>
    %284 = vector.broadcast %121 : f32 to vector<1x8x16xf32>
    %285 = arith.mulf %284, %283 : vector<1x8x16xf32>
    %286 = arith.addf %281, %285 : vector<1x8x16xf32>
    %c2_224 = arith.constant 2 : index
    %c0_225 = arith.constant 0 : index
    %c5_226 = arith.constant 5 : index
    %c0_227 = arith.constant 0 : index
    %287 = vector.load %arg6[%c2_224, %c0_225, %c5_226, %c0_227] : memref<14x1x22x16xf32, #tpu.memory_space<vmem>>, vector<1x1x8x16xf32>
    %288 = vector.shape_cast %287 : vector<1x1x8x16xf32> to vector<1x8x16xf32>
    %289 = vector.broadcast %128 : f32 to vector<1x8x16xf32>
    %290 = arith.mulf %289, %288 : vector<1x8x16xf32>
    %291 = arith.addf %286, %290 : vector<1x8x16xf32>
    %c2_228 = arith.constant 2 : index
    %c0_229 = arith.constant 0 : index
    %c6_230 = arith.constant 6 : index
    %c0_231 = arith.constant 0 : index
    %292 = vector.load %arg6[%c2_228, %c0_229, %c6_230, %c0_231] : memref<14x1x22x16xf32, #tpu.memory_space<vmem>>, vector<1x1x8x16xf32>
    %293 = vector.shape_cast %292 : vector<1x1x8x16xf32> to vector<1x8x16xf32>
    %294 = vector.broadcast %135 : f32 to vector<1x8x16xf32>
    %295 = arith.mulf %294, %293 : vector<1x8x16xf32>
    %296 = arith.addf %291, %295 : vector<1x8x16xf32>
    %c3_232 = arith.constant 3 : index
    %c0_233 = arith.constant 0 : index
    %c0_234 = arith.constant 0 : index
    %c0_235 = arith.constant 0 : index
    %297 = vector.load %arg6[%c3_232, %c0_233, %c0_234, %c0_235] : memref<14x1x22x16xf32, #tpu.memory_space<vmem>>, vector<1x1x8x16xf32>
    %298 = vector.shape_cast %297 : vector<1x1x8x16xf32> to vector<1x8x16xf32>
    %299 = vector.broadcast %94 : f32 to vector<1x8x16xf32>
    %300 = arith.mulf %299, %298 : vector<1x8x16xf32>
    %301 = arith.addf %296, %300 : vector<1x8x16xf32>
    %c3_236 = arith.constant 3 : index
    %c0_237 = arith.constant 0 : index
    %c1_238 = arith.constant 1 : index
    %c0_239 = arith.constant 0 : index
    %302 = vector.load %arg6[%c3_236, %c0_237, %c1_238, %c0_239] : memref<14x1x22x16xf32, #tpu.memory_space<vmem>>, vector<1x1x8x16xf32>
    %303 = vector.shape_cast %302 : vector<1x1x8x16xf32> to vector<1x8x16xf32>
    %304 = vector.broadcast %101 : f32 to vector<1x8x16xf32>
    %305 = arith.mulf %304, %303 : vector<1x8x16xf32>
    %306 = arith.addf %301, %305 : vector<1x8x16xf32>
    %c3_240 = arith.constant 3 : index
    %c0_241 = arith.constant 0 : index
    %c2_242 = arith.constant 2 : index
    %c0_243 = arith.constant 0 : index
    %307 = vector.load %arg6[%c3_240, %c0_241, %c2_242, %c0_243] : memref<14x1x22x16xf32, #tpu.memory_space<vmem>>, vector<1x1x8x16xf32>
    %308 = vector.shape_cast %307 : vector<1x1x8x16xf32> to vector<1x8x16xf32>
    %309 = vector.broadcast %108 : f32 to vector<1x8x16xf32>
    %310 = arith.mulf %309, %308 : vector<1x8x16xf32>
    %311 = arith.addf %306, %310 : vector<1x8x16xf32>
    %c3_244 = arith.constant 3 : index
    %c0_245 = arith.constant 0 : index
    %c3_246 = arith.constant 3 : index
    %c0_247 = arith.constant 0 : index
    %312 = vector.load %arg6[%c3_244, %c0_245, %c3_246, %c0_247] : memref<14x1x22x16xf32, #tpu.memory_space<vmem>>, vector<1x1x8x16xf32>
    %313 = vector.shape_cast %312 : vector<1x1x8x16xf32> to vector<1x8x16xf32>
    %314 = vector.broadcast %115 : f32 to vector<1x8x16xf32>
    %315 = arith.mulf %314, %313 : vector<1x8x16xf32>
    %316 = arith.addf %311, %315 : vector<1x8x16xf32>
    %c3_248 = arith.constant 3 : index
    %c0_249 = arith.constant 0 : index
    %c4_250 = arith.constant 4 : index
    %c0_251 = arith.constant 0 : index
    %317 = vector.load %arg6[%c3_248, %c0_249, %c4_250, %c0_251] : memref<14x1x22x16xf32, #tpu.memory_space<vmem>>, vector<1x1x8x16xf32>
    %318 = vector.shape_cast %317 : vector<1x1x8x16xf32> to vector<1x8x16xf32>
    %319 = vector.broadcast %122 : f32 to vector<1x8x16xf32>
    %320 = arith.mulf %319, %318 : vector<1x8x16xf32>
    %321 = arith.addf %316, %320 : vector<1x8x16xf32>
    %c3_252 = arith.constant 3 : index
    %c0_253 = arith.constant 0 : index
    %c5_254 = arith.constant 5 : index
    %c0_255 = arith.constant 0 : index
    %322 = vector.load %arg6[%c3_252, %c0_253, %c5_254, %c0_255] : memref<14x1x22x16xf32, #tpu.memory_space<vmem>>, vector<1x1x8x16xf32>
    %323 = vector.shape_cast %322 : vector<1x1x8x16xf32> to vector<1x8x16xf32>
    %324 = vector.broadcast %129 : f32 to vector<1x8x16xf32>
    %325 = arith.mulf %324, %323 : vector<1x8x16xf32>
    %326 = arith.addf %321, %325 : vector<1x8x16xf32>
    %c3_256 = arith.constant 3 : index
    %c0_257 = arith.constant 0 : index
    %c6_258 = arith.constant 6 : index
    %c0_259 = arith.constant 0 : index
    %327 = vector.load %arg6[%c3_256, %c0_257, %c6_258, %c0_259] : memref<14x1x22x16xf32, #tpu.memory_space<vmem>>, vector<1x1x8x16xf32>
    %328 = vector.shape_cast %327 : vector<1x1x8x16xf32> to vector<1x8x16xf32>
    %329 = vector.broadcast %136 : f32 to vector<1x8x16xf32>
    %330 = arith.mulf %329, %328 : vector<1x8x16xf32>
    %331 = arith.addf %326, %330 : vector<1x8x16xf32>
    %c4_260 = arith.constant 4 : index
    %c0_261 = arith.constant 0 : index
    %c0_262 = arith.constant 0 : index
    %c0_263 = arith.constant 0 : index
    %332 = vector.load %arg6[%c4_260, %c0_261, %c0_262, %c0_263] : memref<14x1x22x16xf32, #tpu.memory_space<vmem>>, vector<1x1x8x16xf32>
    %333 = vector.shape_cast %332 : vector<1x1x8x16xf32> to vector<1x8x16xf32>
    %334 = vector.broadcast %95 : f32 to vector<1x8x16xf32>
    %335 = arith.mulf %334, %333 : vector<1x8x16xf32>
    %336 = arith.addf %331, %335 : vector<1x8x16xf32>
    %c4_264 = arith.constant 4 : index
    %c0_265 = arith.constant 0 : index
    %c1_266 = arith.constant 1 : index
    %c0_267 = arith.constant 0 : index
    %337 = vector.load %arg6[%c4_264, %c0_265, %c1_266, %c0_267] : memref<14x1x22x16xf32, #tpu.memory_space<vmem>>, vector<1x1x8x16xf32>
    %338 = vector.shape_cast %337 : vector<1x1x8x16xf32> to vector<1x8x16xf32>
    %339 = vector.broadcast %102 : f32 to vector<1x8x16xf32>
    %340 = arith.mulf %339, %338 : vector<1x8x16xf32>
    %341 = arith.addf %336, %340 : vector<1x8x16xf32>
    %c4_268 = arith.constant 4 : index
    %c0_269 = arith.constant 0 : index
    %c2_270 = arith.constant 2 : index
    %c0_271 = arith.constant 0 : index
    %342 = vector.load %arg6[%c4_268, %c0_269, %c2_270, %c0_271] : memref<14x1x22x16xf32, #tpu.memory_space<vmem>>, vector<1x1x8x16xf32>
    %343 = vector.shape_cast %342 : vector<1x1x8x16xf32> to vector<1x8x16xf32>
    %344 = vector.broadcast %109 : f32 to vector<1x8x16xf32>
    %345 = arith.mulf %344, %343 : vector<1x8x16xf32>
    %346 = arith.addf %341, %345 : vector<1x8x16xf32>
    %c4_272 = arith.constant 4 : index
    %c0_273 = arith.constant 0 : index
    %c3_274 = arith.constant 3 : index
    %c0_275 = arith.constant 0 : index
    %347 = vector.load %arg6[%c4_272, %c0_273, %c3_274, %c0_275] : memref<14x1x22x16xf32, #tpu.memory_space<vmem>>, vector<1x1x8x16xf32>
    %348 = vector.shape_cast %347 : vector<1x1x8x16xf32> to vector<1x8x16xf32>
    %349 = vector.broadcast %116 : f32 to vector<1x8x16xf32>
    %350 = arith.mulf %349, %348 : vector<1x8x16xf32>
    %351 = arith.addf %346, %350 : vector<1x8x16xf32>
    %c4_276 = arith.constant 4 : index
    %c0_277 = arith.constant 0 : index
    %c4_278 = arith.constant 4 : index
    %c0_279 = arith.constant 0 : index
    %352 = vector.load %arg6[%c4_276, %c0_277, %c4_278, %c0_279] : memref<14x1x22x16xf32, #tpu.memory_space<vmem>>, vector<1x1x8x16xf32>
    %353 = vector.shape_cast %352 : vector<1x1x8x16xf32> to vector<1x8x16xf32>
    %354 = vector.broadcast %123 : f32 to vector<1x8x16xf32>
    %355 = arith.mulf %354, %353 : vector<1x8x16xf32>
    %356 = arith.addf %351, %355 : vector<1x8x16xf32>
    %c4_280 = arith.constant 4 : index
    %c0_281 = arith.constant 0 : index
    %c5_282 = arith.constant 5 : index
    %c0_283 = arith.constant 0 : index
    %357 = vector.load %arg6[%c4_280, %c0_281, %c5_282, %c0_283] : memref<14x1x22x16xf32, #tpu.memory_space<vmem>>, vector<1x1x8x16xf32>
    %358 = vector.shape_cast %357 : vector<1x1x8x16xf32> to vector<1x8x16xf32>
    %359 = vector.broadcast %130 : f32 to vector<1x8x16xf32>
    %360 = arith.mulf %359, %358 : vector<1x8x16xf32>
    %361 = arith.addf %356, %360 : vector<1x8x16xf32>
    %c4_284 = arith.constant 4 : index
    %c0_285 = arith.constant 0 : index
    %c6_286 = arith.constant 6 : index
    %c0_287 = arith.constant 0 : index
    %362 = vector.load %arg6[%c4_284, %c0_285, %c6_286, %c0_287] : memref<14x1x22x16xf32, #tpu.memory_space<vmem>>, vector<1x1x8x16xf32>
    %363 = vector.shape_cast %362 : vector<1x1x8x16xf32> to vector<1x8x16xf32>
    %364 = vector.broadcast %137 : f32 to vector<1x8x16xf32>
    %365 = arith.mulf %364, %363 : vector<1x8x16xf32>
    %366 = arith.addf %361, %365 : vector<1x8x16xf32>
    %c5_288 = arith.constant 5 : index
    %c0_289 = arith.constant 0 : index
    %c0_290 = arith.constant 0 : index
    %c0_291 = arith.constant 0 : index
    %367 = vector.load %arg6[%c5_288, %c0_289, %c0_290, %c0_291] : memref<14x1x22x16xf32, #tpu.memory_space<vmem>>, vector<1x1x8x16xf32>
    %368 = vector.shape_cast %367 : vector<1x1x8x16xf32> to vector<1x8x16xf32>
    %369 = vector.broadcast %96 : f32 to vector<1x8x16xf32>
    %370 = arith.mulf %369, %368 : vector<1x8x16xf32>
    %371 = arith.addf %366, %370 : vector<1x8x16xf32>
    %c5_292 = arith.constant 5 : index
    %c0_293 = arith.constant 0 : index
    %c1_294 = arith.constant 1 : index
    %c0_295 = arith.constant 0 : index
    %372 = vector.load %arg6[%c5_292, %c0_293, %c1_294, %c0_295] : memref<14x1x22x16xf32, #tpu.memory_space<vmem>>, vector<1x1x8x16xf32>
    %373 = vector.shape_cast %372 : vector<1x1x8x16xf32> to vector<1x8x16xf32>
    %374 = vector.broadcast %103 : f32 to vector<1x8x16xf32>
    %375 = arith.mulf %374, %373 : vector<1x8x16xf32>
    %376 = arith.addf %371, %375 : vector<1x8x16xf32>
    %c5_296 = arith.constant 5 : index
    %c0_297 = arith.constant 0 : index
    %c2_298 = arith.constant 2 : index
    %c0_299 = arith.constant 0 : index
    %377 = vector.load %arg6[%c5_296, %c0_297, %c2_298, %c0_299] : memref<14x1x22x16xf32, #tpu.memory_space<vmem>>, vector<1x1x8x16xf32>
    %378 = vector.shape_cast %377 : vector<1x1x8x16xf32> to vector<1x8x16xf32>
    %379 = vector.broadcast %110 : f32 to vector<1x8x16xf32>
    %380 = arith.mulf %379, %378 : vector<1x8x16xf32>
    %381 = arith.addf %376, %380 : vector<1x8x16xf32>
    %c5_300 = arith.constant 5 : index
    %c0_301 = arith.constant 0 : index
    %c3_302 = arith.constant 3 : index
    %c0_303 = arith.constant 0 : index
    %382 = vector.load %arg6[%c5_300, %c0_301, %c3_302, %c0_303] : memref<14x1x22x16xf32, #tpu.memory_space<vmem>>, vector<1x1x8x16xf32>
    %383 = vector.shape_cast %382 : vector<1x1x8x16xf32> to vector<1x8x16xf32>
    %384 = vector.broadcast %117 : f32 to vector<1x8x16xf32>
    %385 = arith.mulf %384, %383 : vector<1x8x16xf32>
    %386 = arith.addf %381, %385 : vector<1x8x16xf32>
    %c5_304 = arith.constant 5 : index
    %c0_305 = arith.constant 0 : index
    %c4_306 = arith.constant 4 : index
    %c0_307 = arith.constant 0 : index
    %387 = vector.load %arg6[%c5_304, %c0_305, %c4_306, %c0_307] : memref<14x1x22x16xf32, #tpu.memory_space<vmem>>, vector<1x1x8x16xf32>
    %388 = vector.shape_cast %387 : vector<1x1x8x16xf32> to vector<1x8x16xf32>
    %389 = vector.broadcast %124 : f32 to vector<1x8x16xf32>
    %390 = arith.mulf %389, %388 : vector<1x8x16xf32>
    %391 = arith.addf %386, %390 : vector<1x8x16xf32>
    %c5_308 = arith.constant 5 : index
    %c0_309 = arith.constant 0 : index
    %c5_310 = arith.constant 5 : index
    %c0_311 = arith.constant 0 : index
    %392 = vector.load %arg6[%c5_308, %c0_309, %c5_310, %c0_311] : memref<14x1x22x16xf32, #tpu.memory_space<vmem>>, vector<1x1x8x16xf32>
    %393 = vector.shape_cast %392 : vector<1x1x8x16xf32> to vector<1x8x16xf32>
    %394 = vector.broadcast %131 : f32 to vector<1x8x16xf32>
    %395 = arith.mulf %394, %393 : vector<1x8x16xf32>
    %396 = arith.addf %391, %395 : vector<1x8x16xf32>
    %c5_312 = arith.constant 5 : index
    %c0_313 = arith.constant 0 : index
    %c6_314 = arith.constant 6 : index
    %c0_315 = arith.constant 0 : index
    %397 = vector.load %arg6[%c5_312, %c0_313, %c6_314, %c0_315] : memref<14x1x22x16xf32, #tpu.memory_space<vmem>>, vector<1x1x8x16xf32>
    %398 = vector.shape_cast %397 : vector<1x1x8x16xf32> to vector<1x8x16xf32>
    %399 = vector.broadcast %138 : f32 to vector<1x8x16xf32>
    %400 = arith.mulf %399, %398 : vector<1x8x16xf32>
    %401 = arith.addf %396, %400 : vector<1x8x16xf32>
    %c6_316 = arith.constant 6 : index
    %c0_317 = arith.constant 0 : index
    %c0_318 = arith.constant 0 : index
    %c0_319 = arith.constant 0 : index
    %402 = vector.load %arg6[%c6_316, %c0_317, %c0_318, %c0_319] : memref<14x1x22x16xf32, #tpu.memory_space<vmem>>, vector<1x1x8x16xf32>
    %403 = vector.shape_cast %402 : vector<1x1x8x16xf32> to vector<1x8x16xf32>
    %404 = vector.broadcast %97 : f32 to vector<1x8x16xf32>
    %405 = arith.mulf %404, %403 : vector<1x8x16xf32>
    %406 = arith.addf %401, %405 : vector<1x8x16xf32>
    %c6_320 = arith.constant 6 : index
    %c0_321 = arith.constant 0 : index
    %c1_322 = arith.constant 1 : index
    %c0_323 = arith.constant 0 : index
    %407 = vector.load %arg6[%c6_320, %c0_321, %c1_322, %c0_323] : memref<14x1x22x16xf32, #tpu.memory_space<vmem>>, vector<1x1x8x16xf32>
    %408 = vector.shape_cast %407 : vector<1x1x8x16xf32> to vector<1x8x16xf32>
    %409 = vector.broadcast %104 : f32 to vector<1x8x16xf32>
    %410 = arith.mulf %409, %408 : vector<1x8x16xf32>
    %411 = arith.addf %406, %410 : vector<1x8x16xf32>
    %c6_324 = arith.constant 6 : index
    %c0_325 = arith.constant 0 : index
    %c2_326 = arith.constant 2 : index
    %c0_327 = arith.constant 0 : index
    %412 = vector.load %arg6[%c6_324, %c0_325, %c2_326, %c0_327] : memref<14x1x22x16xf32, #tpu.memory_space<vmem>>, vector<1x1x8x16xf32>
    %413 = vector.shape_cast %412 : vector<1x1x8x16xf32> to vector<1x8x16xf32>
    %414 = vector.broadcast %111 : f32 to vector<1x8x16xf32>
    %415 = arith.mulf %414, %413 : vector<1x8x16xf32>
    %416 = arith.addf %411, %415 : vector<1x8x16xf32>
    %c6_328 = arith.constant 6 : index
    %c0_329 = arith.constant 0 : index
    %c3_330 = arith.constant 3 : index
    %c0_331 = arith.constant 0 : index
    %417 = vector.load %arg6[%c6_328, %c0_329, %c3_330, %c0_331] : memref<14x1x22x16xf32, #tpu.memory_space<vmem>>, vector<1x1x8x16xf32>
    %418 = vector.shape_cast %417 : vector<1x1x8x16xf32> to vector<1x8x16xf32>
    %419 = vector.broadcast %118 : f32 to vector<1x8x16xf32>
    %420 = arith.mulf %419, %418 : vector<1x8x16xf32>
    %421 = arith.addf %416, %420 : vector<1x8x16xf32>
    %c6_332 = arith.constant 6 : index
    %c0_333 = arith.constant 0 : index
    %c4_334 = arith.constant 4 : index
    %c0_335 = arith.constant 0 : index
    %422 = vector.load %arg6[%c6_332, %c0_333, %c4_334, %c0_335] : memref<14x1x22x16xf32, #tpu.memory_space<vmem>>, vector<1x1x8x16xf32>
    %423 = vector.shape_cast %422 : vector<1x1x8x16xf32> to vector<1x8x16xf32>
    %424 = vector.broadcast %125 : f32 to vector<1x8x16xf32>
    %425 = arith.mulf %424, %423 : vector<1x8x16xf32>
    %426 = arith.addf %421, %425 : vector<1x8x16xf32>
    %c6_336 = arith.constant 6 : index
    %c0_337 = arith.constant 0 : index
    %c5_338 = arith.constant 5 : index
    %c0_339 = arith.constant 0 : index
    %427 = vector.load %arg6[%c6_336, %c0_337, %c5_338, %c0_339] : memref<14x1x22x16xf32, #tpu.memory_space<vmem>>, vector<1x1x8x16xf32>
    %428 = vector.shape_cast %427 : vector<1x1x8x16xf32> to vector<1x8x16xf32>
    %429 = vector.broadcast %132 : f32 to vector<1x8x16xf32>
    %430 = arith.mulf %429, %428 : vector<1x8x16xf32>
    %431 = arith.addf %426, %430 : vector<1x8x16xf32>
    %c6_340 = arith.constant 6 : index
    %c0_341 = arith.constant 0 : index
    %c6_342 = arith.constant 6 : index
    %c0_343 = arith.constant 0 : index
    %432 = vector.load %arg6[%c6_340, %c0_341, %c6_342, %c0_343] : memref<14x1x22x16xf32, #tpu.memory_space<vmem>>, vector<1x1x8x16xf32>
    %433 = vector.shape_cast %432 : vector<1x1x8x16xf32> to vector<1x8x16xf32>
    %434 = vector.broadcast %139 : f32 to vector<1x8x16xf32>
    %435 = arith.mulf %434, %433 : vector<1x8x16xf32>
    %436 = arith.addf %431, %435 : vector<1x8x16xf32>
    %c7_344 = arith.constant 7 : index
    %c0_345 = arith.constant 0 : index
    %c0_346 = arith.constant 0 : index
    %c0_347 = arith.constant 0 : index
    %437 = vector.load %arg6[%c7_344, %c0_345, %c0_346, %c0_347] : memref<14x1x22x16xf32, #tpu.memory_space<vmem>>, vector<1x1x8x16xf32>
    %438 = vector.shape_cast %437 : vector<1x1x8x16xf32> to vector<1x8x16xf32>
    %439 = vector.broadcast %140 : f32 to vector<1x8x16xf32>
    %440 = arith.mulf %439, %438 : vector<1x8x16xf32>
    %441 = arith.addf %436, %440 : vector<1x8x16xf32>
    %c7_348 = arith.constant 7 : index
    %c0_349 = arith.constant 0 : index
    %c1_350 = arith.constant 1 : index
    %c0_351 = arith.constant 0 : index
    %442 = vector.load %arg6[%c7_348, %c0_349, %c1_350, %c0_351] : memref<14x1x22x16xf32, #tpu.memory_space<vmem>>, vector<1x1x8x16xf32>
    %443 = vector.shape_cast %442 : vector<1x1x8x16xf32> to vector<1x8x16xf32>
    %444 = vector.broadcast %147 : f32 to vector<1x8x16xf32>
    %445 = arith.mulf %444, %443 : vector<1x8x16xf32>
    %446 = arith.addf %441, %445 : vector<1x8x16xf32>
    %c7_352 = arith.constant 7 : index
    %c0_353 = arith.constant 0 : index
    %c2_354 = arith.constant 2 : index
    %c0_355 = arith.constant 0 : index
    %447 = vector.load %arg6[%c7_352, %c0_353, %c2_354, %c0_355] : memref<14x1x22x16xf32, #tpu.memory_space<vmem>>, vector<1x1x8x16xf32>
    %448 = vector.shape_cast %447 : vector<1x1x8x16xf32> to vector<1x8x16xf32>
    %449 = vector.broadcast %154 : f32 to vector<1x8x16xf32>
    %450 = arith.mulf %449, %448 : vector<1x8x16xf32>
    %451 = arith.addf %446, %450 : vector<1x8x16xf32>
    %c7_356 = arith.constant 7 : index
    %c0_357 = arith.constant 0 : index
    %c3_358 = arith.constant 3 : index
    %c0_359 = arith.constant 0 : index
    %452 = vector.load %arg6[%c7_356, %c0_357, %c3_358, %c0_359] : memref<14x1x22x16xf32, #tpu.memory_space<vmem>>, vector<1x1x8x16xf32>
    %453 = vector.shape_cast %452 : vector<1x1x8x16xf32> to vector<1x8x16xf32>
    %454 = vector.broadcast %161 : f32 to vector<1x8x16xf32>
    %455 = arith.mulf %454, %453 : vector<1x8x16xf32>
    %456 = arith.addf %451, %455 : vector<1x8x16xf32>
    %c7_360 = arith.constant 7 : index
    %c0_361 = arith.constant 0 : index
    %c4_362 = arith.constant 4 : index
    %c0_363 = arith.constant 0 : index
    %457 = vector.load %arg6[%c7_360, %c0_361, %c4_362, %c0_363] : memref<14x1x22x16xf32, #tpu.memory_space<vmem>>, vector<1x1x8x16xf32>
    %458 = vector.shape_cast %457 : vector<1x1x8x16xf32> to vector<1x8x16xf32>
    %459 = vector.broadcast %168 : f32 to vector<1x8x16xf32>
    %460 = arith.mulf %459, %458 : vector<1x8x16xf32>
    %461 = arith.addf %456, %460 : vector<1x8x16xf32>
    %c7_364 = arith.constant 7 : index
    %c0_365 = arith.constant 0 : index
    %c5_366 = arith.constant 5 : index
    %c0_367 = arith.constant 0 : index
    %462 = vector.load %arg6[%c7_364, %c0_365, %c5_366, %c0_367] : memref<14x1x22x16xf32, #tpu.memory_space<vmem>>, vector<1x1x8x16xf32>
    %463 = vector.shape_cast %462 : vector<1x1x8x16xf32> to vector<1x8x16xf32>
    %464 = vector.broadcast %175 : f32 to vector<1x8x16xf32>
    %465 = arith.mulf %464, %463 : vector<1x8x16xf32>
    %466 = arith.addf %461, %465 : vector<1x8x16xf32>
    %c7_368 = arith.constant 7 : index
    %c0_369 = arith.constant 0 : index
    %c6_370 = arith.constant 6 : index
    %c0_371 = arith.constant 0 : index
    %467 = vector.load %arg6[%c7_368, %c0_369, %c6_370, %c0_371] : memref<14x1x22x16xf32, #tpu.memory_space<vmem>>, vector<1x1x8x16xf32>
    %468 = vector.shape_cast %467 : vector<1x1x8x16xf32> to vector<1x8x16xf32>
    %469 = vector.broadcast %182 : f32 to vector<1x8x16xf32>
    %470 = arith.mulf %469, %468 : vector<1x8x16xf32>
    %471 = arith.addf %466, %470 : vector<1x8x16xf32>
    %c8_372 = arith.constant 8 : index
    %c0_373 = arith.constant 0 : index
    %c0_374 = arith.constant 0 : index
    %c0_375 = arith.constant 0 : index
    %472 = vector.load %arg6[%c8_372, %c0_373, %c0_374, %c0_375] : memref<14x1x22x16xf32, #tpu.memory_space<vmem>>, vector<1x1x8x16xf32>
    %473 = vector.shape_cast %472 : vector<1x1x8x16xf32> to vector<1x8x16xf32>
    %474 = vector.broadcast %141 : f32 to vector<1x8x16xf32>
    %475 = arith.mulf %474, %473 : vector<1x8x16xf32>
    %476 = arith.addf %471, %475 : vector<1x8x16xf32>
    %c8_376 = arith.constant 8 : index
    %c0_377 = arith.constant 0 : index
    %c1_378 = arith.constant 1 : index
    %c0_379 = arith.constant 0 : index
    %477 = vector.load %arg6[%c8_376, %c0_377, %c1_378, %c0_379] : memref<14x1x22x16xf32, #tpu.memory_space<vmem>>, vector<1x1x8x16xf32>
    %478 = vector.shape_cast %477 : vector<1x1x8x16xf32> to vector<1x8x16xf32>
    %479 = vector.broadcast %148 : f32 to vector<1x8x16xf32>
    %480 = arith.mulf %479, %478 : vector<1x8x16xf32>
    %481 = arith.addf %476, %480 : vector<1x8x16xf32>
    %c8_380 = arith.constant 8 : index
    %c0_381 = arith.constant 0 : index
    %c2_382 = arith.constant 2 : index
    %c0_383 = arith.constant 0 : index
    %482 = vector.load %arg6[%c8_380, %c0_381, %c2_382, %c0_383] : memref<14x1x22x16xf32, #tpu.memory_space<vmem>>, vector<1x1x8x16xf32>
    %483 = vector.shape_cast %482 : vector<1x1x8x16xf32> to vector<1x8x16xf32>
    %484 = vector.broadcast %155 : f32 to vector<1x8x16xf32>
    %485 = arith.mulf %484, %483 : vector<1x8x16xf32>
    %486 = arith.addf %481, %485 : vector<1x8x16xf32>
    %c8_384 = arith.constant 8 : index
    %c0_385 = arith.constant 0 : index
    %c3_386 = arith.constant 3 : index
    %c0_387 = arith.constant 0 : index
    %487 = vector.load %arg6[%c8_384, %c0_385, %c3_386, %c0_387] : memref<14x1x22x16xf32, #tpu.memory_space<vmem>>, vector<1x1x8x16xf32>
    %488 = vector.shape_cast %487 : vector<1x1x8x16xf32> to vector<1x8x16xf32>
    %489 = vector.broadcast %162 : f32 to vector<1x8x16xf32>
    %490 = arith.mulf %489, %488 : vector<1x8x16xf32>
    %491 = arith.addf %486, %490 : vector<1x8x16xf32>
    %c8_388 = arith.constant 8 : index
    %c0_389 = arith.constant 0 : index
    %c4_390 = arith.constant 4 : index
    %c0_391 = arith.constant 0 : index
    %492 = vector.load %arg6[%c8_388, %c0_389, %c4_390, %c0_391] : memref<14x1x22x16xf32, #tpu.memory_space<vmem>>, vector<1x1x8x16xf32>
    %493 = vector.shape_cast %492 : vector<1x1x8x16xf32> to vector<1x8x16xf32>
    %494 = vector.broadcast %169 : f32 to vector<1x8x16xf32>
    %495 = arith.mulf %494, %493 : vector<1x8x16xf32>
    %496 = arith.addf %491, %495 : vector<1x8x16xf32>
    %c8_392 = arith.constant 8 : index
    %c0_393 = arith.constant 0 : index
    %c5_394 = arith.constant 5 : index
    %c0_395 = arith.constant 0 : index
    %497 = vector.load %arg6[%c8_392, %c0_393, %c5_394, %c0_395] : memref<14x1x22x16xf32, #tpu.memory_space<vmem>>, vector<1x1x8x16xf32>
    %498 = vector.shape_cast %497 : vector<1x1x8x16xf32> to vector<1x8x16xf32>
    %499 = vector.broadcast %176 : f32 to vector<1x8x16xf32>
    %500 = arith.mulf %499, %498 : vector<1x8x16xf32>
    %501 = arith.addf %496, %500 : vector<1x8x16xf32>
    %c8_396 = arith.constant 8 : index
    %c0_397 = arith.constant 0 : index
    %c6_398 = arith.constant 6 : index
    %c0_399 = arith.constant 0 : index
    %502 = vector.load %arg6[%c8_396, %c0_397, %c6_398, %c0_399] : memref<14x1x22x16xf32, #tpu.memory_space<vmem>>, vector<1x1x8x16xf32>
    %503 = vector.shape_cast %502 : vector<1x1x8x16xf32> to vector<1x8x16xf32>
    %504 = vector.broadcast %183 : f32 to vector<1x8x16xf32>
    %505 = arith.mulf %504, %503 : vector<1x8x16xf32>
    %506 = arith.addf %501, %505 : vector<1x8x16xf32>
    %c9_400 = arith.constant 9 : index
    %c0_401 = arith.constant 0 : index
    %c0_402 = arith.constant 0 : index
    %c0_403 = arith.constant 0 : index
    %507 = vector.load %arg6[%c9_400, %c0_401, %c0_402, %c0_403] : memref<14x1x22x16xf32, #tpu.memory_space<vmem>>, vector<1x1x8x16xf32>
    %508 = vector.shape_cast %507 : vector<1x1x8x16xf32> to vector<1x8x16xf32>
    %509 = vector.broadcast %142 : f32 to vector<1x8x16xf32>
    %510 = arith.mulf %509, %508 : vector<1x8x16xf32>
    %511 = arith.addf %506, %510 : vector<1x8x16xf32>
    %c9_404 = arith.constant 9 : index
    %c0_405 = arith.constant 0 : index
    %c1_406 = arith.constant 1 : index
    %c0_407 = arith.constant 0 : index
    %512 = vector.load %arg6[%c9_404, %c0_405, %c1_406, %c0_407] : memref<14x1x22x16xf32, #tpu.memory_space<vmem>>, vector<1x1x8x16xf32>
    %513 = vector.shape_cast %512 : vector<1x1x8x16xf32> to vector<1x8x16xf32>
    %514 = vector.broadcast %149 : f32 to vector<1x8x16xf32>
    %515 = arith.mulf %514, %513 : vector<1x8x16xf32>
    %516 = arith.addf %511, %515 : vector<1x8x16xf32>
    %c9_408 = arith.constant 9 : index
    %c0_409 = arith.constant 0 : index
    %c2_410 = arith.constant 2 : index
    %c0_411 = arith.constant 0 : index
    %517 = vector.load %arg6[%c9_408, %c0_409, %c2_410, %c0_411] : memref<14x1x22x16xf32, #tpu.memory_space<vmem>>, vector<1x1x8x16xf32>
    %518 = vector.shape_cast %517 : vector<1x1x8x16xf32> to vector<1x8x16xf32>
    %519 = vector.broadcast %156 : f32 to vector<1x8x16xf32>
    %520 = arith.mulf %519, %518 : vector<1x8x16xf32>
    %521 = arith.addf %516, %520 : vector<1x8x16xf32>
    %c9_412 = arith.constant 9 : index
    %c0_413 = arith.constant 0 : index
    %c3_414 = arith.constant 3 : index
    %c0_415 = arith.constant 0 : index
    %522 = vector.load %arg6[%c9_412, %c0_413, %c3_414, %c0_415] : memref<14x1x22x16xf32, #tpu.memory_space<vmem>>, vector<1x1x8x16xf32>
    %523 = vector.shape_cast %522 : vector<1x1x8x16xf32> to vector<1x8x16xf32>
    %524 = vector.broadcast %163 : f32 to vector<1x8x16xf32>
    %525 = arith.mulf %524, %523 : vector<1x8x16xf32>
    %526 = arith.addf %521, %525 : vector<1x8x16xf32>
    %c9_416 = arith.constant 9 : index
    %c0_417 = arith.constant 0 : index
    %c4_418 = arith.constant 4 : index
    %c0_419 = arith.constant 0 : index
    %527 = vector.load %arg6[%c9_416, %c0_417, %c4_418, %c0_419] : memref<14x1x22x16xf32, #tpu.memory_space<vmem>>, vector<1x1x8x16xf32>
    %528 = vector.shape_cast %527 : vector<1x1x8x16xf32> to vector<1x8x16xf32>
    %529 = vector.broadcast %170 : f32 to vector<1x8x16xf32>
    %530 = arith.mulf %529, %528 : vector<1x8x16xf32>
    %531 = arith.addf %526, %530 : vector<1x8x16xf32>
    %c9_420 = arith.constant 9 : index
    %c0_421 = arith.constant 0 : index
    %c5_422 = arith.constant 5 : index
    %c0_423 = arith.constant 0 : index
    %532 = vector.load %arg6[%c9_420, %c0_421, %c5_422, %c0_423] : memref<14x1x22x16xf32, #tpu.memory_space<vmem>>, vector<1x1x8x16xf32>
    %533 = vector.shape_cast %532 : vector<1x1x8x16xf32> to vector<1x8x16xf32>
    %534 = vector.broadcast %177 : f32 to vector<1x8x16xf32>
    %535 = arith.mulf %534, %533 : vector<1x8x16xf32>
    %536 = arith.addf %531, %535 : vector<1x8x16xf32>
    %c9_424 = arith.constant 9 : index
    %c0_425 = arith.constant 0 : index
    %c6_426 = arith.constant 6 : index
    %c0_427 = arith.constant 0 : index
    %537 = vector.load %arg6[%c9_424, %c0_425, %c6_426, %c0_427] : memref<14x1x22x16xf32, #tpu.memory_space<vmem>>, vector<1x1x8x16xf32>
    %538 = vector.shape_cast %537 : vector<1x1x8x16xf32> to vector<1x8x16xf32>
    %539 = vector.broadcast %184 : f32 to vector<1x8x16xf32>
    %540 = arith.mulf %539, %538 : vector<1x8x16xf32>
    %541 = arith.addf %536, %540 : vector<1x8x16xf32>
    %c10_428 = arith.constant 10 : index
    %c0_429 = arith.constant 0 : index
    %c0_430 = arith.constant 0 : index
    %c0_431 = arith.constant 0 : index
    %542 = vector.load %arg6[%c10_428, %c0_429, %c0_430, %c0_431] : memref<14x1x22x16xf32, #tpu.memory_space<vmem>>, vector<1x1x8x16xf32>
    %543 = vector.shape_cast %542 : vector<1x1x8x16xf32> to vector<1x8x16xf32>
    %544 = vector.broadcast %143 : f32 to vector<1x8x16xf32>
    %545 = arith.mulf %544, %543 : vector<1x8x16xf32>
    %546 = arith.addf %541, %545 : vector<1x8x16xf32>
    %c10_432 = arith.constant 10 : index
    %c0_433 = arith.constant 0 : index
    %c1_434 = arith.constant 1 : index
    %c0_435 = arith.constant 0 : index
    %547 = vector.load %arg6[%c10_432, %c0_433, %c1_434, %c0_435] : memref<14x1x22x16xf32, #tpu.memory_space<vmem>>, vector<1x1x8x16xf32>
    %548 = vector.shape_cast %547 : vector<1x1x8x16xf32> to vector<1x8x16xf32>
    %549 = vector.broadcast %150 : f32 to vector<1x8x16xf32>
    %550 = arith.mulf %549, %548 : vector<1x8x16xf32>
    %551 = arith.addf %546, %550 : vector<1x8x16xf32>
    %c10_436 = arith.constant 10 : index
    %c0_437 = arith.constant 0 : index
    %c2_438 = arith.constant 2 : index
    %c0_439 = arith.constant 0 : index
    %552 = vector.load %arg6[%c10_436, %c0_437, %c2_438, %c0_439] : memref<14x1x22x16xf32, #tpu.memory_space<vmem>>, vector<1x1x8x16xf32>
    %553 = vector.shape_cast %552 : vector<1x1x8x16xf32> to vector<1x8x16xf32>
    %554 = vector.broadcast %157 : f32 to vector<1x8x16xf32>
    %555 = arith.mulf %554, %553 : vector<1x8x16xf32>
    %556 = arith.addf %551, %555 : vector<1x8x16xf32>
    %c10_440 = arith.constant 10 : index
    %c0_441 = arith.constant 0 : index
    %c3_442 = arith.constant 3 : index
    %c0_443 = arith.constant 0 : index
    %557 = vector.load %arg6[%c10_440, %c0_441, %c3_442, %c0_443] : memref<14x1x22x16xf32, #tpu.memory_space<vmem>>, vector<1x1x8x16xf32>
    %558 = vector.shape_cast %557 : vector<1x1x8x16xf32> to vector<1x8x16xf32>
    %559 = vector.broadcast %164 : f32 to vector<1x8x16xf32>
    %560 = arith.mulf %559, %558 : vector<1x8x16xf32>
    %561 = arith.addf %556, %560 : vector<1x8x16xf32>
    %c10_444 = arith.constant 10 : index
    %c0_445 = arith.constant 0 : index
    %c4_446 = arith.constant 4 : index
    %c0_447 = arith.constant 0 : index
    %562 = vector.load %arg6[%c10_444, %c0_445, %c4_446, %c0_447] : memref<14x1x22x16xf32, #tpu.memory_space<vmem>>, vector<1x1x8x16xf32>
    %563 = vector.shape_cast %562 : vector<1x1x8x16xf32> to vector<1x8x16xf32>
    %564 = vector.broadcast %171 : f32 to vector<1x8x16xf32>
    %565 = arith.mulf %564, %563 : vector<1x8x16xf32>
    %566 = arith.addf %561, %565 : vector<1x8x16xf32>
    %c10_448 = arith.constant 10 : index
    %c0_449 = arith.constant 0 : index
    %c5_450 = arith.constant 5 : index
    %c0_451 = arith.constant 0 : index
    %567 = vector.load %arg6[%c10_448, %c0_449, %c5_450, %c0_451] : memref<14x1x22x16xf32, #tpu.memory_space<vmem>>, vector<1x1x8x16xf32>
    %568 = vector.shape_cast %567 : vector<1x1x8x16xf32> to vector<1x8x16xf32>
    %569 = vector.broadcast %178 : f32 to vector<1x8x16xf32>
    %570 = arith.mulf %569, %568 : vector<1x8x16xf32>
    %571 = arith.addf %566, %570 : vector<1x8x16xf32>
    %c10_452 = arith.constant 10 : index
    %c0_453 = arith.constant 0 : index
    %c6_454 = arith.constant 6 : index
    %c0_455 = arith.constant 0 : index
    %572 = vector.load %arg6[%c10_452, %c0_453, %c6_454, %c0_455] : memref<14x1x22x16xf32, #tpu.memory_space<vmem>>, vector<1x1x8x16xf32>
    %573 = vector.shape_cast %572 : vector<1x1x8x16xf32> to vector<1x8x16xf32>
    %574 = vector.broadcast %185 : f32 to vector<1x8x16xf32>
    %575 = arith.mulf %574, %573 : vector<1x8x16xf32>
    %576 = arith.addf %571, %575 : vector<1x8x16xf32>
    %c11_456 = arith.constant 11 : index
    %c0_457 = arith.constant 0 : index
    %c0_458 = arith.constant 0 : index
    %c0_459 = arith.constant 0 : index
    %577 = vector.load %arg6[%c11_456, %c0_457, %c0_458, %c0_459] : memref<14x1x22x16xf32, #tpu.memory_space<vmem>>, vector<1x1x8x16xf32>
    %578 = vector.shape_cast %577 : vector<1x1x8x16xf32> to vector<1x8x16xf32>
    %579 = vector.broadcast %144 : f32 to vector<1x8x16xf32>
    %580 = arith.mulf %579, %578 : vector<1x8x16xf32>
    %581 = arith.addf %576, %580 : vector<1x8x16xf32>
    %c11_460 = arith.constant 11 : index
    %c0_461 = arith.constant 0 : index
    %c1_462 = arith.constant 1 : index
    %c0_463 = arith.constant 0 : index
    %582 = vector.load %arg6[%c11_460, %c0_461, %c1_462, %c0_463] : memref<14x1x22x16xf32, #tpu.memory_space<vmem>>, vector<1x1x8x16xf32>
    %583 = vector.shape_cast %582 : vector<1x1x8x16xf32> to vector<1x8x16xf32>
    %584 = vector.broadcast %151 : f32 to vector<1x8x16xf32>
    %585 = arith.mulf %584, %583 : vector<1x8x16xf32>
    %586 = arith.addf %581, %585 : vector<1x8x16xf32>
    %c11_464 = arith.constant 11 : index
    %c0_465 = arith.constant 0 : index
    %c2_466 = arith.constant 2 : index
    %c0_467 = arith.constant 0 : index
    %587 = vector.load %arg6[%c11_464, %c0_465, %c2_466, %c0_467] : memref<14x1x22x16xf32, #tpu.memory_space<vmem>>, vector<1x1x8x16xf32>
    %588 = vector.shape_cast %587 : vector<1x1x8x16xf32> to vector<1x8x16xf32>
    %589 = vector.broadcast %158 : f32 to vector<1x8x16xf32>
    %590 = arith.mulf %589, %588 : vector<1x8x16xf32>
    %591 = arith.addf %586, %590 : vector<1x8x16xf32>
    %c11_468 = arith.constant 11 : index
    %c0_469 = arith.constant 0 : index
    %c3_470 = arith.constant 3 : index
    %c0_471 = arith.constant 0 : index
    %592 = vector.load %arg6[%c11_468, %c0_469, %c3_470, %c0_471] : memref<14x1x22x16xf32, #tpu.memory_space<vmem>>, vector<1x1x8x16xf32>
    %593 = vector.shape_cast %592 : vector<1x1x8x16xf32> to vector<1x8x16xf32>
    %594 = vector.broadcast %165 : f32 to vector<1x8x16xf32>
    %595 = arith.mulf %594, %593 : vector<1x8x16xf32>
    %596 = arith.addf %591, %595 : vector<1x8x16xf32>
    %c11_472 = arith.constant 11 : index
    %c0_473 = arith.constant 0 : index
    %c4_474 = arith.constant 4 : index
    %c0_475 = arith.constant 0 : index
    %597 = vector.load %arg6[%c11_472, %c0_473, %c4_474, %c0_475] : memref<14x1x22x16xf32, #tpu.memory_space<vmem>>, vector<1x1x8x16xf32>
    %598 = vector.shape_cast %597 : vector<1x1x8x16xf32> to vector<1x8x16xf32>
    %599 = vector.broadcast %172 : f32 to vector<1x8x16xf32>
    %600 = arith.mulf %599, %598 : vector<1x8x16xf32>
    %601 = arith.addf %596, %600 : vector<1x8x16xf32>
    %c11_476 = arith.constant 11 : index
    %c0_477 = arith.constant 0 : index
    %c5_478 = arith.constant 5 : index
    %c0_479 = arith.constant 0 : index
    %602 = vector.load %arg6[%c11_476, %c0_477, %c5_478, %c0_479] : memref<14x1x22x16xf32, #tpu.memory_space<vmem>>, vector<1x1x8x16xf32>
    %603 = vector.shape_cast %602 : vector<1x1x8x16xf32> to vector<1x8x16xf32>
    %604 = vector.broadcast %179 : f32 to vector<1x8x16xf32>
    %605 = arith.mulf %604, %603 : vector<1x8x16xf32>
    %606 = arith.addf %601, %605 : vector<1x8x16xf32>
    %c11_480 = arith.constant 11 : index
    %c0_481 = arith.constant 0 : index
    %c6_482 = arith.constant 6 : index
    %c0_483 = arith.constant 0 : index
    %607 = vector.load %arg6[%c11_480, %c0_481, %c6_482, %c0_483] : memref<14x1x22x16xf32, #tpu.memory_space<vmem>>, vector<1x1x8x16xf32>
    %608 = vector.shape_cast %607 : vector<1x1x8x16xf32> to vector<1x8x16xf32>
    %609 = vector.broadcast %186 : f32 to vector<1x8x16xf32>
    %610 = arith.mulf %609, %608 : vector<1x8x16xf32>
    %611 = arith.addf %606, %610 : vector<1x8x16xf32>
    %c12_484 = arith.constant 12 : index
    %c0_485 = arith.constant 0 : index
    %c0_486 = arith.constant 0 : index
    %c0_487 = arith.constant 0 : index
    %612 = vector.load %arg6[%c12_484, %c0_485, %c0_486, %c0_487] : memref<14x1x22x16xf32, #tpu.memory_space<vmem>>, vector<1x1x8x16xf32>
    %613 = vector.shape_cast %612 : vector<1x1x8x16xf32> to vector<1x8x16xf32>
    %614 = vector.broadcast %145 : f32 to vector<1x8x16xf32>
    %615 = arith.mulf %614, %613 : vector<1x8x16xf32>
    %616 = arith.addf %611, %615 : vector<1x8x16xf32>
    %c12_488 = arith.constant 12 : index
    %c0_489 = arith.constant 0 : index
    %c1_490 = arith.constant 1 : index
    %c0_491 = arith.constant 0 : index
    %617 = vector.load %arg6[%c12_488, %c0_489, %c1_490, %c0_491] : memref<14x1x22x16xf32, #tpu.memory_space<vmem>>, vector<1x1x8x16xf32>
    %618 = vector.shape_cast %617 : vector<1x1x8x16xf32> to vector<1x8x16xf32>
    %619 = vector.broadcast %152 : f32 to vector<1x8x16xf32>
    %620 = arith.mulf %619, %618 : vector<1x8x16xf32>
    %621 = arith.addf %616, %620 : vector<1x8x16xf32>
    %c12_492 = arith.constant 12 : index
    %c0_493 = arith.constant 0 : index
    %c2_494 = arith.constant 2 : index
    %c0_495 = arith.constant 0 : index
    %622 = vector.load %arg6[%c12_492, %c0_493, %c2_494, %c0_495] : memref<14x1x22x16xf32, #tpu.memory_space<vmem>>, vector<1x1x8x16xf32>
    %623 = vector.shape_cast %622 : vector<1x1x8x16xf32> to vector<1x8x16xf32>
    %624 = vector.broadcast %159 : f32 to vector<1x8x16xf32>
    %625 = arith.mulf %624, %623 : vector<1x8x16xf32>
    %626 = arith.addf %621, %625 : vector<1x8x16xf32>
    %c12_496 = arith.constant 12 : index
    %c0_497 = arith.constant 0 : index
    %c3_498 = arith.constant 3 : index
    %c0_499 = arith.constant 0 : index
    %627 = vector.load %arg6[%c12_496, %c0_497, %c3_498, %c0_499] : memref<14x1x22x16xf32, #tpu.memory_space<vmem>>, vector<1x1x8x16xf32>
    %628 = vector.shape_cast %627 : vector<1x1x8x16xf32> to vector<1x8x16xf32>
    %629 = vector.broadcast %166 : f32 to vector<1x8x16xf32>
    %630 = arith.mulf %629, %628 : vector<1x8x16xf32>
    %631 = arith.addf %626, %630 : vector<1x8x16xf32>
    %c12_500 = arith.constant 12 : index
    %c0_501 = arith.constant 0 : index
    %c4_502 = arith.constant 4 : index
    %c0_503 = arith.constant 0 : index
    %632 = vector.load %arg6[%c12_500, %c0_501, %c4_502, %c0_503] : memref<14x1x22x16xf32, #tpu.memory_space<vmem>>, vector<1x1x8x16xf32>
    %633 = vector.shape_cast %632 : vector<1x1x8x16xf32> to vector<1x8x16xf32>
    %634 = vector.broadcast %173 : f32 to vector<1x8x16xf32>
    %635 = arith.mulf %634, %633 : vector<1x8x16xf32>
    %636 = arith.addf %631, %635 : vector<1x8x16xf32>
    %c12_504 = arith.constant 12 : index
    %c0_505 = arith.constant 0 : index
    %c5_506 = arith.constant 5 : index
    %c0_507 = arith.constant 0 : index
    %637 = vector.load %arg6[%c12_504, %c0_505, %c5_506, %c0_507] : memref<14x1x22x16xf32, #tpu.memory_space<vmem>>, vector<1x1x8x16xf32>
    %638 = vector.shape_cast %637 : vector<1x1x8x16xf32> to vector<1x8x16xf32>
    %639 = vector.broadcast %180 : f32 to vector<1x8x16xf32>
    %640 = arith.mulf %639, %638 : vector<1x8x16xf32>
    %641 = arith.addf %636, %640 : vector<1x8x16xf32>
    %c12_508 = arith.constant 12 : index
    %c0_509 = arith.constant 0 : index
    %c6_510 = arith.constant 6 : index
    %c0_511 = arith.constant 0 : index
    %642 = vector.load %arg6[%c12_508, %c0_509, %c6_510, %c0_511] : memref<14x1x22x16xf32, #tpu.memory_space<vmem>>, vector<1x1x8x16xf32>
    %643 = vector.shape_cast %642 : vector<1x1x8x16xf32> to vector<1x8x16xf32>
    %644 = vector.broadcast %187 : f32 to vector<1x8x16xf32>
    %645 = arith.mulf %644, %643 : vector<1x8x16xf32>
    %646 = arith.addf %641, %645 : vector<1x8x16xf32>
    %c13_512 = arith.constant 13 : index
    %c0_513 = arith.constant 0 : index
    %c0_514 = arith.constant 0 : index
    %c0_515 = arith.constant 0 : index
    %647 = vector.load %arg6[%c13_512, %c0_513, %c0_514, %c0_515] : memref<14x1x22x16xf32, #tpu.memory_space<vmem>>, vector<1x1x8x16xf32>
    %648 = vector.shape_cast %647 : vector<1x1x8x16xf32> to vector<1x8x16xf32>
    %649 = vector.broadcast %146 : f32 to vector<1x8x16xf32>
    %650 = arith.mulf %649, %648 : vector<1x8x16xf32>
    %651 = arith.addf %646, %650 : vector<1x8x16xf32>
    %c13_516 = arith.constant 13 : index
    %c0_517 = arith.constant 0 : index
    %c1_518 = arith.constant 1 : index
    %c0_519 = arith.constant 0 : index
    %652 = vector.load %arg6[%c13_516, %c0_517, %c1_518, %c0_519] : memref<14x1x22x16xf32, #tpu.memory_space<vmem>>, vector<1x1x8x16xf32>
    %653 = vector.shape_cast %652 : vector<1x1x8x16xf32> to vector<1x8x16xf32>
    %654 = vector.broadcast %153 : f32 to vector<1x8x16xf32>
    %655 = arith.mulf %654, %653 : vector<1x8x16xf32>
    %656 = arith.addf %651, %655 : vector<1x8x16xf32>
    %c13_520 = arith.constant 13 : index
    %c0_521 = arith.constant 0 : index
    %c2_522 = arith.constant 2 : index
    %c0_523 = arith.constant 0 : index
    %657 = vector.load %arg6[%c13_520, %c0_521, %c2_522, %c0_523] : memref<14x1x22x16xf32, #tpu.memory_space<vmem>>, vector<1x1x8x16xf32>
    %658 = vector.shape_cast %657 : vector<1x1x8x16xf32> to vector<1x8x16xf32>
    %659 = vector.broadcast %160 : f32 to vector<1x8x16xf32>
    %660 = arith.mulf %659, %658 : vector<1x8x16xf32>
    %661 = arith.addf %656, %660 : vector<1x8x16xf32>
    %c13_524 = arith.constant 13 : index
    %c0_525 = arith.constant 0 : index
    %c3_526 = arith.constant 3 : index
    %c0_527 = arith.constant 0 : index
    %662 = vector.load %arg6[%c13_524, %c0_525, %c3_526, %c0_527] : memref<14x1x22x16xf32, #tpu.memory_space<vmem>>, vector<1x1x8x16xf32>
    %663 = vector.shape_cast %662 : vector<1x1x8x16xf32> to vector<1x8x16xf32>
    %664 = vector.broadcast %167 : f32 to vector<1x8x16xf32>
    %665 = arith.mulf %664, %663 : vector<1x8x16xf32>
    %666 = arith.addf %661, %665 : vector<1x8x16xf32>
    %c13_528 = arith.constant 13 : index
    %c0_529 = arith.constant 0 : index
    %c4_530 = arith.constant 4 : index
    %c0_531 = arith.constant 0 : index
    %667 = vector.load %arg6[%c13_528, %c0_529, %c4_530, %c0_531] : memref<14x1x22x16xf32, #tpu.memory_space<vmem>>, vector<1x1x8x16xf32>
    %668 = vector.shape_cast %667 : vector<1x1x8x16xf32> to vector<1x8x16xf32>
    %669 = vector.broadcast %174 : f32 to vector<1x8x16xf32>
    %670 = arith.mulf %669, %668 : vector<1x8x16xf32>
    %671 = arith.addf %666, %670 : vector<1x8x16xf32>
    %c13_532 = arith.constant 13 : index
    %c0_533 = arith.constant 0 : index
    %c5_534 = arith.constant 5 : index
    %c0_535 = arith.constant 0 : index
    %672 = vector.load %arg6[%c13_532, %c0_533, %c5_534, %c0_535] : memref<14x1x22x16xf32, #tpu.memory_space<vmem>>, vector<1x1x8x16xf32>
    %673 = vector.shape_cast %672 : vector<1x1x8x16xf32> to vector<1x8x16xf32>
    %674 = vector.broadcast %181 : f32 to vector<1x8x16xf32>
    %675 = arith.mulf %674, %673 : vector<1x8x16xf32>
    %676 = arith.addf %671, %675 : vector<1x8x16xf32>
    %c13_536 = arith.constant 13 : index
    %c0_537 = arith.constant 0 : index
    %c6_538 = arith.constant 6 : index
    %c0_539 = arith.constant 0 : index
    %677 = vector.load %arg6[%c13_536, %c0_537, %c6_538, %c0_539] : memref<14x1x22x16xf32, #tpu.memory_space<vmem>>, vector<1x1x8x16xf32>
    %678 = vector.shape_cast %677 : vector<1x1x8x16xf32> to vector<1x8x16xf32>
    %679 = vector.broadcast %188 : f32 to vector<1x8x16xf32>
    %680 = arith.mulf %679, %678 : vector<1x8x16xf32>
    %681 = arith.addf %676, %680 : vector<1x8x16xf32>
    %682 = vector.broadcast %189 : f32 to vector<1x8x16xf32>
    %683 = arith.mulf %681, %682 : vector<1x8x16xf32>
    %684 = vector.broadcast %190 : f32 to vector<1x8x16xf32>
    %685 = arith.addf %683, %684 : vector<1x8x16xf32>
    %686 = arith.negf %685 : vector<1x8x16xf32>
    %687 = math.exp %686 : vector<1x8x16xf32>
    %cst_540 = arith.constant 1.000000e+00 : f32
    %688 = vector.broadcast %cst_540 : f32 to vector<1x8x16xf32>
    %689 = arith.addf %688, %687 : vector<1x8x16xf32>
    %690 = arith.divf %688, %689 : vector<1x8x16xf32>
    %c0_541 = arith.constant 0 : index
    %c0_542 = arith.constant 0 : index
    %c0_543 = arith.constant 0 : index
    %691 = vector.load %arg7[%c0_541, %c0_542, %c0_543] : memref<1x16x16xf32, #tpu.memory_space<vmem>>, vector<1x8x16xf32>
    tpu.vector_store %arg7[%c0_541, %c0_542, %c0_543], %690 {strides = array<i32>} : memref<1x16x16xf32, #tpu.memory_space<vmem>>, vector<1x8x16xf32>,
    %cst_544 = arith.constant 0.000000e+00 : f32
    %692 = vector.broadcast %cst_544 : f32 to vector<1x8x16xf32>
    %c0_545 = arith.constant 0 : index
    %c0_546 = arith.constant 0 : index
    %c8_547 = arith.constant 8 : index
    %c0_548 = arith.constant 0 : index
    %693 = vector.load %arg6[%c0_545, %c0_546, %c8_547, %c0_548] : memref<14x1x22x16xf32, #tpu.memory_space<vmem>>, vector<1x1x8x16xf32>
    %694 = vector.shape_cast %693 : vector<1x1x8x16xf32> to vector<1x8x16xf32>
    %695 = vector.broadcast %91 : f32 to vector<1x8x16xf32>
    %696 = arith.mulf %695, %694 : vector<1x8x16xf32>
    %697 = arith.addf %692, %696 : vector<1x8x16xf32>
    %c0_549 = arith.constant 0 : index
    %c0_550 = arith.constant 0 : index
    %c9_551 = arith.constant 9 : index
    %c0_552 = arith.constant 0 : index
    %698 = vector.load %arg6[%c0_549, %c0_550, %c9_551, %c0_552] : memref<14x1x22x16xf32, #tpu.memory_space<vmem>>, vector<1x1x8x16xf32>
    %699 = vector.shape_cast %698 : vector<1x1x8x16xf32> to vector<1x8x16xf32>
    %700 = vector.broadcast %98 : f32 to vector<1x8x16xf32>
    %701 = arith.mulf %700, %699 : vector<1x8x16xf32>
    %702 = arith.addf %697, %701 : vector<1x8x16xf32>
    %c0_553 = arith.constant 0 : index
    %c0_554 = arith.constant 0 : index
    %c10_555 = arith.constant 10 : index
    %c0_556 = arith.constant 0 : index
    %703 = vector.load %arg6[%c0_553, %c0_554, %c10_555, %c0_556] : memref<14x1x22x16xf32, #tpu.memory_space<vmem>>, vector<1x1x8x16xf32>
    %704 = vector.shape_cast %703 : vector<1x1x8x16xf32> to vector<1x8x16xf32>
    %705 = vector.broadcast %105 : f32 to vector<1x8x16xf32>
    %706 = arith.mulf %705, %704 : vector<1x8x16xf32>
    %707 = arith.addf %702, %706 : vector<1x8x16xf32>
    %c0_557 = arith.constant 0 : index
    %c0_558 = arith.constant 0 : index
    %c11_559 = arith.constant 11 : index
    %c0_560 = arith.constant 0 : index
    %708 = vector.load %arg6[%c0_557, %c0_558, %c11_559, %c0_560] : memref<14x1x22x16xf32, #tpu.memory_space<vmem>>, vector<1x1x8x16xf32>
    %709 = vector.shape_cast %708 : vector<1x1x8x16xf32> to vector<1x8x16xf32>
    %710 = vector.broadcast %112 : f32 to vector<1x8x16xf32>
    %711 = arith.mulf %710, %709 : vector<1x8x16xf32>
    %712 = arith.addf %707, %711 : vector<1x8x16xf32>
    %c0_561 = arith.constant 0 : index
    %c0_562 = arith.constant 0 : index
    %c12_563 = arith.constant 12 : index
    %c0_564 = arith.constant 0 : index
    %713 = vector.load %arg6[%c0_561, %c0_562, %c12_563, %c0_564] : memref<14x1x22x16xf32, #tpu.memory_space<vmem>>, vector<1x1x8x16xf32>
    %714 = vector.shape_cast %713 : vector<1x1x8x16xf32> to vector<1x8x16xf32>
    %715 = vector.broadcast %119 : f32 to vector<1x8x16xf32>
    %716 = arith.mulf %715, %714 : vector<1x8x16xf32>
    %717 = arith.addf %712, %716 : vector<1x8x16xf32>
    %c0_565 = arith.constant 0 : index
    %c0_566 = arith.constant 0 : index
    %c13_567 = arith.constant 13 : index
    %c0_568 = arith.constant 0 : index
    %718 = vector.load %arg6[%c0_565, %c0_566, %c13_567, %c0_568] : memref<14x1x22x16xf32, #tpu.memory_space<vmem>>, vector<1x1x8x16xf32>
    %719 = vector.shape_cast %718 : vector<1x1x8x16xf32> to vector<1x8x16xf32>
    %720 = vector.broadcast %126 : f32 to vector<1x8x16xf32>
    %721 = arith.mulf %720, %719 : vector<1x8x16xf32>
    %722 = arith.addf %717, %721 : vector<1x8x16xf32>
    %c0_569 = arith.constant 0 : index
    %c0_570 = arith.constant 0 : index
    %c14_571 = arith.constant 14 : index
    %c0_572 = arith.constant 0 : index
    %723 = vector.load %arg6[%c0_569, %c0_570, %c14_571, %c0_572] : memref<14x1x22x16xf32, #tpu.memory_space<vmem>>, vector<1x1x8x16xf32>
    %724 = vector.shape_cast %723 : vector<1x1x8x16xf32> to vector<1x8x16xf32>
    %725 = vector.broadcast %133 : f32 to vector<1x8x16xf32>
    %726 = arith.mulf %725, %724 : vector<1x8x16xf32>
    %727 = arith.addf %722, %726 : vector<1x8x16xf32>
    %c1_573 = arith.constant 1 : index
    %c0_574 = arith.constant 0 : index
    %c8_575 = arith.constant 8 : index
    %c0_576 = arith.constant 0 : index
    %728 = vector.load %arg6[%c1_573, %c0_574, %c8_575, %c0_576] : memref<14x1x22x16xf32, #tpu.memory_space<vmem>>, vector<1x1x8x16xf32>
    %729 = vector.shape_cast %728 : vector<1x1x8x16xf32> to vector<1x8x16xf32>
    %730 = vector.broadcast %92 : f32 to vector<1x8x16xf32>
    %731 = arith.mulf %730, %729 : vector<1x8x16xf32>
    %732 = arith.addf %727, %731 : vector<1x8x16xf32>
    %c1_577 = arith.constant 1 : index
    %c0_578 = arith.constant 0 : index
    %c9_579 = arith.constant 9 : index
    %c0_580 = arith.constant 0 : index
    %733 = vector.load %arg6[%c1_577, %c0_578, %c9_579, %c0_580] : memref<14x1x22x16xf32, #tpu.memory_space<vmem>>, vector<1x1x8x16xf32>
    %734 = vector.shape_cast %733 : vector<1x1x8x16xf32> to vector<1x8x16xf32>
    %735 = vector.broadcast %99 : f32 to vector<1x8x16xf32>
    %736 = arith.mulf %735, %734 : vector<1x8x16xf32>
    %737 = arith.addf %732, %736 : vector<1x8x16xf32>
    %c1_581 = arith.constant 1 : index
    %c0_582 = arith.constant 0 : index
    %c10_583 = arith.constant 10 : index
    %c0_584 = arith.constant 0 : index
    %738 = vector.load %arg6[%c1_581, %c0_582, %c10_583, %c0_584] : memref<14x1x22x16xf32, #tpu.memory_space<vmem>>, vector<1x1x8x16xf32>
    %739 = vector.shape_cast %738 : vector<1x1x8x16xf32> to vector<1x8x16xf32>
    %740 = vector.broadcast %106 : f32 to vector<1x8x16xf32>
    %741 = arith.mulf %740, %739 : vector<1x8x16xf32>
    %742 = arith.addf %737, %741 : vector<1x8x16xf32>
    %c1_585 = arith.constant 1 : index
    %c0_586 = arith.constant 0 : index
    %c11_587 = arith.constant 11 : index
    %c0_588 = arith.constant 0 : index
    %743 = vector.load %arg6[%c1_585, %c0_586, %c11_587, %c0_588] : memref<14x1x22x16xf32, #tpu.memory_space<vmem>>, vector<1x1x8x16xf32>
    %744 = vector.shape_cast %743 : vector<1x1x8x16xf32> to vector<1x8x16xf32>
    %745 = vector.broadcast %113 : f32 to vector<1x8x16xf32>
    %746 = arith.mulf %745, %744 : vector<1x8x16xf32>
    %747 = arith.addf %742, %746 : vector<1x8x16xf32>
    %c1_589 = arith.constant 1 : index
    %c0_590 = arith.constant 0 : index
    %c12_591 = arith.constant 12 : index
    %c0_592 = arith.constant 0 : index
    %748 = vector.load %arg6[%c1_589, %c0_590, %c12_591, %c0_592] : memref<14x1x22x16xf32, #tpu.memory_space<vmem>>, vector<1x1x8x16xf32>
    %749 = vector.shape_cast %748 : vector<1x1x8x16xf32> to vector<1x8x16xf32>
    %750 = vector.broadcast %120 : f32 to vector<1x8x16xf32>
    %751 = arith.mulf %750, %749 : vector<1x8x16xf32>
    %752 = arith.addf %747, %751 : vector<1x8x16xf32>
    %c1_593 = arith.constant 1 : index
    %c0_594 = arith.constant 0 : index
    %c13_595 = arith.constant 13 : index
    %c0_596 = arith.constant 0 : index
    %753 = vector.load %arg6[%c1_593, %c0_594, %c13_595, %c0_596] : memref<14x1x22x16xf32, #tpu.memory_space<vmem>>, vector<1x1x8x16xf32>
    %754 = vector.shape_cast %753 : vector<1x1x8x16xf32> to vector<1x8x16xf32>
    %755 = vector.broadcast %127 : f32 to vector<1x8x16xf32>
    %756 = arith.mulf %755, %754 : vector<1x8x16xf32>
    %757 = arith.addf %752, %756 : vector<1x8x16xf32>
    %c1_597 = arith.constant 1 : index
    %c0_598 = arith.constant 0 : index
    %c14_599 = arith.constant 14 : index
    %c0_600 = arith.constant 0 : index
    %758 = vector.load %arg6[%c1_597, %c0_598, %c14_599, %c0_600] : memref<14x1x22x16xf32, #tpu.memory_space<vmem>>, vector<1x1x8x16xf32>
    %759 = vector.shape_cast %758 : vector<1x1x8x16xf32> to vector<1x8x16xf32>
    %760 = vector.broadcast %134 : f32 to vector<1x8x16xf32>
    %761 = arith.mulf %760, %759 : vector<1x8x16xf32>
    %762 = arith.addf %757, %761 : vector<1x8x16xf32>
    %c2_601 = arith.constant 2 : index
    %c0_602 = arith.constant 0 : index
    %c8_603 = arith.constant 8 : index
    %c0_604 = arith.constant 0 : index
    %763 = vector.load %arg6[%c2_601, %c0_602, %c8_603, %c0_604] : memref<14x1x22x16xf32, #tpu.memory_space<vmem>>, vector<1x1x8x16xf32>
    %764 = vector.shape_cast %763 : vector<1x1x8x16xf32> to vector<1x8x16xf32>
    %765 = vector.broadcast %93 : f32 to vector<1x8x16xf32>
    %766 = arith.mulf %765, %764 : vector<1x8x16xf32>
    %767 = arith.addf %762, %766 : vector<1x8x16xf32>
    %c2_605 = arith.constant 2 : index
    %c0_606 = arith.constant 0 : index
    %c9_607 = arith.constant 9 : index
    %c0_608 = arith.constant 0 : index
    %768 = vector.load %arg6[%c2_605, %c0_606, %c9_607, %c0_608] : memref<14x1x22x16xf32, #tpu.memory_space<vmem>>, vector<1x1x8x16xf32>
    %769 = vector.shape_cast %768 : vector<1x1x8x16xf32> to vector<1x8x16xf32>
    %770 = vector.broadcast %100 : f32 to vector<1x8x16xf32>
    %771 = arith.mulf %770, %769 : vector<1x8x16xf32>
    %772 = arith.addf %767, %771 : vector<1x8x16xf32>
    %c2_609 = arith.constant 2 : index
    %c0_610 = arith.constant 0 : index
    %c10_611 = arith.constant 10 : index
    %c0_612 = arith.constant 0 : index
    %773 = vector.load %arg6[%c2_609, %c0_610, %c10_611, %c0_612] : memref<14x1x22x16xf32, #tpu.memory_space<vmem>>, vector<1x1x8x16xf32>
    %774 = vector.shape_cast %773 : vector<1x1x8x16xf32> to vector<1x8x16xf32>
    %775 = vector.broadcast %107 : f32 to vector<1x8x16xf32>
    %776 = arith.mulf %775, %774 : vector<1x8x16xf32>
    %777 = arith.addf %772, %776 : vector<1x8x16xf32>
    %c2_613 = arith.constant 2 : index
    %c0_614 = arith.constant 0 : index
    %c11_615 = arith.constant 11 : index
    %c0_616 = arith.constant 0 : index
    %778 = vector.load %arg6[%c2_613, %c0_614, %c11_615, %c0_616] : memref<14x1x22x16xf32, #tpu.memory_space<vmem>>, vector<1x1x8x16xf32>
    %779 = vector.shape_cast %778 : vector<1x1x8x16xf32> to vector<1x8x16xf32>
    %780 = vector.broadcast %114 : f32 to vector<1x8x16xf32>
    %781 = arith.mulf %780, %779 : vector<1x8x16xf32>
    %782 = arith.addf %777, %781 : vector<1x8x16xf32>
    %c2_617 = arith.constant 2 : index
    %c0_618 = arith.constant 0 : index
    %c12_619 = arith.constant 12 : index
    %c0_620 = arith.constant 0 : index
    %783 = vector.load %arg6[%c2_617, %c0_618, %c12_619, %c0_620] : memref<14x1x22x16xf32, #tpu.memory_space<vmem>>, vector<1x1x8x16xf32>
    %784 = vector.shape_cast %783 : vector<1x1x8x16xf32> to vector<1x8x16xf32>
    %785 = vector.broadcast %121 : f32 to vector<1x8x16xf32>
    %786 = arith.mulf %785, %784 : vector<1x8x16xf32>
    %787 = arith.addf %782, %786 : vector<1x8x16xf32>
    %c2_621 = arith.constant 2 : index
    %c0_622 = arith.constant 0 : index
    %c13_623 = arith.constant 13 : index
    %c0_624 = arith.constant 0 : index
    %788 = vector.load %arg6[%c2_621, %c0_622, %c13_623, %c0_624] : memref<14x1x22x16xf32, #tpu.memory_space<vmem>>, vector<1x1x8x16xf32>
    %789 = vector.shape_cast %788 : vector<1x1x8x16xf32> to vector<1x8x16xf32>
    %790 = vector.broadcast %128 : f32 to vector<1x8x16xf32>
    %791 = arith.mulf %790, %789 : vector<1x8x16xf32>
    %792 = arith.addf %787, %791 : vector<1x8x16xf32>
    %c2_625 = arith.constant 2 : index
    %c0_626 = arith.constant 0 : index
    %c14_627 = arith.constant 14 : index
    %c0_628 = arith.constant 0 : index
    %793 = vector.load %arg6[%c2_625, %c0_626, %c14_627, %c0_628] : memref<14x1x22x16xf32, #tpu.memory_space<vmem>>, vector<1x1x8x16xf32>
    %794 = vector.shape_cast %793 : vector<1x1x8x16xf32> to vector<1x8x16xf32>
    %795 = vector.broadcast %135 : f32 to vector<1x8x16xf32>
    %796 = arith.mulf %795, %794 : vector<1x8x16xf32>
    %797 = arith.addf %792, %796 : vector<1x8x16xf32>
    %c3_629 = arith.constant 3 : index
    %c0_630 = arith.constant 0 : index
    %c8_631 = arith.constant 8 : index
    %c0_632 = arith.constant 0 : index
    %798 = vector.load %arg6[%c3_629, %c0_630, %c8_631, %c0_632] : memref<14x1x22x16xf32, #tpu.memory_space<vmem>>, vector<1x1x8x16xf32>
    %799 = vector.shape_cast %798 : vector<1x1x8x16xf32> to vector<1x8x16xf32>
    %800 = vector.broadcast %94 : f32 to vector<1x8x16xf32>
    %801 = arith.mulf %800, %799 : vector<1x8x16xf32>
    %802 = arith.addf %797, %801 : vector<1x8x16xf32>
    %c3_633 = arith.constant 3 : index
    %c0_634 = arith.constant 0 : index
    %c9_635 = arith.constant 9 : index
    %c0_636 = arith.constant 0 : index
    %803 = vector.load %arg6[%c3_633, %c0_634, %c9_635, %c0_636] : memref<14x1x22x16xf32, #tpu.memory_space<vmem>>, vector<1x1x8x16xf32>
    %804 = vector.shape_cast %803 : vector<1x1x8x16xf32> to vector<1x8x16xf32>
    %805 = vector.broadcast %101 : f32 to vector<1x8x16xf32>
    %806 = arith.mulf %805, %804 : vector<1x8x16xf32>
    %807 = arith.addf %802, %806 : vector<1x8x16xf32>
    %c3_637 = arith.constant 3 : index
    %c0_638 = arith.constant 0 : index
    %c10_639 = arith.constant 10 : index
    %c0_640 = arith.constant 0 : index
    %808 = vector.load %arg6[%c3_637, %c0_638, %c10_639, %c0_640] : memref<14x1x22x16xf32, #tpu.memory_space<vmem>>, vector<1x1x8x16xf32>
    %809 = vector.shape_cast %808 : vector<1x1x8x16xf32> to vector<1x8x16xf32>
    %810 = vector.broadcast %108 : f32 to vector<1x8x16xf32>
    %811 = arith.mulf %810, %809 : vector<1x8x16xf32>
    %812 = arith.addf %807, %811 : vector<1x8x16xf32>
    %c3_641 = arith.constant 3 : index
    %c0_642 = arith.constant 0 : index
    %c11_643 = arith.constant 11 : index
    %c0_644 = arith.constant 0 : index
    %813 = vector.load %arg6[%c3_641, %c0_642, %c11_643, %c0_644] : memref<14x1x22x16xf32, #tpu.memory_space<vmem>>, vector<1x1x8x16xf32>
    %814 = vector.shape_cast %813 : vector<1x1x8x16xf32> to vector<1x8x16xf32>
    %815 = vector.broadcast %115 : f32 to vector<1x8x16xf32>
    %816 = arith.mulf %815, %814 : vector<1x8x16xf32>
    %817 = arith.addf %812, %816 : vector<1x8x16xf32>
    %c3_645 = arith.constant 3 : index
    %c0_646 = arith.constant 0 : index
    %c12_647 = arith.constant 12 : index
    %c0_648 = arith.constant 0 : index
    %818 = vector.load %arg6[%c3_645, %c0_646, %c12_647, %c0_648] : memref<14x1x22x16xf32, #tpu.memory_space<vmem>>, vector<1x1x8x16xf32>
    %819 = vector.shape_cast %818 : vector<1x1x8x16xf32> to vector<1x8x16xf32>
    %820 = vector.broadcast %122 : f32 to vector<1x8x16xf32>
    %821 = arith.mulf %820, %819 : vector<1x8x16xf32>
    %822 = arith.addf %817, %821 : vector<1x8x16xf32>
    %c3_649 = arith.constant 3 : index
    %c0_650 = arith.constant 0 : index
    %c13_651 = arith.constant 13 : index
    %c0_652 = arith.constant 0 : index
    %823 = vector.load %arg6[%c3_649, %c0_650, %c13_651, %c0_652] : memref<14x1x22x16xf32, #tpu.memory_space<vmem>>, vector<1x1x8x16xf32>
    %824 = vector.shape_cast %823 : vector<1x1x8x16xf32> to vector<1x8x16xf32>
    %825 = vector.broadcast %129 : f32 to vector<1x8x16xf32>
    %826 = arith.mulf %825, %824 : vector<1x8x16xf32>
    %827 = arith.addf %822, %826 : vector<1x8x16xf32>
    %c3_653 = arith.constant 3 : index
    %c0_654 = arith.constant 0 : index
    %c14_655 = arith.constant 14 : index
    %c0_656 = arith.constant 0 : index
    %828 = vector.load %arg6[%c3_653, %c0_654, %c14_655, %c0_656] : memref<14x1x22x16xf32, #tpu.memory_space<vmem>>, vector<1x1x8x16xf32>
    %829 = vector.shape_cast %828 : vector<1x1x8x16xf32> to vector<1x8x16xf32>
    %830 = vector.broadcast %136 : f32 to vector<1x8x16xf32>
    %831 = arith.mulf %830, %829 : vector<1x8x16xf32>
    %832 = arith.addf %827, %831 : vector<1x8x16xf32>
    %c4_657 = arith.constant 4 : index
    %c0_658 = arith.constant 0 : index
    %c8_659 = arith.constant 8 : index
    %c0_660 = arith.constant 0 : index
    %833 = vector.load %arg6[%c4_657, %c0_658, %c8_659, %c0_660] : memref<14x1x22x16xf32, #tpu.memory_space<vmem>>, vector<1x1x8x16xf32>
    %834 = vector.shape_cast %833 : vector<1x1x8x16xf32> to vector<1x8x16xf32>
    %835 = vector.broadcast %95 : f32 to vector<1x8x16xf32>
    %836 = arith.mulf %835, %834 : vector<1x8x16xf32>
    %837 = arith.addf %832, %836 : vector<1x8x16xf32>
    %c4_661 = arith.constant 4 : index
    %c0_662 = arith.constant 0 : index
    %c9_663 = arith.constant 9 : index
    %c0_664 = arith.constant 0 : index
    %838 = vector.load %arg6[%c4_661, %c0_662, %c9_663, %c0_664] : memref<14x1x22x16xf32, #tpu.memory_space<vmem>>, vector<1x1x8x16xf32>
    %839 = vector.shape_cast %838 : vector<1x1x8x16xf32> to vector<1x8x16xf32>
    %840 = vector.broadcast %102 : f32 to vector<1x8x16xf32>
    %841 = arith.mulf %840, %839 : vector<1x8x16xf32>
    %842 = arith.addf %837, %841 : vector<1x8x16xf32>
    %c4_665 = arith.constant 4 : index
    %c0_666 = arith.constant 0 : index
    %c10_667 = arith.constant 10 : index
    %c0_668 = arith.constant 0 : index
    %843 = vector.load %arg6[%c4_665, %c0_666, %c10_667, %c0_668] : memref<14x1x22x16xf32, #tpu.memory_space<vmem>>, vector<1x1x8x16xf32>
    %844 = vector.shape_cast %843 : vector<1x1x8x16xf32> to vector<1x8x16xf32>
    %845 = vector.broadcast %109 : f32 to vector<1x8x16xf32>
    %846 = arith.mulf %845, %844 : vector<1x8x16xf32>
    %847 = arith.addf %842, %846 : vector<1x8x16xf32>
    %c4_669 = arith.constant 4 : index
    %c0_670 = arith.constant 0 : index
    %c11_671 = arith.constant 11 : index
    %c0_672 = arith.constant 0 : index
    %848 = vector.load %arg6[%c4_669, %c0_670, %c11_671, %c0_672] : memref<14x1x22x16xf32, #tpu.memory_space<vmem>>, vector<1x1x8x16xf32>
    %849 = vector.shape_cast %848 : vector<1x1x8x16xf32> to vector<1x8x16xf32>
    %850 = vector.broadcast %116 : f32 to vector<1x8x16xf32>
    %851 = arith.mulf %850, %849 : vector<1x8x16xf32>
    %852 = arith.addf %847, %851 : vector<1x8x16xf32>
    %c4_673 = arith.constant 4 : index
    %c0_674 = arith.constant 0 : index
    %c12_675 = arith.constant 12 : index
    %c0_676 = arith.constant 0 : index
    %853 = vector.load %arg6[%c4_673, %c0_674, %c12_675, %c0_676] : memref<14x1x22x16xf32, #tpu.memory_space<vmem>>, vector<1x1x8x16xf32>
    %854 = vector.shape_cast %853 : vector<1x1x8x16xf32> to vector<1x8x16xf32>
    %855 = vector.broadcast %123 : f32 to vector<1x8x16xf32>
    %856 = arith.mulf %855, %854 : vector<1x8x16xf32>
    %857 = arith.addf %852, %856 : vector<1x8x16xf32>
    %c4_677 = arith.constant 4 : index
    %c0_678 = arith.constant 0 : index
    %c13_679 = arith.constant 13 : index
    %c0_680 = arith.constant 0 : index
    %858 = vector.load %arg6[%c4_677, %c0_678, %c13_679, %c0_680] : memref<14x1x22x16xf32, #tpu.memory_space<vmem>>, vector<1x1x8x16xf32>
    %859 = vector.shape_cast %858 : vector<1x1x8x16xf32> to vector<1x8x16xf32>
    %860 = vector.broadcast %130 : f32 to vector<1x8x16xf32>
    %861 = arith.mulf %860, %859 : vector<1x8x16xf32>
    %862 = arith.addf %857, %861 : vector<1x8x16xf32>
    %c4_681 = arith.constant 4 : index
    %c0_682 = arith.constant 0 : index
    %c14_683 = arith.constant 14 : index
    %c0_684 = arith.constant 0 : index
    %863 = vector.load %arg6[%c4_681, %c0_682, %c14_683, %c0_684] : memref<14x1x22x16xf32, #tpu.memory_space<vmem>>, vector<1x1x8x16xf32>
    %864 = vector.shape_cast %863 : vector<1x1x8x16xf32> to vector<1x8x16xf32>
    %865 = vector.broadcast %137 : f32 to vector<1x8x16xf32>
    %866 = arith.mulf %865, %864 : vector<1x8x16xf32>
    %867 = arith.addf %862, %866 : vector<1x8x16xf32>
    %c5_685 = arith.constant 5 : index
    %c0_686 = arith.constant 0 : index
    %c8_687 = arith.constant 8 : index
    %c0_688 = arith.constant 0 : index
    %868 = vector.load %arg6[%c5_685, %c0_686, %c8_687, %c0_688] : memref<14x1x22x16xf32, #tpu.memory_space<vmem>>, vector<1x1x8x16xf32>
    %869 = vector.shape_cast %868 : vector<1x1x8x16xf32> to vector<1x8x16xf32>
    %870 = vector.broadcast %96 : f32 to vector<1x8x16xf32>
    %871 = arith.mulf %870, %869 : vector<1x8x16xf32>
    %872 = arith.addf %867, %871 : vector<1x8x16xf32>
    %c5_689 = arith.constant 5 : index
    %c0_690 = arith.constant 0 : index
    %c9_691 = arith.constant 9 : index
    %c0_692 = arith.constant 0 : index
    %873 = vector.load %arg6[%c5_689, %c0_690, %c9_691, %c0_692] : memref<14x1x22x16xf32, #tpu.memory_space<vmem>>, vector<1x1x8x16xf32>
    %874 = vector.shape_cast %873 : vector<1x1x8x16xf32> to vector<1x8x16xf32>
    %875 = vector.broadcast %103 : f32 to vector<1x8x16xf32>
    %876 = arith.mulf %875, %874 : vector<1x8x16xf32>
    %877 = arith.addf %872, %876 : vector<1x8x16xf32>
    %c5_693 = arith.constant 5 : index
    %c0_694 = arith.constant 0 : index
    %c10_695 = arith.constant 10 : index
    %c0_696 = arith.constant 0 : index
    %878 = vector.load %arg6[%c5_693, %c0_694, %c10_695, %c0_696] : memref<14x1x22x16xf32, #tpu.memory_space<vmem>>, vector<1x1x8x16xf32>
    %879 = vector.shape_cast %878 : vector<1x1x8x16xf32> to vector<1x8x16xf32>
    %880 = vector.broadcast %110 : f32 to vector<1x8x16xf32>
    %881 = arith.mulf %880, %879 : vector<1x8x16xf32>
    %882 = arith.addf %877, %881 : vector<1x8x16xf32>
    %c5_697 = arith.constant 5 : index
    %c0_698 = arith.constant 0 : index
    %c11_699 = arith.constant 11 : index
    %c0_700 = arith.constant 0 : index
    %883 = vector.load %arg6[%c5_697, %c0_698, %c11_699, %c0_700] : memref<14x1x22x16xf32, #tpu.memory_space<vmem>>, vector<1x1x8x16xf32>
    %884 = vector.shape_cast %883 : vector<1x1x8x16xf32> to vector<1x8x16xf32>
    %885 = vector.broadcast %117 : f32 to vector<1x8x16xf32>
    %886 = arith.mulf %885, %884 : vector<1x8x16xf32>
    %887 = arith.addf %882, %886 : vector<1x8x16xf32>
    %c5_701 = arith.constant 5 : index
    %c0_702 = arith.constant 0 : index
    %c12_703 = arith.constant 12 : index
    %c0_704 = arith.constant 0 : index
    %888 = vector.load %arg6[%c5_701, %c0_702, %c12_703, %c0_704] : memref<14x1x22x16xf32, #tpu.memory_space<vmem>>, vector<1x1x8x16xf32>
    %889 = vector.shape_cast %888 : vector<1x1x8x16xf32> to vector<1x8x16xf32>
    %890 = vector.broadcast %124 : f32 to vector<1x8x16xf32>
    %891 = arith.mulf %890, %889 : vector<1x8x16xf32>
    %892 = arith.addf %887, %891 : vector<1x8x16xf32>
    %c5_705 = arith.constant 5 : index
    %c0_706 = arith.constant 0 : index
    %c13_707 = arith.constant 13 : index
    %c0_708 = arith.constant 0 : index
    %893 = vector.load %arg6[%c5_705, %c0_706, %c13_707, %c0_708] : memref<14x1x22x16xf32, #tpu.memory_space<vmem>>, vector<1x1x8x16xf32>
    %894 = vector.shape_cast %893 : vector<1x1x8x16xf32> to vector<1x8x16xf32>
    %895 = vector.broadcast %131 : f32 to vector<1x8x16xf32>
    %896 = arith.mulf %895, %894 : vector<1x8x16xf32>
    %897 = arith.addf %892, %896 : vector<1x8x16xf32>
    %c5_709 = arith.constant 5 : index
    %c0_710 = arith.constant 0 : index
    %c14_711 = arith.constant 14 : index
    %c0_712 = arith.constant 0 : index
    %898 = vector.load %arg6[%c5_709, %c0_710, %c14_711, %c0_712] : memref<14x1x22x16xf32, #tpu.memory_space<vmem>>, vector<1x1x8x16xf32>
    %899 = vector.shape_cast %898 : vector<1x1x8x16xf32> to vector<1x8x16xf32>
    %900 = vector.broadcast %138 : f32 to vector<1x8x16xf32>
    %901 = arith.mulf %900, %899 : vector<1x8x16xf32>
    %902 = arith.addf %897, %901 : vector<1x8x16xf32>
    %c6_713 = arith.constant 6 : index
    %c0_714 = arith.constant 0 : index
    %c8_715 = arith.constant 8 : index
    %c0_716 = arith.constant 0 : index
    %903 = vector.load %arg6[%c6_713, %c0_714, %c8_715, %c0_716] : memref<14x1x22x16xf32, #tpu.memory_space<vmem>>, vector<1x1x8x16xf32>
    %904 = vector.shape_cast %903 : vector<1x1x8x16xf32> to vector<1x8x16xf32>
    %905 = vector.broadcast %97 : f32 to vector<1x8x16xf32>
    %906 = arith.mulf %905, %904 : vector<1x8x16xf32>
    %907 = arith.addf %902, %906 : vector<1x8x16xf32>
    %c6_717 = arith.constant 6 : index
    %c0_718 = arith.constant 0 : index
    %c9_719 = arith.constant 9 : index
    %c0_720 = arith.constant 0 : index
    %908 = vector.load %arg6[%c6_717, %c0_718, %c9_719, %c0_720] : memref<14x1x22x16xf32, #tpu.memory_space<vmem>>, vector<1x1x8x16xf32>
    %909 = vector.shape_cast %908 : vector<1x1x8x16xf32> to vector<1x8x16xf32>
    %910 = vector.broadcast %104 : f32 to vector<1x8x16xf32>
    %911 = arith.mulf %910, %909 : vector<1x8x16xf32>
    %912 = arith.addf %907, %911 : vector<1x8x16xf32>
    %c6_721 = arith.constant 6 : index
    %c0_722 = arith.constant 0 : index
    %c10_723 = arith.constant 10 : index
    %c0_724 = arith.constant 0 : index
    %913 = vector.load %arg6[%c6_721, %c0_722, %c10_723, %c0_724] : memref<14x1x22x16xf32, #tpu.memory_space<vmem>>, vector<1x1x8x16xf32>
    %914 = vector.shape_cast %913 : vector<1x1x8x16xf32> to vector<1x8x16xf32>
    %915 = vector.broadcast %111 : f32 to vector<1x8x16xf32>
    %916 = arith.mulf %915, %914 : vector<1x8x16xf32>
    %917 = arith.addf %912, %916 : vector<1x8x16xf32>
    %c6_725 = arith.constant 6 : index
    %c0_726 = arith.constant 0 : index
    %c11_727 = arith.constant 11 : index
    %c0_728 = arith.constant 0 : index
    %918 = vector.load %arg6[%c6_725, %c0_726, %c11_727, %c0_728] : memref<14x1x22x16xf32, #tpu.memory_space<vmem>>, vector<1x1x8x16xf32>
    %919 = vector.shape_cast %918 : vector<1x1x8x16xf32> to vector<1x8x16xf32>
    %920 = vector.broadcast %118 : f32 to vector<1x8x16xf32>
    %921 = arith.mulf %920, %919 : vector<1x8x16xf32>
    %922 = arith.addf %917, %921 : vector<1x8x16xf32>
    %c6_729 = arith.constant 6 : index
    %c0_730 = arith.constant 0 : index
    %c12_731 = arith.constant 12 : index
    %c0_732 = arith.constant 0 : index
    %923 = vector.load %arg6[%c6_729, %c0_730, %c12_731, %c0_732] : memref<14x1x22x16xf32, #tpu.memory_space<vmem>>, vector<1x1x8x16xf32>
    %924 = vector.shape_cast %923 : vector<1x1x8x16xf32> to vector<1x8x16xf32>
    %925 = vector.broadcast %125 : f32 to vector<1x8x16xf32>
    %926 = arith.mulf %925, %924 : vector<1x8x16xf32>
    %927 = arith.addf %922, %926 : vector<1x8x16xf32>
    %c6_733 = arith.constant 6 : index
    %c0_734 = arith.constant 0 : index
    %c13_735 = arith.constant 13 : index
    %c0_736 = arith.constant 0 : index
    %928 = vector.load %arg6[%c6_733, %c0_734, %c13_735, %c0_736] : memref<14x1x22x16xf32, #tpu.memory_space<vmem>>, vector<1x1x8x16xf32>
    %929 = vector.shape_cast %928 : vector<1x1x8x16xf32> to vector<1x8x16xf32>
    %930 = vector.broadcast %132 : f32 to vector<1x8x16xf32>
    %931 = arith.mulf %930, %929 : vector<1x8x16xf32>
    %932 = arith.addf %927, %931 : vector<1x8x16xf32>
    %c6_737 = arith.constant 6 : index
    %c0_738 = arith.constant 0 : index
    %c14_739 = arith.constant 14 : index
    %c0_740 = arith.constant 0 : index
    %933 = vector.load %arg6[%c6_737, %c0_738, %c14_739, %c0_740] : memref<14x1x22x16xf32, #tpu.memory_space<vmem>>, vector<1x1x8x16xf32>
    %934 = vector.shape_cast %933 : vector<1x1x8x16xf32> to vector<1x8x16xf32>
    %935 = vector.broadcast %139 : f32 to vector<1x8x16xf32>
    %936 = arith.mulf %935, %934 : vector<1x8x16xf32>
    %937 = arith.addf %932, %936 : vector<1x8x16xf32>
    %c7_741 = arith.constant 7 : index
    %c0_742 = arith.constant 0 : index
    %c8_743 = arith.constant 8 : index
    %c0_744 = arith.constant 0 : index
    %938 = vector.load %arg6[%c7_741, %c0_742, %c8_743, %c0_744] : memref<14x1x22x16xf32, #tpu.memory_space<vmem>>, vector<1x1x8x16xf32>
    %939 = vector.shape_cast %938 : vector<1x1x8x16xf32> to vector<1x8x16xf32>
    %940 = vector.broadcast %140 : f32 to vector<1x8x16xf32>
    %941 = arith.mulf %940, %939 : vector<1x8x16xf32>
    %942 = arith.addf %937, %941 : vector<1x8x16xf32>
    %c7_745 = arith.constant 7 : index
    %c0_746 = arith.constant 0 : index
    %c9_747 = arith.constant 9 : index
    %c0_748 = arith.constant 0 : index
    %943 = vector.load %arg6[%c7_745, %c0_746, %c9_747, %c0_748] : memref<14x1x22x16xf32, #tpu.memory_space<vmem>>, vector<1x1x8x16xf32>
    %944 = vector.shape_cast %943 : vector<1x1x8x16xf32> to vector<1x8x16xf32>
    %945 = vector.broadcast %147 : f32 to vector<1x8x16xf32>
    %946 = arith.mulf %945, %944 : vector<1x8x16xf32>
    %947 = arith.addf %942, %946 : vector<1x8x16xf32>
    %c7_749 = arith.constant 7 : index
    %c0_750 = arith.constant 0 : index
    %c10_751 = arith.constant 10 : index
    %c0_752 = arith.constant 0 : index
    %948 = vector.load %arg6[%c7_749, %c0_750, %c10_751, %c0_752] : memref<14x1x22x16xf32, #tpu.memory_space<vmem>>, vector<1x1x8x16xf32>
    %949 = vector.shape_cast %948 : vector<1x1x8x16xf32> to vector<1x8x16xf32>
    %950 = vector.broadcast %154 : f32 to vector<1x8x16xf32>
    %951 = arith.mulf %950, %949 : vector<1x8x16xf32>
    %952 = arith.addf %947, %951 : vector<1x8x16xf32>
    %c7_753 = arith.constant 7 : index
    %c0_754 = arith.constant 0 : index
    %c11_755 = arith.constant 11 : index
    %c0_756 = arith.constant 0 : index
    %953 = vector.load %arg6[%c7_753, %c0_754, %c11_755, %c0_756] : memref<14x1x22x16xf32, #tpu.memory_space<vmem>>, vector<1x1x8x16xf32>
    %954 = vector.shape_cast %953 : vector<1x1x8x16xf32> to vector<1x8x16xf32>
    %955 = vector.broadcast %161 : f32 to vector<1x8x16xf32>
    %956 = arith.mulf %955, %954 : vector<1x8x16xf32>
    %957 = arith.addf %952, %956 : vector<1x8x16xf32>
    %c7_757 = arith.constant 7 : index
    %c0_758 = arith.constant 0 : index
    %c12_759 = arith.constant 12 : index
    %c0_760 = arith.constant 0 : index
    %958 = vector.load %arg6[%c7_757, %c0_758, %c12_759, %c0_760] : memref<14x1x22x16xf32, #tpu.memory_space<vmem>>, vector<1x1x8x16xf32>
    %959 = vector.shape_cast %958 : vector<1x1x8x16xf32> to vector<1x8x16xf32>
    %960 = vector.broadcast %168 : f32 to vector<1x8x16xf32>
    %961 = arith.mulf %960, %959 : vector<1x8x16xf32>
    %962 = arith.addf %957, %961 : vector<1x8x16xf32>
    %c7_761 = arith.constant 7 : index
    %c0_762 = arith.constant 0 : index
    %c13_763 = arith.constant 13 : index
    %c0_764 = arith.constant 0 : index
    %963 = vector.load %arg6[%c7_761, %c0_762, %c13_763, %c0_764] : memref<14x1x22x16xf32, #tpu.memory_space<vmem>>, vector<1x1x8x16xf32>
    %964 = vector.shape_cast %963 : vector<1x1x8x16xf32> to vector<1x8x16xf32>
    %965 = vector.broadcast %175 : f32 to vector<1x8x16xf32>
    %966 = arith.mulf %965, %964 : vector<1x8x16xf32>
    %967 = arith.addf %962, %966 : vector<1x8x16xf32>
    %c7_765 = arith.constant 7 : index
    %c0_766 = arith.constant 0 : index
    %c14_767 = arith.constant 14 : index
    %c0_768 = arith.constant 0 : index
    %968 = vector.load %arg6[%c7_765, %c0_766, %c14_767, %c0_768] : memref<14x1x22x16xf32, #tpu.memory_space<vmem>>, vector<1x1x8x16xf32>
    %969 = vector.shape_cast %968 : vector<1x1x8x16xf32> to vector<1x8x16xf32>
    %970 = vector.broadcast %182 : f32 to vector<1x8x16xf32>
    %971 = arith.mulf %970, %969 : vector<1x8x16xf32>
    %972 = arith.addf %967, %971 : vector<1x8x16xf32>
    %c8_769 = arith.constant 8 : index
    %c0_770 = arith.constant 0 : index
    %c8_771 = arith.constant 8 : index
    %c0_772 = arith.constant 0 : index
    %973 = vector.load %arg6[%c8_769, %c0_770, %c8_771, %c0_772] : memref<14x1x22x16xf32, #tpu.memory_space<vmem>>, vector<1x1x8x16xf32>
    %974 = vector.shape_cast %973 : vector<1x1x8x16xf32> to vector<1x8x16xf32>
    %975 = vector.broadcast %141 : f32 to vector<1x8x16xf32>
    %976 = arith.mulf %975, %974 : vector<1x8x16xf32>
    %977 = arith.addf %972, %976 : vector<1x8x16xf32>
    %c8_773 = arith.constant 8 : index
    %c0_774 = arith.constant 0 : index
    %c9_775 = arith.constant 9 : index
    %c0_776 = arith.constant 0 : index
    %978 = vector.load %arg6[%c8_773, %c0_774, %c9_775, %c0_776] : memref<14x1x22x16xf32, #tpu.memory_space<vmem>>, vector<1x1x8x16xf32>
    %979 = vector.shape_cast %978 : vector<1x1x8x16xf32> to vector<1x8x16xf32>
    %980 = vector.broadcast %148 : f32 to vector<1x8x16xf32>
    %981 = arith.mulf %980, %979 : vector<1x8x16xf32>
    %982 = arith.addf %977, %981 : vector<1x8x16xf32>
    %c8_777 = arith.constant 8 : index
    %c0_778 = arith.constant 0 : index
    %c10_779 = arith.constant 10 : index
    %c0_780 = arith.constant 0 : index
    %983 = vector.load %arg6[%c8_777, %c0_778, %c10_779, %c0_780] : memref<14x1x22x16xf32, #tpu.memory_space<vmem>>, vector<1x1x8x16xf32>
    %984 = vector.shape_cast %983 : vector<1x1x8x16xf32> to vector<1x8x16xf32>
    %985 = vector.broadcast %155 : f32 to vector<1x8x16xf32>
    %986 = arith.mulf %985, %984 : vector<1x8x16xf32>
    %987 = arith.addf %982, %986 : vector<1x8x16xf32>
    %c8_781 = arith.constant 8 : index
    %c0_782 = arith.constant 0 : index
    %c11_783 = arith.constant 11 : index
    %c0_784 = arith.constant 0 : index
    %988 = vector.load %arg6[%c8_781, %c0_782, %c11_783, %c0_784] : memref<14x1x22x16xf32, #tpu.memory_space<vmem>>, vector<1x1x8x16xf32>
    %989 = vector.shape_cast %988 : vector<1x1x8x16xf32> to vector<1x8x16xf32>
    %990 = vector.broadcast %162 : f32 to vector<1x8x16xf32>
    %991 = arith.mulf %990, %989 : vector<1x8x16xf32>
    %992 = arith.addf %987, %991 : vector<1x8x16xf32>
    %c8_785 = arith.constant 8 : index
    %c0_786 = arith.constant 0 : index
    %c12_787 = arith.constant 12 : index
    %c0_788 = arith.constant 0 : index
    %993 = vector.load %arg6[%c8_785, %c0_786, %c12_787, %c0_788] : memref<14x1x22x16xf32, #tpu.memory_space<vmem>>, vector<1x1x8x16xf32>
    %994 = vector.shape_cast %993 : vector<1x1x8x16xf32> to vector<1x8x16xf32>
    %995 = vector.broadcast %169 : f32 to vector<1x8x16xf32>
    %996 = arith.mulf %995, %994 : vector<1x8x16xf32>
    %997 = arith.addf %992, %996 : vector<1x8x16xf32>
    %c8_789 = arith.constant 8 : index
    %c0_790 = arith.constant 0 : index
    %c13_791 = arith.constant 13 : index
    %c0_792 = arith.constant 0 : index
    %998 = vector.load %arg6[%c8_789, %c0_790, %c13_791, %c0_792] : memref<14x1x22x16xf32, #tpu.memory_space<vmem>>, vector<1x1x8x16xf32>
    %999 = vector.shape_cast %998 : vector<1x1x8x16xf32> to vector<1x8x16xf32>
    %1000 = vector.broadcast %176 : f32 to vector<1x8x16xf32>
    %1001 = arith.mulf %1000, %999 : vector<1x8x16xf32>
    %1002 = arith.addf %997, %1001 : vector<1x8x16xf32>
    %c8_793 = arith.constant 8 : index
    %c0_794 = arith.constant 0 : index
    %c14_795 = arith.constant 14 : index
    %c0_796 = arith.constant 0 : index
    %1003 = vector.load %arg6[%c8_793, %c0_794, %c14_795, %c0_796] : memref<14x1x22x16xf32, #tpu.memory_space<vmem>>, vector<1x1x8x16xf32>
    %1004 = vector.shape_cast %1003 : vector<1x1x8x16xf32> to vector<1x8x16xf32>
    %1005 = vector.broadcast %183 : f32 to vector<1x8x16xf32>
    %1006 = arith.mulf %1005, %1004 : vector<1x8x16xf32>
    %1007 = arith.addf %1002, %1006 : vector<1x8x16xf32>
    %c9_797 = arith.constant 9 : index
    %c0_798 = arith.constant 0 : index
    %c8_799 = arith.constant 8 : index
    %c0_800 = arith.constant 0 : index
    %1008 = vector.load %arg6[%c9_797, %c0_798, %c8_799, %c0_800] : memref<14x1x22x16xf32, #tpu.memory_space<vmem>>, vector<1x1x8x16xf32>
    %1009 = vector.shape_cast %1008 : vector<1x1x8x16xf32> to vector<1x8x16xf32>
    %1010 = vector.broadcast %142 : f32 to vector<1x8x16xf32>
    %1011 = arith.mulf %1010, %1009 : vector<1x8x16xf32>
    %1012 = arith.addf %1007, %1011 : vector<1x8x16xf32>
    %c9_801 = arith.constant 9 : index
    %c0_802 = arith.constant 0 : index
    %c9_803 = arith.constant 9 : index
    %c0_804 = arith.constant 0 : index
    %1013 = vector.load %arg6[%c9_801, %c0_802, %c9_803, %c0_804] : memref<14x1x22x16xf32, #tpu.memory_space<vmem>>, vector<1x1x8x16xf32>
    %1014 = vector.shape_cast %1013 : vector<1x1x8x16xf32> to vector<1x8x16xf32>
    %1015 = vector.broadcast %149 : f32 to vector<1x8x16xf32>
    %1016 = arith.mulf %1015, %1014 : vector<1x8x16xf32>
    %1017 = arith.addf %1012, %1016 : vector<1x8x16xf32>
    %c9_805 = arith.constant 9 : index
    %c0_806 = arith.constant 0 : index
    %c10_807 = arith.constant 10 : index
    %c0_808 = arith.constant 0 : index
    %1018 = vector.load %arg6[%c9_805, %c0_806, %c10_807, %c0_808] : memref<14x1x22x16xf32, #tpu.memory_space<vmem>>, vector<1x1x8x16xf32>
    %1019 = vector.shape_cast %1018 : vector<1x1x8x16xf32> to vector<1x8x16xf32>
    %1020 = vector.broadcast %156 : f32 to vector<1x8x16xf32>
    %1021 = arith.mulf %1020, %1019 : vector<1x8x16xf32>
    %1022 = arith.addf %1017, %1021 : vector<1x8x16xf32>
    %c9_809 = arith.constant 9 : index
    %c0_810 = arith.constant 0 : index
    %c11_811 = arith.constant 11 : index
    %c0_812 = arith.constant 0 : index
    %1023 = vector.load %arg6[%c9_809, %c0_810, %c11_811, %c0_812] : memref<14x1x22x16xf32, #tpu.memory_space<vmem>>, vector<1x1x8x16xf32>
    %1024 = vector.shape_cast %1023 : vector<1x1x8x16xf32> to vector<1x8x16xf32>
    %1025 = vector.broadcast %163 : f32 to vector<1x8x16xf32>
    %1026 = arith.mulf %1025, %1024 : vector<1x8x16xf32>
    %1027 = arith.addf %1022, %1026 : vector<1x8x16xf32>
    %c9_813 = arith.constant 9 : index
    %c0_814 = arith.constant 0 : index
    %c12_815 = arith.constant 12 : index
    %c0_816 = arith.constant 0 : index
    %1028 = vector.load %arg6[%c9_813, %c0_814, %c12_815, %c0_816] : memref<14x1x22x16xf32, #tpu.memory_space<vmem>>, vector<1x1x8x16xf32>
    %1029 = vector.shape_cast %1028 : vector<1x1x8x16xf32> to vector<1x8x16xf32>
    %1030 = vector.broadcast %170 : f32 to vector<1x8x16xf32>
    %1031 = arith.mulf %1030, %1029 : vector<1x8x16xf32>
    %1032 = arith.addf %1027, %1031 : vector<1x8x16xf32>
    %c9_817 = arith.constant 9 : index
    %c0_818 = arith.constant 0 : index
    %c13_819 = arith.constant 13 : index
    %c0_820 = arith.constant 0 : index
    %1033 = vector.load %arg6[%c9_817, %c0_818, %c13_819, %c0_820] : memref<14x1x22x16xf32, #tpu.memory_space<vmem>>, vector<1x1x8x16xf32>
    %1034 = vector.shape_cast %1033 : vector<1x1x8x16xf32> to vector<1x8x16xf32>
    %1035 = vector.broadcast %177 : f32 to vector<1x8x16xf32>
    %1036 = arith.mulf %1035, %1034 : vector<1x8x16xf32>
    %1037 = arith.addf %1032, %1036 : vector<1x8x16xf32>
    %c9_821 = arith.constant 9 : index
    %c0_822 = arith.constant 0 : index
    %c14_823 = arith.constant 14 : index
    %c0_824 = arith.constant 0 : index
    %1038 = vector.load %arg6[%c9_821, %c0_822, %c14_823, %c0_824] : memref<14x1x22x16xf32, #tpu.memory_space<vmem>>, vector<1x1x8x16xf32>
    %1039 = vector.shape_cast %1038 : vector<1x1x8x16xf32> to vector<1x8x16xf32>
    %1040 = vector.broadcast %184 : f32 to vector<1x8x16xf32>
    %1041 = arith.mulf %1040, %1039 : vector<1x8x16xf32>
    %1042 = arith.addf %1037, %1041 : vector<1x8x16xf32>
    %c10_825 = arith.constant 10 : index
    %c0_826 = arith.constant 0 : index
    %c8_827 = arith.constant 8 : index
    %c0_828 = arith.constant 0 : index
    %1043 = vector.load %arg6[%c10_825, %c0_826, %c8_827, %c0_828] : memref<14x1x22x16xf32, #tpu.memory_space<vmem>>, vector<1x1x8x16xf32>
    %1044 = vector.shape_cast %1043 : vector<1x1x8x16xf32> to vector<1x8x16xf32>
    %1045 = vector.broadcast %143 : f32 to vector<1x8x16xf32>
    %1046 = arith.mulf %1045, %1044 : vector<1x8x16xf32>
    %1047 = arith.addf %1042, %1046 : vector<1x8x16xf32>
    %c10_829 = arith.constant 10 : index
    %c0_830 = arith.constant 0 : index
    %c9_831 = arith.constant 9 : index
    %c0_832 = arith.constant 0 : index
    %1048 = vector.load %arg6[%c10_829, %c0_830, %c9_831, %c0_832] : memref<14x1x22x16xf32, #tpu.memory_space<vmem>>, vector<1x1x8x16xf32>
    %1049 = vector.shape_cast %1048 : vector<1x1x8x16xf32> to vector<1x8x16xf32>
    %1050 = vector.broadcast %150 : f32 to vector<1x8x16xf32>
    %1051 = arith.mulf %1050, %1049 : vector<1x8x16xf32>
    %1052 = arith.addf %1047, %1051 : vector<1x8x16xf32>
    %c10_833 = arith.constant 10 : index
    %c0_834 = arith.constant 0 : index
    %c10_835 = arith.constant 10 : index
    %c0_836 = arith.constant 0 : index
    %1053 = vector.load %arg6[%c10_833, %c0_834, %c10_835, %c0_836] : memref<14x1x22x16xf32, #tpu.memory_space<vmem>>, vector<1x1x8x16xf32>
    %1054 = vector.shape_cast %1053 : vector<1x1x8x16xf32> to vector<1x8x16xf32>
    %1055 = vector.broadcast %157 : f32 to vector<1x8x16xf32>
    %1056 = arith.mulf %1055, %1054 : vector<1x8x16xf32>
    %1057 = arith.addf %1052, %1056 : vector<1x8x16xf32>
    %c10_837 = arith.constant 10 : index
    %c0_838 = arith.constant 0 : index
    %c11_839 = arith.constant 11 : index
    %c0_840 = arith.constant 0 : index
    %1058 = vector.load %arg6[%c10_837, %c0_838, %c11_839, %c0_840] : memref<14x1x22x16xf32, #tpu.memory_space<vmem>>, vector<1x1x8x16xf32>
    %1059 = vector.shape_cast %1058 : vector<1x1x8x16xf32> to vector<1x8x16xf32>
    %1060 = vector.broadcast %164 : f32 to vector<1x8x16xf32>
    %1061 = arith.mulf %1060, %1059 : vector<1x8x16xf32>
    %1062 = arith.addf %1057, %1061 : vector<1x8x16xf32>
    %c10_841 = arith.constant 10 : index
    %c0_842 = arith.constant 0 : index
    %c12_843 = arith.constant 12 : index
    %c0_844 = arith.constant 0 : index
    %1063 = vector.load %arg6[%c10_841, %c0_842, %c12_843, %c0_844] : memref<14x1x22x16xf32, #tpu.memory_space<vmem>>, vector<1x1x8x16xf32>
    %1064 = vector.shape_cast %1063 : vector<1x1x8x16xf32> to vector<1x8x16xf32>
    %1065 = vector.broadcast %171 : f32 to vector<1x8x16xf32>
    %1066 = arith.mulf %1065, %1064 : vector<1x8x16xf32>
    %1067 = arith.addf %1062, %1066 : vector<1x8x16xf32>
    %c10_845 = arith.constant 10 : index
    %c0_846 = arith.constant 0 : index
    %c13_847 = arith.constant 13 : index
    %c0_848 = arith.constant 0 : index
    %1068 = vector.load %arg6[%c10_845, %c0_846, %c13_847, %c0_848] : memref<14x1x22x16xf32, #tpu.memory_space<vmem>>, vector<1x1x8x16xf32>
    %1069 = vector.shape_cast %1068 : vector<1x1x8x16xf32> to vector<1x8x16xf32>
    %1070 = vector.broadcast %178 : f32 to vector<1x8x16xf32>
    %1071 = arith.mulf %1070, %1069 : vector<1x8x16xf32>
    %1072 = arith.addf %1067, %1071 : vector<1x8x16xf32>
    %c10_849 = arith.constant 10 : index
    %c0_850 = arith.constant 0 : index
    %c14_851 = arith.constant 14 : index
    %c0_852 = arith.constant 0 : index
    %1073 = vector.load %arg6[%c10_849, %c0_850, %c14_851, %c0_852] : memref<14x1x22x16xf32, #tpu.memory_space<vmem>>, vector<1x1x8x16xf32>
    %1074 = vector.shape_cast %1073 : vector<1x1x8x16xf32> to vector<1x8x16xf32>
    %1075 = vector.broadcast %185 : f32 to vector<1x8x16xf32>
    %1076 = arith.mulf %1075, %1074 : vector<1x8x16xf32>
    %1077 = arith.addf %1072, %1076 : vector<1x8x16xf32>
    %c11_853 = arith.constant 11 : index
    %c0_854 = arith.constant 0 : index
    %c8_855 = arith.constant 8 : index
    %c0_856 = arith.constant 0 : index
    %1078 = vector.load %arg6[%c11_853, %c0_854, %c8_855, %c0_856] : memref<14x1x22x16xf32, #tpu.memory_space<vmem>>, vector<1x1x8x16xf32>
    %1079 = vector.shape_cast %1078 : vector<1x1x8x16xf32> to vector<1x8x16xf32>
    %1080 = vector.broadcast %144 : f32 to vector<1x8x16xf32>
    %1081 = arith.mulf %1080, %1079 : vector<1x8x16xf32>
    %1082 = arith.addf %1077, %1081 : vector<1x8x16xf32>
    %c11_857 = arith.constant 11 : index
    %c0_858 = arith.constant 0 : index
    %c9_859 = arith.constant 9 : index
    %c0_860 = arith.constant 0 : index
    %1083 = vector.load %arg6[%c11_857, %c0_858, %c9_859, %c0_860] : memref<14x1x22x16xf32, #tpu.memory_space<vmem>>, vector<1x1x8x16xf32>
    %1084 = vector.shape_cast %1083 : vector<1x1x8x16xf32> to vector<1x8x16xf32>
    %1085 = vector.broadcast %151 : f32 to vector<1x8x16xf32>
    %1086 = arith.mulf %1085, %1084 : vector<1x8x16xf32>
    %1087 = arith.addf %1082, %1086 : vector<1x8x16xf32>
    %c11_861 = arith.constant 11 : index
    %c0_862 = arith.constant 0 : index
    %c10_863 = arith.constant 10 : index
    %c0_864 = arith.constant 0 : index
    %1088 = vector.load %arg6[%c11_861, %c0_862, %c10_863, %c0_864] : memref<14x1x22x16xf32, #tpu.memory_space<vmem>>, vector<1x1x8x16xf32>
    %1089 = vector.shape_cast %1088 : vector<1x1x8x16xf32> to vector<1x8x16xf32>
    %1090 = vector.broadcast %158 : f32 to vector<1x8x16xf32>
    %1091 = arith.mulf %1090, %1089 : vector<1x8x16xf32>
    %1092 = arith.addf %1087, %1091 : vector<1x8x16xf32>
    %c11_865 = arith.constant 11 : index
    %c0_866 = arith.constant 0 : index
    %c11_867 = arith.constant 11 : index
    %c0_868 = arith.constant 0 : index
    %1093 = vector.load %arg6[%c11_865, %c0_866, %c11_867, %c0_868] : memref<14x1x22x16xf32, #tpu.memory_space<vmem>>, vector<1x1x8x16xf32>
    %1094 = vector.shape_cast %1093 : vector<1x1x8x16xf32> to vector<1x8x16xf32>
    %1095 = vector.broadcast %165 : f32 to vector<1x8x16xf32>
    %1096 = arith.mulf %1095, %1094 : vector<1x8x16xf32>
    %1097 = arith.addf %1092, %1096 : vector<1x8x16xf32>
    %c11_869 = arith.constant 11 : index
    %c0_870 = arith.constant 0 : index
    %c12_871 = arith.constant 12 : index
    %c0_872 = arith.constant 0 : index
    %1098 = vector.load %arg6[%c11_869, %c0_870, %c12_871, %c0_872] : memref<14x1x22x16xf32, #tpu.memory_space<vmem>>, vector<1x1x8x16xf32>
    %1099 = vector.shape_cast %1098 : vector<1x1x8x16xf32> to vector<1x8x16xf32>
    %1100 = vector.broadcast %172 : f32 to vector<1x8x16xf32>
    %1101 = arith.mulf %1100, %1099 : vector<1x8x16xf32>
    %1102 = arith.addf %1097, %1101 : vector<1x8x16xf32>
    %c11_873 = arith.constant 11 : index
    %c0_874 = arith.constant 0 : index
    %c13_875 = arith.constant 13 : index
    %c0_876 = arith.constant 0 : index
    %1103 = vector.load %arg6[%c11_873, %c0_874, %c13_875, %c0_876] : memref<14x1x22x16xf32, #tpu.memory_space<vmem>>, vector<1x1x8x16xf32>
    %1104 = vector.shape_cast %1103 : vector<1x1x8x16xf32> to vector<1x8x16xf32>
    %1105 = vector.broadcast %179 : f32 to vector<1x8x16xf32>
    %1106 = arith.mulf %1105, %1104 : vector<1x8x16xf32>
    %1107 = arith.addf %1102, %1106 : vector<1x8x16xf32>
    %c11_877 = arith.constant 11 : index
    %c0_878 = arith.constant 0 : index
    %c14_879 = arith.constant 14 : index
    %c0_880 = arith.constant 0 : index
    %1108 = vector.load %arg6[%c11_877, %c0_878, %c14_879, %c0_880] : memref<14x1x22x16xf32, #tpu.memory_space<vmem>>, vector<1x1x8x16xf32>
    %1109 = vector.shape_cast %1108 : vector<1x1x8x16xf32> to vector<1x8x16xf32>
    %1110 = vector.broadcast %186 : f32 to vector<1x8x16xf32>
    %1111 = arith.mulf %1110, %1109 : vector<1x8x16xf32>
    %1112 = arith.addf %1107, %1111 : vector<1x8x16xf32>
    %c12_881 = arith.constant 12 : index
    %c0_882 = arith.constant 0 : index
    %c8_883 = arith.constant 8 : index
    %c0_884 = arith.constant 0 : index
    %1113 = vector.load %arg6[%c12_881, %c0_882, %c8_883, %c0_884] : memref<14x1x22x16xf32, #tpu.memory_space<vmem>>, vector<1x1x8x16xf32>
    %1114 = vector.shape_cast %1113 : vector<1x1x8x16xf32> to vector<1x8x16xf32>
    %1115 = vector.broadcast %145 : f32 to vector<1x8x16xf32>
    %1116 = arith.mulf %1115, %1114 : vector<1x8x16xf32>
    %1117 = arith.addf %1112, %1116 : vector<1x8x16xf32>
    %c12_885 = arith.constant 12 : index
    %c0_886 = arith.constant 0 : index
    %c9_887 = arith.constant 9 : index
    %c0_888 = arith.constant 0 : index
    %1118 = vector.load %arg6[%c12_885, %c0_886, %c9_887, %c0_888] : memref<14x1x22x16xf32, #tpu.memory_space<vmem>>, vector<1x1x8x16xf32>
    %1119 = vector.shape_cast %1118 : vector<1x1x8x16xf32> to vector<1x8x16xf32>
    %1120 = vector.broadcast %152 : f32 to vector<1x8x16xf32>
    %1121 = arith.mulf %1120, %1119 : vector<1x8x16xf32>
    %1122 = arith.addf %1117, %1121 : vector<1x8x16xf32>
    %c12_889 = arith.constant 12 : index
    %c0_890 = arith.constant 0 : index
    %c10_891 = arith.constant 10 : index
    %c0_892 = arith.constant 0 : index
    %1123 = vector.load %arg6[%c12_889, %c0_890, %c10_891, %c0_892] : memref<14x1x22x16xf32, #tpu.memory_space<vmem>>, vector<1x1x8x16xf32>
    %1124 = vector.shape_cast %1123 : vector<1x1x8x16xf32> to vector<1x8x16xf32>
    %1125 = vector.broadcast %159 : f32 to vector<1x8x16xf32>
    %1126 = arith.mulf %1125, %1124 : vector<1x8x16xf32>
    %1127 = arith.addf %1122, %1126 : vector<1x8x16xf32>
    %c12_893 = arith.constant 12 : index
    %c0_894 = arith.constant 0 : index
    %c11_895 = arith.constant 11 : index
    %c0_896 = arith.constant 0 : index
    %1128 = vector.load %arg6[%c12_893, %c0_894, %c11_895, %c0_896] : memref<14x1x22x16xf32, #tpu.memory_space<vmem>>, vector<1x1x8x16xf32>
    %1129 = vector.shape_cast %1128 : vector<1x1x8x16xf32> to vector<1x8x16xf32>
    %1130 = vector.broadcast %166 : f32 to vector<1x8x16xf32>
    %1131 = arith.mulf %1130, %1129 : vector<1x8x16xf32>
    %1132 = arith.addf %1127, %1131 : vector<1x8x16xf32>
    %c12_897 = arith.constant 12 : index
    %c0_898 = arith.constant 0 : index
    %c12_899 = arith.constant 12 : index
    %c0_900 = arith.constant 0 : index
    %1133 = vector.load %arg6[%c12_897, %c0_898, %c12_899, %c0_900] : memref<14x1x22x16xf32, #tpu.memory_space<vmem>>, vector<1x1x8x16xf32>
    %1134 = vector.shape_cast %1133 : vector<1x1x8x16xf32> to vector<1x8x16xf32>
    %1135 = vector.broadcast %173 : f32 to vector<1x8x16xf32>
    %1136 = arith.mulf %1135, %1134 : vector<1x8x16xf32>
    %1137 = arith.addf %1132, %1136 : vector<1x8x16xf32>
    %c12_901 = arith.constant 12 : index
    %c0_902 = arith.constant 0 : index
    %c13_903 = arith.constant 13 : index
    %c0_904 = arith.constant 0 : index
    %1138 = vector.load %arg6[%c12_901, %c0_902, %c13_903, %c0_904] : memref<14x1x22x16xf32, #tpu.memory_space<vmem>>, vector<1x1x8x16xf32>
    %1139 = vector.shape_cast %1138 : vector<1x1x8x16xf32> to vector<1x8x16xf32>
    %1140 = vector.broadcast %180 : f32 to vector<1x8x16xf32>
    %1141 = arith.mulf %1140, %1139 : vector<1x8x16xf32>
    %1142 = arith.addf %1137, %1141 : vector<1x8x16xf32>
    %c12_905 = arith.constant 12 : index
    %c0_906 = arith.constant 0 : index
    %c14_907 = arith.constant 14 : index
    %c0_908 = arith.constant 0 : index
    %1143 = vector.load %arg6[%c12_905, %c0_906, %c14_907, %c0_908] : memref<14x1x22x16xf32, #tpu.memory_space<vmem>>, vector<1x1x8x16xf32>
    %1144 = vector.shape_cast %1143 : vector<1x1x8x16xf32> to vector<1x8x16xf32>
    %1145 = vector.broadcast %187 : f32 to vector<1x8x16xf32>
    %1146 = arith.mulf %1145, %1144 : vector<1x8x16xf32>
    %1147 = arith.addf %1142, %1146 : vector<1x8x16xf32>
    %c13_909 = arith.constant 13 : index
    %c0_910 = arith.constant 0 : index
    %c8_911 = arith.constant 8 : index
    %c0_912 = arith.constant 0 : index
    %1148 = vector.load %arg6[%c13_909, %c0_910, %c8_911, %c0_912] : memref<14x1x22x16xf32, #tpu.memory_space<vmem>>, vector<1x1x8x16xf32>
    %1149 = vector.shape_cast %1148 : vector<1x1x8x16xf32> to vector<1x8x16xf32>
    %1150 = vector.broadcast %146 : f32 to vector<1x8x16xf32>
    %1151 = arith.mulf %1150, %1149 : vector<1x8x16xf32>
    %1152 = arith.addf %1147, %1151 : vector<1x8x16xf32>
    %c13_913 = arith.constant 13 : index
    %c0_914 = arith.constant 0 : index
    %c9_915 = arith.constant 9 : index
    %c0_916 = arith.constant 0 : index
    %1153 = vector.load %arg6[%c13_913, %c0_914, %c9_915, %c0_916] : memref<14x1x22x16xf32, #tpu.memory_space<vmem>>, vector<1x1x8x16xf32>
    %1154 = vector.shape_cast %1153 : vector<1x1x8x16xf32> to vector<1x8x16xf32>
    %1155 = vector.broadcast %153 : f32 to vector<1x8x16xf32>
    %1156 = arith.mulf %1155, %1154 : vector<1x8x16xf32>
    %1157 = arith.addf %1152, %1156 : vector<1x8x16xf32>
    %c13_917 = arith.constant 13 : index
    %c0_918 = arith.constant 0 : index
    %c10_919 = arith.constant 10 : index
    %c0_920 = arith.constant 0 : index
    %1158 = vector.load %arg6[%c13_917, %c0_918, %c10_919, %c0_920] : memref<14x1x22x16xf32, #tpu.memory_space<vmem>>, vector<1x1x8x16xf32>
    %1159 = vector.shape_cast %1158 : vector<1x1x8x16xf32> to vector<1x8x16xf32>
    %1160 = vector.broadcast %160 : f32 to vector<1x8x16xf32>
    %1161 = arith.mulf %1160, %1159 : vector<1x8x16xf32>
    %1162 = arith.addf %1157, %1161 : vector<1x8x16xf32>
    %c13_921 = arith.constant 13 : index
    %c0_922 = arith.constant 0 : index
    %c11_923 = arith.constant 11 : index
    %c0_924 = arith.constant 0 : index
    %1163 = vector.load %arg6[%c13_921, %c0_922, %c11_923, %c0_924] : memref<14x1x22x16xf32, #tpu.memory_space<vmem>>, vector<1x1x8x16xf32>
    %1164 = vector.shape_cast %1163 : vector<1x1x8x16xf32> to vector<1x8x16xf32>
    %1165 = vector.broadcast %167 : f32 to vector<1x8x16xf32>
    %1166 = arith.mulf %1165, %1164 : vector<1x8x16xf32>
    %1167 = arith.addf %1162, %1166 : vector<1x8x16xf32>
    %c13_925 = arith.constant 13 : index
    %c0_926 = arith.constant 0 : index
    %c12_927 = arith.constant 12 : index
    %c0_928 = arith.constant 0 : index
    %1168 = vector.load %arg6[%c13_925, %c0_926, %c12_927, %c0_928] : memref<14x1x22x16xf32, #tpu.memory_space<vmem>>, vector<1x1x8x16xf32>
    %1169 = vector.shape_cast %1168 : vector<1x1x8x16xf32> to vector<1x8x16xf32>
    %1170 = vector.broadcast %174 : f32 to vector<1x8x16xf32>
    %1171 = arith.mulf %1170, %1169 : vector<1x8x16xf32>
    %1172 = arith.addf %1167, %1171 : vector<1x8x16xf32>
    %c13_929 = arith.constant 13 : index
    %c0_930 = arith.constant 0 : index
    %c13_931 = arith.constant 13 : index
    %c0_932 = arith.constant 0 : index
    %1173 = vector.load %arg6[%c13_929, %c0_930, %c13_931, %c0_932] : memref<14x1x22x16xf32, #tpu.memory_space<vmem>>, vector<1x1x8x16xf32>
    %1174 = vector.shape_cast %1173 : vector<1x1x8x16xf32> to vector<1x8x16xf32>
    %1175 = vector.broadcast %181 : f32 to vector<1x8x16xf32>
    %1176 = arith.mulf %1175, %1174 : vector<1x8x16xf32>
    %1177 = arith.addf %1172, %1176 : vector<1x8x16xf32>
    %c13_933 = arith.constant 13 : index
    %c0_934 = arith.constant 0 : index
    %c14_935 = arith.constant 14 : index
    %c0_936 = arith.constant 0 : index
    %1178 = vector.load %arg6[%c13_933, %c0_934, %c14_935, %c0_936] : memref<14x1x22x16xf32, #tpu.memory_space<vmem>>, vector<1x1x8x16xf32>
    %1179 = vector.shape_cast %1178 : vector<1x1x8x16xf32> to vector<1x8x16xf32>
    %1180 = vector.broadcast %188 : f32 to vector<1x8x16xf32>
    %1181 = arith.mulf %1180, %1179 : vector<1x8x16xf32>
    %1182 = arith.addf %1177, %1181 : vector<1x8x16xf32>
    %1183 = vector.broadcast %189 : f32 to vector<1x8x16xf32>
    %1184 = arith.mulf %1182, %1183 : vector<1x8x16xf32>
    %1185 = vector.broadcast %190 : f32 to vector<1x8x16xf32>
    %1186 = arith.addf %1184, %1185 : vector<1x8x16xf32>
    %1187 = arith.negf %1186 : vector<1x8x16xf32>
    %1188 = math.exp %1187 : vector<1x8x16xf32>
    %cst_937 = arith.constant 1.000000e+00 : f32
    %1189 = vector.broadcast %cst_937 : f32 to vector<1x8x16xf32>
    %1190 = arith.addf %1189, %1188 : vector<1x8x16xf32>
    %1191 = arith.divf %1189, %1190 : vector<1x8x16xf32>
    %c0_938 = arith.constant 0 : index
    %c8_939 = arith.constant 8 : index
    %c0_940 = arith.constant 0 : index
    %1192 = vector.load %arg7[%c0_938, %c8_939, %c0_940] : memref<1x16x16xf32, #tpu.memory_space<vmem>>, vector<1x8x16xf32>
    tpu.vector_store %arg7[%c0_938, %c8_939, %c0_940], %1191 {strides = array<i32>} : memref<1x16x16xf32, #tpu.memory_space<vmem>>, vector<1x8x16xf32>,
    %c0_941 = arith.constant 0 : index
    %c0_942 = arith.constant 0 : index
    %c0_943 = arith.constant 0 : index
    %1193 = vector.load %arg7[%c0_941, %c0_942, %c0_943] : memref<1x16x16xf32, #tpu.memory_space<vmem>>, vector<1x16x16xf32>
    %1194 = vector.shape_cast %1193 : vector<1x16x16xf32> to vector<1x1x256xf32>
    %c0_944 = arith.constant 0 : index
    %c0_945 = arith.constant 0 : index
    %c0_946 = arith.constant 0 : index
    %1195 = vector.load %arg3[%c0_944, %c0_945, %c0_946] : memref<1x4x256xf32, #tpu.memory_space<vmem>>, vector<1x4x256xf32>
    %1196 = vector.broadcast %1194 : vector<1x1x256xf32> to vector<1x4x256xf32>
    %1197 = arith.mulf %1195, %1196 : vector<1x4x256xf32>
    %c0_947 = arith.constant 0 : index
    %c0_948 = arith.constant 0 : index
    %c0_949 = arith.constant 0 : index
    %1198 = vector.load %arg4[%c0_947, %c0_948, %c0_949] : memref<1x4x256xf32, #tpu.memory_space<vmem>>, vector<1x4x256xf32>
    tpu.vector_store %arg4[%c0_947, %c0_948, %c0_949], %1197 {strides = array<i32>} : memref<1x4x256xf32, #tpu.memory_space<vmem>>, vector<1x4x256xf32>,
    return
  }
  func.func @transform_0(%arg0: i32) -> i32 {
    %c0_i32 = arith.constant 0 : i32
    %c0_i32_0 = arith.constant 0 : i32
    return %c0_i32 : i32
  }
  func.func @transform_1(%arg0: i32) -> i32 {
    %c0_i32 = arith.constant 0 : i32
    %c0_i32_0 = arith.constant 0 : i32
    return %c0_i32 : i32
  }
  func.func @transform_2(%arg0: i32) -> (i32, i32, i32) {
    %c0_i32 = arith.constant 0 : i32
    %c0_i32_0 = arith.constant 0 : i32
    %c0_i32_1 = arith.constant 0 : i32
    return %arg0, %c0_i32, %c0_i32_0 : i32, i32, i32
  }
  func.func @transform_3(%arg0: i32) -> (i32, i32, i32) {
    %c0_i32 = arith.constant 0 : i32
    %c0_i32_0 = arith.constant 0 : i32
    %c0_i32_1 = arith.constant 0 : i32
    return %arg0, %c0_i32, %c0_i32_0 : i32, i32, i32
  }
}

</mosaic_0001>

<bundles_post_ra>
// kernel: tpu_custom_call.1
= control target key start
LH: loop header
LB: loop body
LE: loop exit
PB: predicated region body
PF: predicated region fallthrough
CT: control target
= control target key end

     0   :  { %s3291_s0 = inlined_call_operand.hbm [shape: f32[98], index: 0, kind: input, shape index: {}]   ;;  %s3292_s1 = inlined_call_operand.hbm [shape: f32[2], index: 1, kind: input, shape index: {}]   ;;  %s3293_s2 = inlined_call_operand.hbm [shape: f32[2,4,256], index: 2, kind: input, shape index: {}]   ;;  %s3294_s3 = inlined_call_operand.hbm [shape: f32[2,4,256], index: 3, kind: output, shape index: {}]  }
   0x1   :  { %3310 = sst [smem:[#allocation18_spill]] %s3291_s0 }
   0x2   :  { %3311 = sst [smem:[#allocation19_spill]] %s3292_s1 }
   0x3   :  { %3312 = sst [smem:[#allocation20_spill]] %s3293_s2 }
   0x4   :  { %8 = vsyncpa [#allocation8], 0 }
   0x5   :  { %9 = vsyncpa [#allocation10], 0 }
   0x6   :  { %10 = vsyncpa [#allocation6], 0 }
   0x7   :  { %12 = vsyncpa [#allocation6 + $0x1], 0 }
   0x8   :  { %13 = vsyncpa [#allocation7], 0 }
   0x9   :  { %15 = vsyncpa [#allocation7 + $0x1], 0  ;;  %s2272_s12 = smov 0   ;;  %s2274_s13 = smov 0  }
   0xa   :  { %s2276_s14 = smov 0   ;;  %s2278_s15 = smov 0  }
   0xb LB: > { %s2293_s16 = sadd.s32 4294967295, %s2231_s15   ;;  %s1885_s17 = sadd.s32 4294967294, %s2231_s15   ;;  %s2231_s15 = sphi %s2278_s15, %s3335_s15   ;;  %s2227_s14 = sphi %s2276_s14, %s3334_s14   ;;  %s2223_s13 = sphi %s2274_s13, %s3333_s13   ;;  %s2219_s12 = sphi %s2272_s12, %s3332_s12  }
   0xc   : > { %p83_p0 = scmp.ne.s32.totalorder %s2223_s13, %s2219_s12  ;;  %p84_p1 = scmp.eq.s32.totalorder %s2293_s16, 0 }
   0xd   : > { %p107_p2 = scmp.eq.s32.totalorder %s2293_s16, 1  ;;  %p113_p3 = scmp.eq.s32.totalorder %s1885_s17, 1 }
   0xe   : > { %p2302_p4 = por %p84_p1, %p83_p0  ;;  %p1886_p5 = scmp.ge.s32.totalorder %s2231_s15, 1 }
   0xf   : > { %p2307_p6 = por %p113_p3, %p83_p0  ;;  %p120_p7 = scmp.lt.s32.totalorder %s2231_s15, 3 }
  0x10   : > { %s3315_s0 = sld [smem:[#allocation18_spill]]  ;;  %s2328_s27 = sadd.s32 1, %s2231_s15  }
  0x11   : > { %p2315_p8 = pnand %p1886_p5, %p120_p7  ;;  %s3317_s1 = sld [smem:[#allocation19_spill]] }
  0x12   : > { %s67_s28 = ssub.s32 %s2231_s15, %s2328_s27  ;;  %s2233_s29 = smov [#allocation5]  }
  0x13   : > { %p2017_p10 = pneg %p2315_p8  ;;  %s2234_s30 = smov [#allocation9]  }
  0x14   : > { %p68_p12 = scmp.eq.s32.totalorder %s67_s28, 0  ;;  %s70_s4 = sadd.s32 1, %s2227_s14 }
  0x15   : > { %p2018_p11 = pnand %p2017_p10, %p84_p1  ;;  %p77_p13 = scmp.ne.s32.totalorder %s2227_s14, %s2223_s13 }
  0x16   : > { %s132_s22 = sshll.u32 %s3315_s0, 4  ;;  %p78_p0 = scmp.eq.s32.totalorder %s2231_s15, 0  ;;  %s133_s22 = int_to_ptr.hbm [resolvable:$true] %s132_s22 }
  0x17   : > { %s142_s26 = sshll.u32 %s3317_s1, 4  ;;  %p2341_p5 = por %p107_p2, %p77_p13  ;;  %s143_s26 = int_to_ptr.hbm [resolvable:$true] %s142_s26 }
  0x18   : > { %2020 = dma.hbm_to_smem (!%p2018_p11), %s133_s22, 16, %s2233_s29, [#allocation8]  }
  0x19   : > { %2023 = dma.hbm_to_smem (!%p2018_p11), %s143_s26, 16, %s2234_s30, [#allocation10]  }
  0x1a   : > { %s2337_s5 = scalar_select %p68_p12, %s2227_s14, %s70_s4  }
  0x1b   : > { %p79_p3 = por %p78_p0, %p77_p13  ;;  %p2034_p7 = scmp.lt.s32.totalorder %s2231_s15, 2 }
  0x1c   : > { %3318 = sst [smem:[#allocation17_spill]] %s2337_s5  ;;  %s153_s7 = sand.u32 1, %s2227_s14  }
  0x1d   : > { %s1890_s8 = sshll.u32 %s153_s7, 3  ;;  %s2003_s9 = sshll.u32 %s2231_s15, 3 }
  0x1e   : > { %s3320_s2 = sld [smem:[#allocation20_spill]]  ;;  %s157_s20 = scalar_lea.vmem [#allocation11], %s1890_s8 }
  0x1f   : > { %s166_s21 = sshll.u32 %s157_s20, 4  ;;  %p2351_p10 = pnand %p2034_p7, %p79_p3  ;;  %s167_s21 = int_to_ptr.vmem [resolvable:$true] %s166_s21 }
  0x20   : > { %s154_s25 = scalar_lea.sflag [#allocation6], %s153_s7 }
  0x21   : > { %p2131_p11 = pneg %p2351_p10 }
  0x24   : > { %s162_s17 = scalar_lea.hbm %s3320_s2, %s2003_s9  ;;  %s2134_s4 = scalar_lea.hbm %s3320_s2, 16 }
  0x25   : > { %s164_s22 = sshll.u32 %s162_s17, 4  ;;  %s165_s22 = int_to_ptr.hbm [resolvable:$true] %s164_s22 }
  0x26   : > { %s2127_s26 = sshra.s32 %s165_s22, 4  ;;  %s2128_s26 = int_to_ptr.hbm [resolvable:$true] %s2127_s26 }
  0x27   : > { %s2129_s28 = scalar_lea.hbm %s2128_s26, 8  ;;  %p2135_p0 = scmp.lt.s32.totalorder %s2128_s26, %s3320_s2 }
  0x28   : > { %p2130_p2 = scmp.ne.s32.totalorder %s2128_s26, %s2129_s28  ;;  %p2136_p3 = scmp.lt.s32.totalorder %s2134_s4, %s2129_s28 }
  0x2a   : > { %p2132_p12 = pnand %p2131_p11, %p2130_p2  ;;  %p2137_p7 = por %p2136_p3, %p2135_p0 }
  0x2c   : > { %p2133_p13 = pneg %p2132_p12 }
  0x2e   : > { %p2138_p9 = pnand %p2137_p7, %p2133_p13 }
  0x30   : > { %2141 = shalt.err (!%p2138_p9)
}
  0x31   : > { %2027 = dma.hbm_to_vmem [thread:$0]  (!%p2351_p10), %s165_s22, 128, %s167_s21, %s154_s25  }
  0x32   : > { %175 = sbr.rel (%p2315_p8) target bundleno = 1031 (0x407), region = 32 }
  0x37   : > { %2202 = dma.done.wait (%p84_p1), [#allocation8], 16  }
  0x38   : > { %2204 = vsyncadd (%p84_p1), [#allocation8], 4294967280 }
  0x39   : > { %2206 = dma.done.wait (%p84_p1), [#allocation10], 16  }
  0x3a   : > { %2208 = vsyncadd (%p84_p1), [#allocation10], 4294967280  ;;  %s2376_s7 = sand.u32 1, %s2223_s13  }
  0x3b   : > { %s3295_s23 = sshll.u32 %s2376_s7, 3  ;;  %s188_s10 = scalar_lea.sflag [#allocation6], %s2376_s7 }
  0x3c   : > { %s2382_s11 = scalar_lea.vmem [#allocation11], %s3295_s23 }
  0x3d   : > { %2210 = dma.done.wait (%p2302_p4), %s188_s10, 128  }
  0x3e   : > { %2212 = vsyncadd (%p2302_p4), %s188_s10, 4294967168 }
  0x3f   : > { %197 = sfence }
  0x40   : > { %v216_v0 = vld [vmem:[%s2382_s11] sm:$0xff]  ;;  %vm223_vm0 = vcmask 1043456   ;;  %s3300_s18 = smov 80   ;;  %s3308_s17 = smov 16   ;;  %v2242_v28 = vmov 1983009808  }
  0x41   : > { %218 = vst [vmem:[#allocation1] ss:$2 sm:$0xff] %v216_v0  ;;  %s3306_s20 = smov 32   ;;  %s3302_s21 = smov 48   ;;  %v322_v29 = vunpack.c.l.s4 %v2242_v28  ;;  %vm319_vm1 = vcmask 1047556   ;;  %vm259_vm2 = vcmask 174080  }
  0x42   : > { %s3298_s22 = smov 112   ;;  %s3304_s24 = smov 64   ;;  %v2243_v43 = vmov 1934713408   ;;  %vm264_vm3 = vcmask 23552   ;;  %vm269_vm4 = vcmask 179352  }
  0x43   : > { %s3296_s25 = smov 96   ;;  %v2426_v40 = vunpack.c.0.s8 %v322_v29  ;;  %v346_v44 = vunpack.c.l.s4 %v2243_v43  ;;  %s2244_s26 = smov 3   ;;  %vm403_vm5 = vcmask 154648   ;;  %vm540_vm6 = vcmask 130048  }
  0x44   : > { %s2246_s28 = smov 127   ;;  %s2247_s29 = smov 126   ;;  %vm543_vm7 = vcmask 128000  }
  0x45   : > { %v2435_v59 = vunpack.c.0.s8 %v346_v44  ;;  %s2248_s30 = smov 125   ;;  %s2249_s4 = smov 124  }
  0x46   : > { %s2250_s8 = smov 123   ;;  %s2251_s9 = smov 122  }
  0x47   : > { %s2575_s10 = sld [smem:[#allocation5 + $0x7]] }
  0x48   : > { %v219_v1 = vld.sshfl [vmem:[#allocation1] sm:$0xff pattern:$0x75316420]  ;;  %v220_v2 = vld.sshfl [vmem:[#allocation1 + $0x8] sm:$0xff pattern:$0x75316420] }
  0x49   : > { %v224_v3 = vsel %vm223_vm0, %v219_v1, -inf  ;;  %v231_v4 = vsel %vm223_vm0, %v220_v2, -inf  ;;  %238 = vst [vmem:[#allocation1] ss:$2 sm:$0xff] %v216_v0  ;;  %s2580_s23 = sld [smem:[#allocation5]] }
  0x4a   : > { %v225_v5 = vrot.slane %v224_v3, 4  ;;  %v232_v6 = vrot.slane %v231_v4, 4  ;;  %s2950_s0 = sld [smem:[#allocation5 + $0x5d]] }
  0x4b   : > { %s2955_s1 = sld [smem:[#allocation5 + $0x34]] }
  0x4c   : > { %v226_v7 = vmax.f32 %v224_v3, %v225_v5  ;;  %v233_v8 = vmax.f32 %v231_v4, %v232_v6  ;;  %s2979_s2 = sld [smem:[#allocation5 + $0x49]] }
  0x4d   : > { %s3006_s5 = sld [smem:[#allocation5 + $0x35]] }
  0x4e   : > { %v227_v9 = vrot.slane %v226_v7, 2  ;;  %v234_v10 = vrot.slane %v233_v8, 2 }
  0x50   : > { %v228_v11 = vmax.f32 %v226_v7, %v227_v9  ;;  %v235_v13 = vmax.f32 %v233_v8, %v234_v10  ;;  %v239_v23 = vld.sshfl [vmem:[#allocation1] sm:$0xff pattern:$0x75316420]  ;;  %v240_v36 = vld.sshfl [vmem:[#allocation1 + $0x8] sm:$0xff pattern:$0x75316420] }
  0x51   : > { %v243_v24 = vsel %vm223_vm0, %v239_v23, 0.0  ;;  %v250_v39 = vsel %vm223_vm0, %v240_v36, 0.0  ;;  %v2245_v23 = vmov 0.0  }
  0x52   : > { %v229_v12 = vrot.slane %v228_v11, 1  ;;  %v236_v15 = vrot.slane %v235_v13, 1  ;;  %v244_v25 = vrot.slane %v243_v24, 4  ;;  %v251_v41 = vrot.slane %v250_v39, 4  ;;  %260 = vst.msk [vmem:[#allocation2] sm:$0x7] %vm259_vm2, %v2245_v23 }
  0x53   : > { %265 = vst.msk [vmem:[#allocation2 + $0x3] sm:$0xff] %vm264_vm3, %v2245_v23 }
  0x54   : > { %v2391_v14 = vmax.f32 %v228_v11, %v229_v12  ;;  %v2399_v16 = vmax.f32 %v235_v13, %v236_v15  ;;  %v245_v26 = vadd.f32 %v244_v25, %v243_v24  ;;  %v252_v47 = vadd.f32 %v251_v41, %v250_v39  ;;  %270 = vst.msk [vmem:[#allocation2 + $0x3] sm:$0xff] %vm269_vm4, %v2245_v23 }
  0x55   : > { %261 = vst.msk [vmem:[#allocation2 + $0x18] sm:$0x7] %vm259_vm2, %v2245_v23 }
  0x56   : > { %281 = vrot.lane.b32.xlu1 %v2391_v14, %s3300_s18  ;;  %293 = vrot.lane.b32.xlu0 %v2391_v14, %s3308_s17  ;;  %v246_v27 = vrot.slane %v245_v26, 2  ;;  %v253_v55 = vrot.slane %v252_v47, 2  ;;  %262 = vst.msk [vmem:[#allocation2 + $0x13] sm:$0x7] %vm259_vm2, %v2245_v23 }
  0x57   : > { %290 = vrot.lane.b32.xlu2 %v2391_v14, %s3306_s20  ;;  %263 = vst.msk [vmem:[#allocation2 + $0x2b] sm:$0x7] %vm259_vm2, %v2245_v23  ;;  %vm1747_vm2 = vcmask 261120  }
  0x58   : > { %v247_v34 = vadd.f32 %v246_v27, %v245_v26  ;;  %v254_v63 = vadd.f32 %v253_v55, %v252_v47  ;;  %266 = vst.msk [vmem:[#allocation2 + $0xb] sm:$0xff] %vm264_vm3, %v2245_v23 }
  0x59   : > { %267 = vst.msk [vmem:[#allocation2 + $0x1b] sm:$0xff] %vm264_vm3, %v2245_v23 }
  0x5a   : > { %v248_v38 = vrot.slane %v247_v34, 1  ;;  %v255_v7 = vrot.slane %v254_v63, 1  ;;  %268 = vst.msk [vmem:[#allocation2 + $0x23] sm:$0xff] %vm264_vm3, %v2245_v23  ;;  %vm1749_vm3 = vcmask 392192  }
  0x5b   : > { %271 = vst.msk [vmem:[#allocation2 + $0xb] sm:$0xff] %vm269_vm4, %v2245_v23 }
  0x5c   : > { %v249_v45 = vadd.f32 %v248_v38, %v247_v34  ;;  %272 = vst.msk [vmem:[#allocation2 + $0x1b] sm:$0xff] %vm269_vm4, %v2245_v23 }
  0x5d   : > { %273 = vst.msk [vmem:[#allocation2 + $0x23] sm:$0xff] %vm269_vm4, %v2245_v23  ;;  %vm1753_vm4 = vcmask 654336  }
  0x5e   : > { %287 = vrot.lane.b32.xlu1 %v2391_v14, %s3302_s21  ;;  %315 = vrot.lane.b32.xlu0 %v2399_v16, %s3308_s17  ;;  %v2430_v50 = vmul.f32 0.25, %v249_v45 }
  0x5f   : > { %303 = vrot.lane.b32.xlu2 %v2399_v16, %s3300_s18 }
  0x66   : > { %312 = vrot.lane.b32.xlu1 %v2399_v16, %s3306_s20  ;;  %309 = vrot.lane.b32.xlu0 %v2399_v16, %s3302_s21 }
  0x67   : > { %275 = vrot.lane.b32.xlu2 %v2391_v14, %s3298_s22 }
  0x6e   : > { %284 = vrot.lane.b32.xlu1 %v2391_v14, %s3304_s24  ;;  %278 = vrot.lane.b32.xlu0 %v2391_v14, %s3296_s25 }
  0x6f   : > { %297 = vrot.lane.b32.xlu2 %v2399_v16, %s3298_s22 }
  0x76   : > { %306 = vrot.lane.b32.xlu1 %v2399_v16, %s3304_s24  ;;  %300 = vrot.lane.b32.xlu0 %v2399_v16, %s3296_s25 }
  0x7e   : > { %425 = vrot.lane.b32.xlu1 %v2430_v50, %s3308_s17 }
  0x86   : > { %413 = vrot.lane.b32.xlu1 %v2430_v50, %s3300_s18 }
  0xb1   : > { %v291_v17 = vpop.permute.xlu2 %290 }
  0xb2   : > { %v331_v48 = vrot.slane %v291_v17, 4 }
  0xb9   : > { %v304_v20 = vpop.permute.xlu2 %303 }
  0xba   : > { %v363_v51 = vrot.slane %v304_v20, 4  ;;  %v256_v20 = vadd.f32 %v255_v7, %v254_v63 }
  0xbc   : > { %v2463_v28 = vmul.f32 0.25, %v256_v20 }
  0xbe   : > { %435 = vrot.lane.b32.xlu1 %v2463_v28, %s3300_s18  ;;  %s2606_s18 = sld [smem:[#allocation5 + $0x8]] }
  0xc1   : > { %v276_v35 = vpop.permute.xlu2 %275 }
  0xc6   : > { %410 = vrot.lane.b32.xlu1 %v2430_v50, %s3296_s25 }
  0xc8   : > { %v282_v18 = vpop.permute.xlu1 %281  ;;  %v294_v19 = vpop.permute.xlu0 %293 }
  0xc9   : > { %v325_v32 = vrot.slane %v282_v18, 4  ;;  %v337_v33 = vrot.slane %v294_v19, 4  ;;  %v298_v61 = vpop.permute.xlu2 %297 }
  0xca   : > { %v364_v5 = vsel %vm319_vm1, %v363_v51, %v298_v61 }
  0xcb   : > { %v326_v42 = vsel %vm319_vm1, %v325_v32, %v276_v35  ;;  %v368_v13 = vperm.slane %v364_v5, %v2426_v40 }
  0xcc   : > { %v330_v52 = vperm.slane %v326_v42, %v2426_v40 }
  0xcd   : > { %v381_v24 = vrot.slane %v368_v13, 4 }
  0xce   : > { %v343_v1 = vrot.slane %v330_v52, 4 }
  0xd0   : > { %v288_v21 = vpop.permute.xlu1 %287  ;;  %v316_v22 = vpop.permute.xlu0 %315 }
  0xd1   : > { %v338_v37 = vsel %vm319_vm1, %v337_v33, %v288_v21  ;;  %v375_v49 = vrot.slane %v316_v22, 4 }
  0xd2   : > { %v342_v46 = vperm.slane %v338_v37, %v2426_v40 }
  0xd4   : > { %v349_v60 = vrot.slane %v342_v46, 4 }
  0xd8   : > { %v313_v30 = vpop.permute.xlu1 %312  ;;  %v310_v31 = vpop.permute.xlu0 %309 }
  0xd9   : > { %v376_v56 = vsel %vm319_vm1, %v375_v49, %v310_v31  ;;  %v369_v9 = vrot.slane %v313_v30, 4 }
  0xda   : > { %v380_v2 = vperm.slane %v376_v56, %v2426_v40 }
  0xdc   : > { %v387_v12 = vrot.slane %v380_v2, 4 }
  0xe0   : > { %v285_v53 = vpop.permute.xlu1 %284  ;;  %v279_v54 = vpop.permute.xlu0 %278 }
  0xe1   : > { %v332_v57 = vsel %vm319_vm1, %v331_v48, %v285_v53  ;;  %v318_v58 = vrot.slane %v279_v54, 4 }
  0xe2   : > { %v336_v62 = vperm.slane %v332_v57, %v2426_v40 }
  0xe3   : > { %v320_v0 = vsel %vm319_vm1, %v318_v58, %v2391_v14 }
  0xe4   : > { %v350_v3 = vsel %vm319_vm1, %v349_v60, %v336_v62  ;;  %v324_v4 = vperm.slane %v320_v0, %v2426_v40 }
  0xe5   : > { %v354_v6 = vperm.slane %v350_v3, %v2435_v59 }
  0xe6   : > { %v344_v8 = vsel %vm319_vm1, %v343_v1, %v324_v4 }
  0xe7   : > { %v348_v10 = vperm.slane %v344_v8, %v2435_v59  ;;  %v355_v11 = vrot.slane %v354_v6, 4 }
  0xe8   : > { %v307_v14 = vpop.permute.xlu1 %306  ;;  %v301_v15 = vpop.permute.xlu0 %300 }
  0xe9   : > { %v370_v17 = vsel %vm319_vm1, %v369_v9, %v307_v14  ;;  %v357_v18 = vrot.slane %v301_v15, 4  ;;  %v356_v19 = vsel %vm319_vm1, %v355_v11, %v348_v10 }
  0xea   : > { %v374_v21 = vperm.slane %v370_v17, %v2426_v40  ;;  %397 = vrot.lane.b32.xlu2 %v356_v19, %s2244_s26 }
  0xeb   : > { %v358_v22 = vsel %vm319_vm1, %v357_v18, %v2399_v16 }
  0xec   : > { %v388_v25 = vsel %vm319_vm1, %v387_v12, %v374_v21  ;;  %v362_v26 = vperm.slane %v358_v22, %v2426_v40 }
  0xed   : > { %v392_v27 = vperm.slane %v388_v25, %v2435_v59 }
  0xee   : > { %v382_v29 = vsel %vm319_vm1, %v381_v24, %v362_v26 }
  0xef   : > { %v386_v16 = vperm.slane %v382_v29, %v2435_v59  ;;  %v393_v30 = vrot.slane %v392_v27, 4 }
  0xf0   : > { %v426_v35 = vpop.permute.xlu1 %425 }
  0xf1   : > { %v394_v31 = vsel %vm319_vm1, %v393_v30, %v386_v16  ;;  %v468_v49 = vrot.slane %v426_v35, 4 }
  0xf2   : > { %399 = vrot.lane.b32.xlu0 %v394_v31, %s2244_s26  ;;  %447 = vrot.lane.b32.xlu2 %v2463_v28, %s3308_s17  ;;  %s2938_s17 = sld [smem:[#allocation5 + $0x4f]] }
  0xf8   : > { %v414_v42 = vpop.permute.xlu1 %413 }
  0xf9   : > { %v456_v52 = vrot.slane %v414_v42, 4 }
  0xfa   : > { %422 = vrot.lane.b32.xlu0 %v2430_v50, %s3306_s20  ;;  %419 = vrot.lane.b32.xlu2 %v2430_v50, %s3302_s21 }
 0x102   : > { %444 = vrot.lane.b32.xlu0 %v2463_v28, %s3306_s20  ;;  %441 = vrot.lane.b32.xlu2 %v2463_v28, %s3302_s21  ;;  %s2638_s21 = sld [smem:[#allocation5 + $0x24]] }
 0x103   : > { %s2644_s20 = sld [smem:[#allocation5 + $0x2]] }
 0x10a   : > { %407 = vrot.lane.b32.xlu0 %v2430_v50, %s3298_s22  ;;  %416 = vrot.lane.b32.xlu2 %v2430_v50, %s3304_s24 }
 0x130   : > { %v2520_v47 = vpop.permute.xlu1 %435 }
 0x131   : > { %v494_v30 = vrot.slane %v2520_v47, 4 }
 0x138   : > { %v411_v55 = vpop.permute.xlu1 %410 }
 0x139   : > { %v450_v60 = vrot.slane %v411_v55, 4 }
 0x13b   : > { %v451_v3 = vsel %vm319_vm1, %v450_v60, %v2430_v50 }
 0x13c   : > { %v455_v4 = vperm.slane %v451_v3, %v2426_v40 }
 0x144   : > { %v398_v32 = vpop.permute.xlu2 %397 }
 0x145   : > { %404 = vst.msk [vmem:[#allocation2 + $0x3] sm:$0xff] %vm403_vm5, %v398_v32 }
 0x14c   : > { %v2498_v33 = vld [vmem:[#allocation2] sm:$0xff]  ;;  %v448_v34 = vpop.permute.xlu2 %447 }
 0x14d   : > { %541 = vst.msk [vmem:[#allocation3] sm:$0xff] %vm540_vm6, %v2498_v33  ;;  %551 = vrot.lane.b32.xlu1 %v2498_v33, %s2246_s28  ;;  %v506_v38 = vrot.slane %v448_v34, 4 }
 0x154   : > { %v420_v36 = vpop.permute.xlu2 %419 }
 0x155   : > { %432 = vrot.lane.b32.xlu1 %v2463_v28, %s3296_s25  ;;  %v469_v53 = vsel %vm319_vm1, %v468_v49, %v420_v36  ;;  %s2584_s25 = sld [smem:[#allocation5 + $0xe]]  ;;  %v881_v49 = vstv %s2580_s23 }
 0x156   : > { %v473_v58 = vperm.slane %v469_v53, %v2426_v40  ;;  %s2597_s23 = sld [smem:[#allocation5 + $0x23]] }
 0x158   : > { %v480_v63 = vrot.slane %v473_v58, 4 }
 0x15b   : > { %v889_v55 = vstv %s2584_s25  ;;  %s2604_s25 = sld [smem:[#allocation5 + $0x1]] }
 0x15c   : > { %v442_v39 = vpop.permute.xlu2 %441 }
 0x15d   : > { %570 = vrot.lane.b32.xlu1 %v2498_v33, %s2247_s29  ;;  %v2512_v41 = vsel %vm319_vm1, %v506_v38, %v442_v39 }
 0x15e   : > { %v511_v17 = vperm.slane %v2512_v41, %v2426_v40 }
 0x160   : > { %v518_v21 = vrot.slane %v511_v17, 4 }
 0x164   : > { %v400_v37 = vpop.permute.xlu0 %399  ;;  %v417_v56 = vpop.permute.xlu2 %416 }
 0x165   : > { %405 = vst.msk [vmem:[#allocation2 + $0xb] sm:$0xff] %vm403_vm5, %v400_v37  ;;  %589 = vrot.lane.b32.xlu1 %v2498_v33, %s2248_s30 }
 0x16c   : > { %v538_v43 = vld [vmem:[#allocation2 + $0x8] sm:$0xff]  ;;  %v539_v44 = vld [vmem:[#allocation2 + $0x10] sm:$0x3f]  ;;  %v423_v46 = vpop.permute.xlu0 %422 }
 0x16d   : > { %v547_v45 = vld [vmem:[#allocation2 + $0x10] sm:$0x3f]  ;;  %542 = vst.msk [vmem:[#allocation3 + $0x8] sm:$0xff] %vm540_vm6, %v538_v43  ;;  %608 = vrot.lane.b32.xlu1 %v2498_v33, %s2249_s4  ;;  %553 = vrot.lane.b32.xlu0 %v538_v43, %s2246_s28  ;;  %v462_v54 = vrot.slane %v423_v46, 4  ;;  %v885_v46 = vstv %s2575_s10  ;;  %s2601_s10 = sld [smem:[#allocation5 + $0x2a]] }
 0x16e   : > { %555 = vrot.lane.b32.xlu2 %v547_v45, %s2246_s28  ;;  %544 = vst.msk [vmem:[#allocation3 + $0x10] sm:$0x3f] %vm543_vm7, %v539_v44  ;;  %v566_v51 = vld [vmem:[#allocation2 + $0x10] sm:$0x3f] }
 0x16f   : > { %v463_v61 = vsel %vm319_vm1, %v462_v54, %v417_v56  ;;  %v585_v0 = vld [vmem:[#allocation2 + $0x10] sm:$0x3f] }
 0x170   : > { %v467_v1 = vperm.slane %v463_v61, %v2426_v40  ;;  %v604_v8 = vld [vmem:[#allocation2 + $0x10] sm:$0x3f] }
 0x172   : > { %v481_v5 = vsel %vm319_vm1, %v480_v63, %v467_v1  ;;  %v642_v63 = vld [vmem:[#allocation2 + $0x10] sm:$0x3f] }
 0x173   : > { %v485_v7 = vperm.slane %v481_v5, %v2435_v59 }
 0x174   : > { %v445_v48 = vpop.permute.xlu0 %444  ;;  %v884_v47 = vld [vmem:[#allocation3 + $0x1] sm:$0xff] }
 0x175   : > { %429 = vrot.lane.b32.xlu0 %v2463_v28, %s3298_s22  ;;  %v486_v11 = vrot.slane %v485_v7, 4  ;;  %v500_v15 = vrot.slane %v445_v48, 4  ;;  %s2590_s22 = sld [smem:[#allocation5 + $0x15]]  ;;  %v886_v53 = vmul.f32 %v885_v46, %v884_v47  ;;  %v888_v56 = vld [vmem:[#allocation3 + $0x2] sm:$0xff]  ;;  %v901_v7 = vstv %s2597_s23 }
 0x176   : > { %438 = vrot.lane.b32.xlu2 %v2463_v28, %s3304_s24  ;;  %v890_v60 = vmul.f32 %v889_v55, %v888_v56  ;;  %v896_v3 = vld [vmem:[#allocation3 + $0x4] sm:$0xff]  ;;  %s2630_s23 = sld [smem:[#allocation5 + $0x1d]] }
 0x177   : > { %s2641_s24 = sld [smem:[#allocation5 + $0x2b]] }
 0x17b   : > { %v893_v61 = vstv %s2590_s22  ;;  %s2612_s22 = sld [smem:[#allocation5 + $0xf]] }
 0x17c   : > { %v408_v57 = vpop.permute.xlu0 %407 }
 0x17d   : > { %572 = vrot.lane.b32.xlu0 %v538_v43, %s2247_s29  ;;  %v457_v62 = vsel %vm319_vm1, %v456_v52, %v408_v57  ;;  %v623_v52 = vld [vmem:[#allocation2 + $0x10] sm:$0x3f] }
 0x17e   : > { %574 = vrot.lane.b32.xlu2 %v566_v51, %s2247_s29  ;;  %v461_v2 = vperm.slane %v457_v62, %v2426_v40  ;;  %v880_v51 = vld [vmem:[#allocation3] sm:$0xff] }
 0x17f   : > { %v882_v54 = vmul.f32 %v881_v49, %v880_v51  ;;  %v892_v62 = vld [vmem:[#allocation3 + $0x3] sm:$0xff]  ;;  %v1311_v51 = vld [vmem:[#allocation3 + $0xd] sm:$0xff] }
 0x180   : > { %v474_v6 = vrot.slane %v461_v2, 4  ;;  %v894_v1 = vmul.f32 %v893_v61, %v892_v62  ;;  %v1312_v56 = vmul.f32 %v1311_v51, %v901_v7 }
 0x181   : > { %v887_v57 = vadd.f32 %v886_v53, %v882_v54  ;;  %v929_v54 = vstv %s2638_s21  ;;  %s2656_s21 = sld [smem:[#allocation5 + $0x10]] }
 0x182   : > { %v475_v9 = vsel %vm319_vm1, %v474_v6, %v455_v4 }
 0x183   : > { %v479_v10 = vperm.slane %v475_v9, %v2435_v59 }
 0x185   : > { %591 = vrot.lane.b32.xlu0 %v538_v43, %s2248_s30  ;;  %v487_v50 = vsel %vm319_vm1, %v486_v11, %v479_v10  ;;  %v905_v10 = vstv %s2601_s10  ;;  %s2666_s10 = sld [smem:[#allocation5 + $0x1e]] }
 0x186   : > { %593 = vrot.lane.b32.xlu2 %v585_v0, %s2248_s30  ;;  %v891_v0 = vadd.f32 %v890_v60, %v887_v57 }
 0x188   : > { %v895_v4 = vadd.f32 %v894_v1, %v891_v0 }
 0x18d   : > { %610 = vrot.lane.b32.xlu0 %v538_v43, %s2249_s4 }
 0x18e   : > { %612 = vrot.lane.b32.xlu2 %v604_v8, %s2249_s4  ;;  %v900_v8 = vld [vmem:[#allocation3 + $0x5] sm:$0xff] }
 0x18f   : > { %v902_v11 = vmul.f32 %v901_v7, %v900_v8 }
 0x195   : > { %528 = vrot.lane.b32.xlu0 %v487_v50, %s2244_s26  ;;  %v904_v50 = vld [vmem:[#allocation3 + $0x6] sm:$0xff] }
 0x196   : > { %629 = vrot.lane.b32.xlu2 %v538_v43, %s2250_s8 }
 0x19d   : > { %627 = vrot.lane.b32.xlu0 %v2498_v33, %s2250_s8 }
 0x19e   : > { %648 = vrot.lane.b32.xlu2 %v538_v43, %s2251_s9 }
 0x1a5   : > { %646 = vrot.lane.b32.xlu0 %v2498_v33, %s2251_s9 }
 0x1bf   : > { %v552_v12 = vpop.permute.xlu1 %551 }
 0x1c0   : > { %561 = vst.msk [vmem:[#allocation3 + $0x18] sm:$0xff] %vm540_vm6, %v552_v12  ;;  %v1296_v12 = vld [vmem:[#allocation3 + $0x8] sm:$0xff] }
 0x1c7   : > { %v433_v13 = vpop.permute.xlu1 %432 }
 0x1c8   : > { %v556_v14 = vpop.permute.xlu2 %555  ;;  %v488_v16 = vrot.slane %v433_v13, 4  ;;  %v1299_v13 = vld [vmem:[#allocation3 + $0x9] sm:$0xff] }
 0x1c9   : > { %563 = vst.msk [vmem:[#allocation3 + $0x28] sm:$0x3f] %vm543_vm7, %v556_v14  ;;  %v909_v14 = vstv %s2604_s25  ;;  %s2681_s25 = sld [smem:[#allocation5 + $0x3]] }
 0x1ca   : > { %v489_v32 = vsel %vm319_vm1, %v488_v16, %v2463_v28 }
 0x1cb   : > { %v493_v36 = vperm.slane %v489_v32, %v2426_v40 }
 0x1cf   : > { %v571_v18 = vpop.permute.xlu1 %570 }
 0x1d0   : > { %v439_v19 = vpop.permute.xlu2 %438  ;;  %580 = vst.msk [vmem:[#allocation3 + $0x30] sm:$0xff] %vm540_vm6, %v571_v18  ;;  %v906_v18 = vmul.f32 %v905_v10, %v904_v50 }
 0x1d1   : > { %v501_v20 = vsel %vm319_vm1, %v500_v15, %v439_v19  ;;  %v908_v15 = vld [vmem:[#allocation3 + $0x18] sm:$0xff]  ;;  %v913_v19 = vstv %s2606_s18  ;;  %s2673_s18 = sld [smem:[#allocation5 + $0x25]] }
 0x1d2   : > { %v505_v22 = vperm.slane %v501_v20, %v2426_v40 }
 0x1d4   : > { %v519_v23 = vsel %vm319_vm1, %v518_v21, %v505_v22 }
 0x1d5   : > { %v523_v37 = vperm.slane %v519_v23, %v2435_v59  ;;  %v1297_v23 = vmul.f32 %v1296_v12, %v881_v49 }
 0x1d7   : > { %v590_v24 = vpop.permute.xlu1 %589  ;;  %v524_v43 = vrot.slane %v523_v37, 4  ;;  %v936_v7 = vld [vmem:[#allocation3 + $0x30] sm:$0xff] }
 0x1d8   : > { %v575_v25 = vpop.permute.xlu2 %574  ;;  %599 = vst.msk [vmem:[#allocation3 + $0x48] sm:$0xff] %vm540_vm6, %v590_v24  ;;  %v1300_v24 = vmul.f32 %v1299_v13, %v885_v46  ;;  %v925_v46 = vstv %s2630_s23  ;;  %s2688_s23 = sld [smem:[#allocation5 + $0x11]] }
 0x1d9   : > { %582 = vst.msk [vmem:[#allocation3 + $0x40] sm:$0x3f] %vm543_vm7, %v575_v25  ;;  %v910_v25 = vmul.f32 %v909_v14, %v908_v15 }
 0x1da   : > { %v1301_v16 = vadd.f32 %v1300_v24, %v1297_v23 }
 0x1df   : > { %v609_v26 = vpop.permute.xlu1 %608  ;;  %v554_v29 = vpop.permute.xlu0 %553 }
 0x1e0   : > { %v594_v27 = vpop.permute.xlu2 %593  ;;  %618 = vst.msk [vmem:[#allocation3 + $0x60] sm:$0xff] %vm540_vm6, %v609_v26 }
 0x1e1   : > { %601 = vst.msk [vmem:[#allocation3 + $0x58] sm:$0x3f] %vm543_vm7, %v594_v27 }
 0x1e2   : > { %562 = vst.msk [vmem:[#allocation3 + $0x20] sm:$0xff] %vm540_vm6, %v554_v29  ;;  %v1302_v29 = vld [vmem:[#allocation3 + $0xa] sm:$0xff] }
 0x1e7   : > { %v430_v33 = vpop.permute.xlu0 %429 }
 0x1e8   : > { %v613_v31 = vpop.permute.xlu2 %612  ;;  %v495_v34 = vsel %vm319_vm1, %v494_v30, %v430_v33  ;;  %v1303_v33 = vmul.f32 %v1302_v29, %v889_v55 }
 0x1e9   : > { %620 = vst.msk [vmem:[#allocation3 + $0x70] sm:$0x3f] %vm543_vm7, %v613_v31  ;;  %v499_v35 = vperm.slane %v495_v34, %v2426_v40  ;;  %v912_v20 = vld [vmem:[#allocation3 + $0x19] sm:$0xff]  ;;  %v917_v31 = vstv %s2612_s22  ;;  %v1320_v8 = vld [vmem:[#allocation3 + $0x21] sm:$0xff]  ;;  %s2685_s22 = sld [smem:[#allocation5 + $0xa]] }
 0x1ea   : > { %v914_v27 = vmul.f32 %v913_v19, %v912_v20  ;;  %v916_v32 = vld [vmem:[#allocation3 + $0x1a] sm:$0xff]  ;;  %v1304_v37 = vadd.f32 %v1303_v33, %v1301_v16  ;;  %v1321_v13 = vmul.f32 %v1320_v8, %v913_v19  ;;  %v1323_v15 = vld [vmem:[#allocation3 + $0x22] sm:$0xff]  ;;  %v945_v20 = vstv %s2656_s21  ;;  %s2693_s21 = sld [smem:[#allocation5 + $0x1f]] }
 0x1eb   : > { %v512_v38 = vrot.slane %v499_v35, 4  ;;  %v1305_v35 = vld [vmem:[#allocation3 + $0xb] sm:$0xff]  ;;  %v924_v47 = vld [vmem:[#allocation3 + $0x1c] sm:$0xff]  ;;  %v1324_v23 = vmul.f32 %v1323_v15, %v917_v31  ;;  %v973_v8 = vstv %s2688_s23  ;;  %s2723_s23 = sld [smem:[#allocation5 + $0x20]] }
 0x1ec   : > { %v926_v53 = vmul.f32 %v925_v46, %v924_v47  ;;  %v928_v55 = vld [vmem:[#allocation3 + $0x1d] sm:$0xff] }
 0x1ed   : > { %v513_v41 = vsel %vm319_vm1, %v512_v38, %v493_v36  ;;  %v918_v38 = vmul.f32 %v917_v31, %v916_v32  ;;  %v1317_v60 = vld [vmem:[#allocation3 + $0x20] sm:$0xff]  ;;  %v930_v62 = vmul.f32 %v929_v54, %v928_v55  ;;  %v953_v31 = vstv %s2666_s10  ;;  %s2699_s10 = sld [smem:[#allocation5 + $0x2d]] }
 0x1ee   : > { %v517_v42 = vperm.slane %v513_v41, %v2435_v59  ;;  %v920_v41 = vld [vmem:[#allocation3 + $0x1b] sm:$0xff]  ;;  %v1329_v32 = vld [vmem:[#allocation3 + $0x24] sm:$0xff] }
 0x1ef   : > { %v573_v28 = vpop.permute.xlu0 %572  ;;  %v932_v0 = vld [vmem:[#allocation3 + $0x1e] sm:$0xff] }
 0x1f0   : > { %v630_v39 = vpop.permute.xlu2 %629  ;;  %581 = vst.msk [vmem:[#allocation3 + $0x38] sm:$0xff] %vm540_vm6, %v573_v28  ;;  %v525_v44 = vsel %vm319_vm1, %v524_v43, %v517_v42  ;;  %v1306_v28 = vmul.f32 %v1305_v35, %v893_v61  ;;  %v1308_v43 = vld [vmem:[#allocation3 + $0xc] sm:$0xff] }
 0x1f1   : > { %638 = vst.msk [vmem:[#allocation3 + $0x80] sm:$0xff] %vm540_vm6, %v630_v39  ;;  %530 = vrot.lane.b32.xlu1 %v525_v44, %s2244_s26  ;;  %s2593_s26 = sld [smem:[#allocation5 + $0x1c]] }
 0x1f2   : > { %v1307_v44 = vadd.f32 %v1306_v28, %v1304_v37 }
 0x1f7   : > { %v592_v48 = vpop.permute.xlu0 %591  ;;  %v897_v2 = vstv %s2593_s26  ;;  %s2625_s26 = sld [smem:[#allocation5 + $0x16]]  ;;  %v948_v29 = vld [vmem:[#allocation3 + $0x33] sm:$0xff] }
 0x1f8   : > { %v649_v45 = vpop.permute.xlu2 %648  ;;  %600 = vst.msk [vmem:[#allocation3 + $0x50] sm:$0xff] %vm540_vm6, %v592_v48  ;;  %v898_v6 = vmul.f32 %v897_v2, %v896_v3  ;;  %v1309_v48 = vmul.f32 %v1308_v43, %v897_v2  ;;  %v1318_v3 = vmul.f32 %v1317_v60, %v909_v14  ;;  %v952_v35 = vld [vmem:[#allocation3 + $0x34] sm:$0xff] }
 0x1f9   : > { %657 = vst.msk [vmem:[#allocation3 + $0x98] sm:$0xff] %vm540_vm6, %v649_v45  ;;  %631 = vrot.lane.b32.xlu1 %v623_v52, %s2250_s8  ;;  %v954_v28 = vmul.f32 %v953_v31, %v952_v35  ;;  %v1338_v47 = vld [vmem:[#allocation3 + $0x38] sm:$0xff] }
 0x1fa   : > { %v899_v9 = vadd.f32 %v898_v6, %v895_v4  ;;  %v1310_v52 = vadd.f32 %v1309_v48, %v1307_v44  ;;  %v937_v6 = vstv %s2644_s20  ;;  %s2676_s20 = sld [smem:[#allocation5 + $0x2c]]  ;;  %v1341_v60 = vld [vmem:[#allocation3 + $0x39] sm:$0xff] }
 0x1fb   : > { %v938_v12 = vmul.f32 %v937_v6, %v936_v7  ;;  %v1347_v7 = vld [vmem:[#allocation3 + $0x3b] sm:$0xff] }
 0x1fc   : > { %v903_v17 = vadd.f32 %v902_v11, %v899_v9  ;;  %v1313_v61 = vadd.f32 %v1312_v56, %v1310_v52  ;;  %v940_v11 = vld [vmem:[#allocation3 + $0x31] sm:$0xff] }
 0x1fd   : > { %v921_v39 = vstv %s2625_s26  ;;  %s2649_s26 = sld [smem:[#allocation5 + $0x9]] }
 0x1fe   : > { %v907_v26 = vadd.f32 %v906_v18, %v903_v17  ;;  %v922_v45 = vmul.f32 %v921_v39, %v920_v41 }
 0x1ff   : > { %v611_v58 = vpop.permute.xlu0 %610  ;;  %v976_v15 = vld [vmem:[#allocation3 + $0x4b] sm:$0xff] }
 0x200   : > { %619 = vst.msk [vmem:[#allocation3 + $0x68] sm:$0xff] %vm540_vm6, %v611_v58  ;;  %v911_v30 = vadd.f32 %v910_v25, %v907_v26  ;;  %v1314_v58 = vld [vmem:[#allocation3 + $0xe] sm:$0xff]  ;;  %v1326_v25 = vld [vmem:[#allocation3 + $0x23] sm:$0xff]  ;;  %v961_v51 = vstv %s2676_s20  ;;  %s2708_s20 = sld [smem:[#allocation5 + $0xb]] }
 0x201   : > { %650 = vrot.lane.b32.xlu1 %v642_v63, %s2251_s9  ;;  %v933_v63 = vstv %s2641_s24  ;;  %v1315_v1 = vmul.f32 %v1314_v58, %v905_v10  ;;  %s2662_s24 = sld [smem:[#allocation5 + $0x17]]  ;;  %v1327_v16 = vmul.f32 %v1326_v25, %v921_v39  ;;  %v957_v39 = vstv %s2673_s18  ;;  %v964_v58 = vld [vmem:[#allocation3 + $0x48] sm:$0xff] }
 0x202   : > { %v915_v34 = vadd.f32 %v914_v27, %v911_v30  ;;  %v980_v25 = vld [vmem:[#allocation3 + $0x4c] sm:$0xff]  ;;  %s2702_s18 = sld [smem:[#allocation5 + $0x4]] }
 0x203   : > { %v1316_v4 = vadd.f32 %v1315_v1, %v1313_v61  ;;  %v941_v9 = vstv %s2649_s26  ;;  %v1344_v1 = vld [vmem:[#allocation3 + $0x3a] sm:$0xff]  ;;  %s2690_s26 = sld [smem:[#allocation5 + $0x18]] }
 0x204   : > { %v919_v42 = vadd.f32 %v918_v38, %v915_v34  ;;  %v942_v14 = vmul.f32 %v941_v9, %v940_v11  ;;  %v1332_v38 = vld [vmem:[#allocation3 + $0x25] sm:$0xff] }
 0x205   : > { %v1319_v10 = vadd.f32 %v1318_v3, %v1316_v4  ;;  %v1333_v43 = vmul.f32 %v1332_v38, %v929_v54  ;;  %v972_v11 = vld [vmem:[#allocation3 + $0x4a] sm:$0xff] }
 0x206   : > { %v923_v49 = vadd.f32 %v922_v45, %v919_v42  ;;  %v956_v42 = vld [vmem:[#allocation3 + $0x35] sm:$0xff]  ;;  %v1335_v45 = vld [vmem:[#allocation3 + $0x26] sm:$0xff] }
 0x207   : > { %v529_v5 = vpop.permute.xlu0 %528  ;;  %v1322_v18 = vadd.f32 %v1321_v13, %v1319_v10  ;;  %v949_v19 = vstv %s2662_s24  ;;  %v1350_v13 = vld [vmem:[#allocation3 + $0x3c] sm:$0xff]  ;;  %s2696_s24 = sld [smem:[#allocation5 + $0x26]]  ;;  %v1359_v38 = vld [vmem:[#allocation3 + $0x50] sm:$0xff] }
 0x208   : > { %535 = vst.msk [vmem:[#allocation2 + $0x1b] sm:$0xff] %vm403_vm5, %v529_v5  ;;  %v927_v57 = vadd.f32 %v926_v53, %v923_v49  ;;  %v934_v5 = vmul.f32 %v933_v63, %v932_v0  ;;  %v950_v34 = vmul.f32 %v949_v19, %v948_v29  ;;  %v958_v49 = vmul.f32 %v957_v39, %v956_v42 }
 0x209   : > { %v1325_v26 = vadd.f32 %v1324_v23, %v1322_v18  ;;  %v1339_v53 = vmul.f32 %v1338_v47, %v937_v6  ;;  %v1342_v0 = vmul.f32 %v1341_v60, %v941_v9  ;;  %v974_v9 = vmul.f32 %v973_v8, %v972_v11  ;;  %v1353_v23 = vld [vmem:[#allocation3 + $0x3d] sm:$0xff]  ;;  %v1368_v60 = vld [vmem:[#allocation3 + $0x53] sm:$0xff] }
 0x20a   : > { %v931_v2 = vadd.f32 %v930_v62, %v927_v57  ;;  %v965_v57 = vstv %s2681_s25  ;;  %s2713_s25 = sld [smem:[#allocation5 + $0x12]] }
 0x20b   : > { %v1328_v33 = vadd.f32 %v1327_v16, %v1325_v26  ;;  %v966_v62 = vmul.f32 %v965_v57, %v964_v58  ;;  %v1356_v16 = vld [vmem:[#allocation3 + $0x3e] sm:$0xff]  ;;  %v1360_v42 = vmul.f32 %v1359_v38, %v965_v57  ;;  %v1383_v38 = vld [vmem:[#allocation3 + $0x69] sm:$0xff] }
 0x20c   : > { %v935_v50 = vadd.f32 %v934_v5, %v931_v2  ;;  %v969_v2 = vstv %s2685_s22  ;;  %v1345_v5 = vmul.f32 %v1344_v1, %v945_v20  ;;  %s2717_s22 = sld [smem:[#allocation5 + $0x19]] }
 0x20e   : > { %v939_v17 = vadd.f32 %v938_v12, %v935_v50  ;;  %v1348_v12 = vmul.f32 %v1347_v7, %v949_v19  ;;  %v1354_v19 = vmul.f32 %v1353_v23, %v957_v39 }
 0x20f   : > { %v2617_v21 = vld [vmem:[#allocation2 + $0x18] sm:$0xff]  ;;  %v628_v22 = vpop.permute.xlu0 %627 }
 0x210   : > { %663 = vst.msk [vmem:[#allocation3 + $0xa8] sm:$0xff] %vm540_vm6, %v2617_v21  ;;  %672 = vrot.lane.b32.xlu0 %v2617_v21, %s2246_s28  ;;  %v943_v24 = vadd.f32 %v942_v14, %v939_v17  ;;  %v977_v14 = vstv %s2690_s26  ;;  %s2728_s26 = sld [smem:[#allocation5 + $0x27]] }
 0x211   : > { %637 = vst.msk [vmem:[#allocation3 + $0x78] sm:$0xff] %vm540_vm6, %v628_v22  ;;  %v944_v22 = vld [vmem:[#allocation3 + $0x32] sm:$0xff]  ;;  %v1369_v1 = vmul.f32 %v1368_v60, %v977_v14 }
 0x212   : > { %v946_v27 = vmul.f32 %v945_v20, %v944_v22  ;;  %v1351_v20 = vmul.f32 %v1350_v13, %v953_v31  ;;  %v978_v22 = vmul.f32 %v977_v14, %v976_v15  ;;  %v1357_v31 = vmul.f32 %v1356_v16, %v961_v51  ;;  %v1008_v14 = vld [vmem:[#allocation3 + $0x64] sm:$0xff] }
 0x213   : > { %v1009_v13 = vstv %s2723_s23  ;;  %s2841_s23 = sld [smem:[#allocation5 + $0x29]] }
 0x214   : > { %v947_v30 = vadd.f32 %v946_v27, %v943_v24  ;;  %v981_v24 = vstv %s2693_s21  ;;  %s2741_s21 = sld [smem:[#allocation5 + $0x2e]] }
 0x215   : > { %v982_v29 = vmul.f32 %v981_v24, %v980_v25 }
 0x216   : > { %v951_v37 = vadd.f32 %v950_v34, %v947_v30  ;;  %v985_v30 = vstv %s2696_s24  ;;  %v1013_v23 = vstv %s2728_s26  ;;  %s2761_s24 = sld [smem:[#allocation5 + $0xc]] }
 0x217   : > { %v647_v36 = vpop.permute.xlu0 %646  ;;  %s2847_s26 = sld [smem:[#allocation5 + $0x30]] }
 0x218   : > { %656 = vst.msk [vmem:[#allocation3 + $0x90] sm:$0xff] %vm540_vm6, %v647_v36  ;;  %691 = vrot.lane.b32.xlu0 %v2617_v21, %s2247_s29  ;;  %v1330_v36 = vmul.f32 %v1329_v32, %v925_v46  ;;  %v955_v44 = vadd.f32 %v954_v28, %v951_v37  ;;  %v960_v46 = vld [vmem:[#allocation3 + $0x36] sm:$0xff]  ;;  %v984_v32 = vld [vmem:[#allocation3 + $0x4d] sm:$0xff] }
 0x219   : > { %v962_v56 = vmul.f32 %v961_v51, %v960_v46  ;;  %v986_v35 = vmul.f32 %v985_v30, %v984_v32  ;;  %v988_v37 = vld [vmem:[#allocation3 + $0x4e] sm:$0xff]  ;;  %v1016_v32 = vld [vmem:[#allocation3 + $0x66] sm:$0xff] }
 0x21a   : > { %v1331_v41 = vadd.f32 %v1330_v36, %v1328_v33  ;;  %v959_v52 = vadd.f32 %v958_v49, %v955_v44  ;;  %v989_v36 = vstv %s2699_s10  ;;  %v992_v44 = vld [vmem:[#allocation3 + $0x60] sm:$0xff]  ;;  %v1365_v46 = vld [vmem:[#allocation3 + $0x52] sm:$0xff]  ;;  %s2777_s10 = sld [smem:[#allocation5 + $0x1a]] }
 0x21b   : > { %v990_v39 = vmul.f32 %v989_v36, %v988_v37  ;;  %v1366_v57 = vmul.f32 %v1365_v46, %v973_v8 }
 0x21c   : > { %v1334_v48 = vadd.f32 %v1333_v43, %v1331_v41  ;;  %v963_v54 = vadd.f32 %v962_v56, %v959_v52  ;;  %v993_v43 = vstv %s2702_s18  ;;  %v996_v52 = vld [vmem:[#allocation3 + $0x61] sm:$0xff]  ;;  %s2782_s18 = sld [smem:[#allocation5 + $0x21]] }
 0x21d   : > { %v994_v49 = vmul.f32 %v993_v43, %v992_v44 }
 0x21e   : > { %v967_v3 = vadd.f32 %v966_v62, %v963_v54  ;;  %v1001_v54 = vstv %s2713_s25  ;;  %s2817_s25 = sld [smem:[#allocation5 + $0xd]] }
 0x220   : > { %710 = vrot.lane.b32.xlu0 %v2617_v21, %s2248_s30 }
 0x228   : > { %729 = vrot.lane.b32.xlu0 %v2617_v21, %s2249_s4 }
 0x230   : > { %748 = vrot.lane.b32.xlu0 %v2617_v21, %s2250_s8 }
 0x238   : > { %767 = vrot.lane.b32.xlu0 %v2617_v21, %s2251_s9  ;;  %v1336_v21 = vmul.f32 %v1335_v45, %v933_v63  ;;  %v968_v63 = vld [vmem:[#allocation3 + $0x49] sm:$0xff]  ;;  %v1362_v45 = vld [vmem:[#allocation3 + $0x51] sm:$0xff] }
 0x239   : > { %v970_v6 = vmul.f32 %v969_v2, %v968_v63  ;;  %v1363_v51 = vmul.f32 %v1362_v45, %v969_v2  ;;  %v1371_v63 = vld [vmem:[#allocation3 + $0x54] sm:$0xff] }
 0x23a   : > { %v1337_v55 = vadd.f32 %v1336_v21, %v1334_v48  ;;  %v997_v21 = vstv %s2708_s20  ;;  %s2800_s20 = sld [smem:[#allocation5 + $0x2f]] }
 0x23b   : > { %v971_v10 = vadd.f32 %v970_v6, %v967_v3  ;;  %v998_v58 = vmul.f32 %v997_v21, %v996_v52  ;;  %v1005_v3 = vstv %s2717_s22  ;;  %v1384_v44 = vmul.f32 %v1383_v38, %v997_v21  ;;  %v1389_v21 = vld [vmem:[#allocation3 + $0x6b] sm:$0xff]  ;;  %s2830_s22 = sld [smem:[#allocation5 + $0x1b]] }
 0x23c   : > { %v1340_v61 = vadd.f32 %v1339_v53, %v1337_v55 }
 0x23d   : > { %v975_v18 = vadd.f32 %v974_v9, %v971_v10  ;;  %v1372_v10 = vmul.f32 %v1371_v63, %v981_v24  ;;  %v1374_v9 = vld [vmem:[#allocation3 + $0x55] sm:$0xff]  ;;  %v1012_v24 = vld [vmem:[#allocation3 + $0x65] sm:$0xff] }
 0x23e   : > { %v1343_v4 = vadd.f32 %v1342_v0, %v1340_v61  ;;  %v1000_v61 = vld [vmem:[#allocation3 + $0x62] sm:$0xff]  ;;  %v1014_v16 = vmul.f32 %v1013_v23, %v1012_v24 }
 0x23f   : > { %v979_v27 = vadd.f32 %v978_v22, %v975_v18  ;;  %v1002_v2 = vmul.f32 %v1001_v54, %v1000_v61  ;;  %v1375_v18 = vmul.f32 %v1374_v9, %v985_v30  ;;  %v1377_v22 = vld [vmem:[#allocation3 + $0x56] sm:$0xff]  ;;  %v1017_v30 = vstv %s2741_s21  ;;  %s2850_s21 = sld [smem:[#allocation5 + $0x31]] }
 0x240   : > { %v1346_v50 = vadd.f32 %v1345_v5, %v1343_v4  ;;  %v1004_v4 = vld [vmem:[#allocation3 + $0x63] sm:$0xff] }
 0x241   : > { %v983_v34 = vadd.f32 %v982_v29, %v979_v27  ;;  %v1378_v29 = vmul.f32 %v1377_v22, %v989_v36  ;;  %v1020_v36 = vld [vmem:[#allocation3 + $0x78] sm:$0xff] }
 0x242   : > { %v1349_v17 = vadd.f32 %v1348_v12, %v1346_v50  ;;  %v1006_v12 = vmul.f32 %v1005_v3, %v1004_v4 }
 0x243   : > { %v987_v28 = vadd.f32 %v986_v35, %v983_v34  ;;  %v1018_v35 = vmul.f32 %v1017_v30, %v1016_v32 }
 0x244   : > { %v1352_v26 = vadd.f32 %v1351_v20, %v1349_v17  ;;  %v1010_v20 = vmul.f32 %v1009_v13, %v1008_v14  ;;  %v1398_v14 = vld [vmem:[#allocation3 + $0x6e] sm:$0xff] }
 0x245   : > { %v991_v47 = vadd.f32 %v990_v39, %v987_v28  ;;  %v1399_v22 = vmul.f32 %v1398_v14, %v1017_v30 }
 0x246   : > { %v1355_v33 = vadd.f32 %v1354_v19, %v1352_v26 }
 0x247   : > { %v995_v53 = vadd.f32 %v994_v49, %v991_v47  ;;  %v1025_v47 = vstv %s2761_s24  ;;  %s2860_s24 = sld [smem:[#allocation5 + $0x3f]] }
 0x248   : > { %v1358_v41 = vadd.f32 %v1357_v31, %v1355_v33  ;;  %v1380_v33 = vld [vmem:[#allocation3 + $0x68] sm:$0xff] }
 0x249   : > { %v999_v0 = vadd.f32 %v998_v58, %v995_v53  ;;  %v1381_v37 = vmul.f32 %v1380_v33, %v993_v43  ;;  %v1386_v43 = vld [vmem:[#allocation3 + $0x6a] sm:$0xff] }
 0x24a   : > { %v1361_v48 = vadd.f32 %v1360_v42, %v1358_v41  ;;  %v1387_v46 = vmul.f32 %v1386_v43, %v1001_v54  ;;  %v1390_v54 = vmul.f32 %v1389_v21, %v1005_v3 }
 0x24b   : > { %v1003_v6 = vadd.f32 %v1002_v2, %v999_v0  ;;  %v1033_v0 = vstv %s2777_s10  ;;  %s2867_s10 = sld [smem:[#allocation5 + $0x4d]] }
 0x24c   : > { %v1364_v55 = vadd.f32 %v1363_v51, %v1361_v48  ;;  %v1024_v48 = vld [vmem:[#allocation3 + $0x79] sm:$0xff] }
 0x24d   : > { %v1007_v17 = vadd.f32 %v1006_v12, %v1003_v6  ;;  %v1026_v52 = vmul.f32 %v1025_v47, %v1024_v48  ;;  %v1395_v6 = vld [vmem:[#allocation3 + $0x6d] sm:$0xff] }
 0x24e   : > { %v1367_v62 = vadd.f32 %v1366_v57, %v1364_v55  ;;  %v1396_v9 = vmul.f32 %v1395_v6, %v1013_v23  ;;  %v1045_v23 = vstv %s2800_s20  ;;  %s2880_s20 = sld [smem:[#allocation5 + $0x32]] }
 0x24f   : > { %v1011_v26 = vadd.f32 %v1010_v20, %v1007_v17  ;;  %v1040_v17 = vld [vmem:[#allocation3 + $0x7d] sm:$0xff] }
 0x250   : > { %v1370_v5 = vadd.f32 %v1369_v1, %v1367_v62  ;;  %v1392_v62 = vld [vmem:[#allocation3 + $0x6c] sm:$0xff]  ;;  %v1032_v1 = vld [vmem:[#allocation3 + $0x7b] sm:$0xff] }
 0x251   : > { %v1015_v31 = vadd.f32 %v1014_v16, %v1011_v26  ;;  %v1393_v4 = vmul.f32 %v1392_v62, %v1009_v13  ;;  %v1401_v26 = vld [vmem:[#allocation3 + $0x80] sm:$0xff] }
 0x252   : > { %v1373_v15 = vadd.f32 %v1372_v10, %v1370_v5  ;;  %v1034_v5 = vmul.f32 %v1033_v0, %v1032_v1 }
 0x253   : > { %v1019_v41 = vadd.f32 %v1018_v35, %v1015_v31  ;;  %v1048_v31 = vld [vmem:[#allocation3 + $0x90] sm:$0xff] }
 0x254   : > { %v1376_v25 = vadd.f32 %v1375_v18, %v1373_v15 }
 0x256   : > { %v1379_v34 = vadd.f32 %v1378_v29, %v1376_v25 }
 0x258   : > { %v1382_v28 = vadd.f32 %v1381_v37, %v1379_v34 }
 0x25a   : > { %v1385_v49 = vadd.f32 %v1384_v44, %v1382_v28  ;;  %v1052_v44 = vld [vmem:[#allocation3 + $0x91] sm:$0xff] }
 0x25c   : > { %v1388_v57 = vadd.f32 %v1387_v46, %v1385_v49 }
 0x25e   : > { %v1391_v2 = vadd.f32 %v1390_v54, %v1388_v57 }
 0x263   : > { %v531_v56 = vpop.permute.xlu1 %530 }
 0x264   : > { %536 = vst.msk [vmem:[#allocation2 + $0x23] sm:$0xff] %vm403_vm5, %v531_v56  ;;  %v1028_v56 = vld [vmem:[#allocation3 + $0x7a] sm:$0xff]  ;;  %vm1755_vm5 = vcmask 785408  }
 0x26b   : > { %v2731_v7 = vld [vmem:[#allocation2 + $0x20] sm:$0xff]  ;;  %v661_v8 = vld [vmem:[#allocation2 + $0x28] sm:$0x3f]  ;;  %v632_v11 = vpop.permute.xlu1 %631 }
 0x26c   : > { %v668_v50 = vld [vmem:[#allocation2 + $0x28] sm:$0x3f]  ;;  %664 = vst.msk [vmem:[#allocation3 + $0xb0] sm:$0xff] %vm540_vm6, %v2731_v7  ;;  %674 = vrot.lane.b32.xlu2 %v2731_v7, %s2246_s28 }
 0x26d   : > { %676 = vrot.lane.b32.xlu1 %v668_v50, %s2246_s28  ;;  %665 = vst.msk [vmem:[#allocation3 + $0xb8] sm:$0x3f] %vm543_vm7, %v661_v8  ;;  %v687_v19 = vld [vmem:[#allocation2 + $0x28] sm:$0x3f]  ;;  %s2750_s28 = sld [smem:[#allocation5 + $0x5]]  ;;  %v1037_v8 = vstv %s2782_s18  ;;  %v1394_v50 = vadd.f32 %v1393_v4, %v1391_v2 }
 0x26e   : > { %639 = vst.msk [vmem:[#allocation3 + $0x88] sm:$0x3f] %vm543_vm7, %v632_v11  ;;  %v706_v39 = vld [vmem:[#allocation2 + $0x28] sm:$0x3f]  ;;  %s2872_s18 = sld [smem:[#allocation5 + $0x54]] }
 0x26f   : > { %v725_v60 = vld [vmem:[#allocation2 + $0x28] sm:$0x3f]  ;;  %v1397_v18 = vadd.f32 %v1396_v9, %v1394_v50  ;;  %v1069_v50 = vstv %s2841_s23  ;;  %s2905_s23 = sld [smem:[#allocation5 + $0x5c]] }
 0x270   : > { %v1036_v11 = vld [vmem:[#allocation3 + $0x7c] sm:$0xff]  ;;  %v1064_v2 = vld [vmem:[#allocation3 + $0x94] sm:$0xff] }
 0x271   : > { %v744_v12 = vld [vmem:[#allocation2 + $0x28] sm:$0x3f]  ;;  %v1038_v13 = vmul.f32 %v1037_v8, %v1036_v11  ;;  %v1400_v29 = vadd.f32 %v1399_v22, %v1397_v18  ;;  %v1077_v22 = vstv %s2850_s21  ;;  %s2919_s21 = sld [smem:[#allocation5 + $0x3a]] }
 0x272   : > { %v763_v32 = vld [vmem:[#allocation2 + $0x28] sm:$0x3f] }
 0x273   : > { %v651_v27 = vpop.permute.xlu1 %650  ;;  %v1021_v42 = vstv %s2750_s28  ;;  %s2853_s28 = sld [smem:[#allocation5 + $0x38]]  ;;  %v1422_v9 = vld [vmem:[#allocation3 + $0x98] sm:$0xff] }
 0x274   : > { %658 = vst.msk [vmem:[#allocation3 + $0xa0] sm:$0x3f] %vm543_vm7, %v651_v27  ;;  %693 = vrot.lane.b32.xlu2 %v2731_v7, %s2247_s29  ;;  %v1022_v45 = vmul.f32 %v1021_v42, %v1020_v36  ;;  %v1044_v27 = vld [vmem:[#allocation3 + $0x7e] sm:$0xff]  ;;  %v1402_v33 = vmul.f32 %v1401_v26, %v1021_v42  ;;  %v1053_v42 = vstv %s2817_s25  ;;  %s2887_s25 = sld [smem:[#allocation5 + $0x40]] }
 0x275   : > { %695 = vrot.lane.b32.xlu1 %v687_v19, %s2247_s29  ;;  %s2767_s29 = sld [smem:[#allocation5 + $0x13]]  ;;  %v1404_v19 = vld [vmem:[#allocation3 + $0x81] sm:$0xff]  ;;  %v1046_v30 = vmul.f32 %v1045_v23, %v1044_v27 }
 0x276   : > { %v1023_v51 = vadd.f32 %v1022_v45, %v1019_v41  ;;  %v1405_v34 = vmul.f32 %v1404_v19, %v1025_v47  ;;  %v1403_v35 = vadd.f32 %v1402_v33, %v1400_v29  ;;  %v1407_v36 = vld [vmem:[#allocation3 + $0x82] sm:$0xff]  ;;  %v1054_v47 = vmul.f32 %v1053_v42, %v1052_v44 }
 0x277   : > { %v1410_v43 = vld [vmem:[#allocation3 + $0x83] sm:$0xff] }
 0x278   : > { %v1027_v58 = vadd.f32 %v1026_v52, %v1023_v51  ;;  %v1406_v28 = vadd.f32 %v1405_v34, %v1403_v35  ;;  %v1056_v51 = vld [vmem:[#allocation3 + $0x92] sm:$0xff]  ;;  %v1411_v52 = vmul.f32 %v1410_v43, %v1033_v0  ;;  %v1080_v19 = vld [vmem:[#allocation3 + $0xa9] sm:$0xff] }
 0x279   : > { %v1081_v29 = vstv %s2853_s28  ;;  %s2926_s28 = sld [smem:[#allocation5 + $0x41]] }
 0x27a   : > { %v1082_v34 = vmul.f32 %v1081_v29, %v1080_v19 }
 0x27b   : > { %v1029_v55 = vstv %s2767_s29  ;;  %s2863_s29 = sld [smem:[#allocation5 + $0x46]]  ;;  %v1428_v33 = vld [vmem:[#allocation3 + $0x9a] sm:$0xff] }
 0x27c   : > { %712 = vrot.lane.b32.xlu2 %v2731_v7, %s2248_s30  ;;  %v1030_v61 = vmul.f32 %v1029_v55, %v1028_v56  ;;  %v1408_v45 = vmul.f32 %v1407_v36, %v1029_v55  ;;  %v1060_v55 = vld [vmem:[#allocation3 + $0x93] sm:$0xff]  ;;  %v1084_v36 = vld [vmem:[#allocation3 + $0xaa] sm:$0xff] }
 0x27d   : > { %714 = vrot.lane.b32.xlu1 %v706_v39, %s2248_s30  ;;  %s2793_s30 = sld [smem:[#allocation5 + $0x28]] }
 0x27e   : > { %v1031_v63 = vadd.f32 %v1030_v61, %v1027_v58  ;;  %v1409_v48 = vadd.f32 %v1408_v45, %v1406_v28  ;;  %v1061_v58 = vstv %s2830_s22  ;;  %v1416_v61 = vld [vmem:[#allocation3 + $0x85] sm:$0xff]  ;;  %s2896_s22 = sld [smem:[#allocation5 + $0x4e]] }
 0x27f   : > { %v1062_v62 = vmul.f32 %v1061_v58, %v1060_v55  ;;  %v1088_v45 = vld [vmem:[#allocation3 + $0xab] sm:$0xff]  ;;  %v1440_v55 = vld [vmem:[#allocation3 + $0x9e] sm:$0xff] }
 0x280   : > { %v1035_v10 = vadd.f32 %v1034_v5, %v1031_v63  ;;  %v1412_v56 = vadd.f32 %v1411_v52, %v1409_v48  ;;  %v1419_v5 = vld [vmem:[#allocation3 + $0x86] sm:$0xff] }
 0x281   : > { %v1089_v44 = vstv %s2863_s29  ;;  %v1092_v52 = vld [vmem:[#allocation3 + $0xac] sm:$0xff]  ;;  %s2943_s29 = sld [smem:[#allocation5 + $0x56]] }
 0x282   : > { %v673_v53 = vpop.permute.xlu0 %672  ;;  %v1039_v20 = vadd.f32 %v1038_v13, %v1035_v10 }
 0x283   : > { %682 = vst.msk [vmem:[#allocation3 + $0xc0] sm:$0xff] %vm540_vm6, %v673_v53  ;;  %v1041_v15 = vstv %s2793_s30  ;;  %v1413_v53 = vld [vmem:[#allocation3 + $0x84] sm:$0xff]  ;;  %s2875_s30 = sld [smem:[#allocation5 + $0x5b]] }
 0x284   : > { %731 = vrot.lane.b32.xlu2 %v2731_v7, %s2249_s4  ;;  %v1042_v24 = vmul.f32 %v1041_v15, %v1040_v17  ;;  %v1414_v54 = vmul.f32 %v1413_v53, %v1037_v8  ;;  %v1417_v4 = vmul.f32 %v1416_v61, %v1041_v15  ;;  %v1068_v8 = vld [vmem:[#allocation3 + $0x95] sm:$0xff]  ;;  %v1073_v15 = vstv %s2847_s26  ;;  %s2913_s26 = sld [smem:[#allocation5 + $0x33]] }
 0x285   : > { %733 = vrot.lane.b32.xlu1 %v725_v60, %s2249_s4  ;;  %s2812_s4 = sld [smem:[#allocation5 + $0x6]]  ;;  %v1070_v13 = vmul.f32 %v1069_v50, %v1068_v8  ;;  %v1072_v17 = vld [vmem:[#allocation3 + $0x96] sm:$0xff] }
 0x286   : > { %v1043_v16 = vadd.f32 %v1042_v24, %v1039_v20  ;;  %v1415_v1 = vadd.f32 %v1414_v54, %v1412_v56  ;;  %v1076_v24 = vld [vmem:[#allocation3 + $0xa8] sm:$0xff]  ;;  %v1074_v26 = vmul.f32 %v1073_v15, %v1072_v17 }
 0x288   : > { %v1047_v37 = vadd.f32 %v1046_v30, %v1043_v16  ;;  %v1418_v6 = vadd.f32 %v1417_v4, %v1415_v1  ;;  %v1078_v16 = vmul.f32 %v1077_v22, %v1076_v24  ;;  %v1441_v1 = vmul.f32 %v1440_v55, %v1073_v15  ;;  %v1100_v4 = vld [vmem:[#allocation3 + $0xae] sm:$0xff] }
 0x289   : > { %v1113_v15 = vstv %s2887_s25  ;;  %s3014_s25 = sld [smem:[#allocation5 + $0x3c]] }
 0x28a   : > { %v692_v3 = vpop.permute.xlu0 %691 }
 0x28b   : > { %701 = vst.msk [vmem:[#allocation3 + $0xd8] sm:$0xff] %vm540_vm6, %v692_v3  ;;  %v1049_v38 = vstv %s2812_s4  ;;  %s2885_s4 = sld [smem:[#allocation5 + $0x39]] }
 0x28c   : > { %750 = vrot.lane.b32.xlu2 %v2731_v7, %s2250_s8  ;;  %v1050_v41 = vmul.f32 %v1049_v38, %v1048_v31  ;;  %v1423_v18 = vmul.f32 %v1422_v9, %v1049_v38  ;;  %v1431_v38 = vld [vmem:[#allocation3 + $0x9b] sm:$0xff] }
 0x28d   : > { %752 = vrot.lane.b32.xlu1 %v744_v12, %s2250_s8  ;;  %s2827_s8 = sld [smem:[#allocation5 + $0x14]]  ;;  %v1420_v12 = vmul.f32 %v1419_v5, %v1045_v23  ;;  %v1105_v5 = vstv %s2880_s20 }
 0x28e   : > { %s2991_s20 = sld [smem:[#allocation5 + $0x57]] }
 0x28f   : > { %v1421_v14 = vadd.f32 %v1420_v12, %v1418_v6  ;;  %v1446_v12 = vld [vmem:[#allocation3 + $0xb1] sm:$0xff] }
 0x291   : > { %v1424_v27 = vadd.f32 %v1423_v18, %v1421_v14  ;;  %v1109_v9 = vstv %s2885_s4  ;;  %s2999_s4 = sld [smem:[#allocation5 + $0x5e]] }
 0x292   : > { %v711_v25 = vpop.permute.xlu0 %710 }
 0x293   : > { %720 = vst.msk [vmem:[#allocation3 + $0xf0] sm:$0xff] %vm540_vm6, %v711_v25  ;;  %v1057_v49 = vstv %s2827_s8  ;;  %v1425_v25 = vld [vmem:[#allocation3 + $0x99] sm:$0xff]  ;;  %s2894_s8 = sld [smem:[#allocation5 + $0x47]] }
 0x294   : > { %769 = vrot.lane.b32.xlu2 %v2731_v7, %s2251_s9  ;;  %v1051_v7 = vadd.f32 %v1050_v41, %v1047_v37  ;;  %v1058_v21 = vmul.f32 %v1057_v49, %v1056_v51  ;;  %v1429_v35 = vmul.f32 %v1428_v33, %v1057_v49  ;;  %v1085_v37 = vstv %s2860_s24  ;;  %s2931_s24 = sld [smem:[#allocation5 + $0x48]] }
 0x295   : > { %771 = vrot.lane.b32.xlu1 %v763_v32, %s2251_s9  ;;  %s2836_s9 = sld [smem:[#allocation5 + $0x22]]  ;;  %v1426_v32 = vmul.f32 %v1425_v25, %v1053_v42  ;;  %v1086_v42 = vmul.f32 %v1085_v37, %v1084_v36  ;;  %v1090_v49 = vmul.f32 %v1089_v44, %v1088_v45  ;;  %v1093_v51 = vstv %s2867_s10 }
 0x296   : > { %v1055_v46 = vadd.f32 %v1054_v47, %v1051_v7  ;;  %v1434_v7 = vld [vmem:[#allocation3 + $0x9c] sm:$0xff]  ;;  %v1121_v33 = vstv %s2896_s22  ;;  %s2964_s10 = sld [smem:[#allocation5 + $0x3b]] }
 0x297   : > { %v1427_v30 = vadd.f32 %v1426_v32, %v1424_v27  ;;  %s3030_s22 = sld [smem:[#allocation5 + $0x4a]] }
 0x298   : > { %v1059_v60 = vadd.f32 %v1058_v21, %v1055_v46  ;;  %v1437_v46 = vld [vmem:[#allocation3 + $0x9d] sm:$0xff] }
 0x299   : > { %v1430_v41 = vadd.f32 %v1429_v35, %v1427_v30  ;;  %v1438_v56 = vmul.f32 %v1437_v46, %v1069_v50  ;;  %v1117_v27 = vstv %s2894_s8  ;;  %v1452_v35 = vld [vmem:[#allocation3 + $0xb3] sm:$0xff]  ;;  %s3022_s8 = sld [smem:[#allocation5 + $0x43]] }
 0x29a   : > { %v730_v39 = vpop.permute.xlu0 %729  ;;  %v1063_v63 = vadd.f32 %v1062_v62, %v1059_v60  ;;  %v1096_v60 = vld [vmem:[#allocation3 + $0xad] sm:$0xff]  ;;  %v1132_v46 = vld [vmem:[#allocation3 + $0xd8] sm:$0xff] }
 0x29b   : > { %739 = vst.msk [vmem:[#allocation3 + $0x108] sm:$0xff] %vm540_vm6, %v730_v39  ;;  %v1065_v0 = vstv %s2836_s9  ;;  %v1432_v39 = vmul.f32 %v1431_v38, %v1061_v58  ;;  %v1097_v58 = vstv %s2872_s18  ;;  %s2902_s9 = sld [smem:[#allocation5 + $0x55]] }
 0x29c   : > { %v1066_v3 = vmul.f32 %v1065_v0, %v1064_v2  ;;  %v1435_v48 = vmul.f32 %v1434_v7, %v1065_v0  ;;  %v1098_v0 = vmul.f32 %v1097_v58, %v1096_v60  ;;  %v1443_v2 = vld [vmem:[#allocation3 + $0xb0] sm:$0xff]  ;;  %s2970_s18 = sld [smem:[#allocation5 + $0x42]] }
 0x29d   : > { %v1433_v43 = vadd.f32 %v1432_v39, %v1430_v41  ;;  %v1444_v50 = vmul.f32 %v1443_v2, %v1077_v22  ;;  %v1447_v22 = vmul.f32 %v1446_v12, %v1081_v29 }
 0x29e   : > { %v1067_v10 = vadd.f32 %v1066_v3, %v1063_v63  ;;  %v1101_v63 = vstv %s2875_s30  ;;  %v1104_v3 = vld [vmem:[#allocation3 + $0xc0] sm:$0xff]  ;;  %s2984_s30 = sld [smem:[#allocation5 + $0x50]] }
 0x29f   : > { %v1436_v53 = vadd.f32 %v1435_v48, %v1433_v43  ;;  %v1102_v8 = vmul.f32 %v1101_v63, %v1100_v4  ;;  %v1455_v48 = vld [vmem:[#allocation3 + $0xb4] sm:$0xff]  ;;  %v1145_v4 = vstv %s2931_s24  ;;  %s3081_s24 = sld [smem:[#allocation5 + $0x4b]] }
 0x2a0   : > { %v1071_v20 = vadd.f32 %v1070_v13, %v1067_v10  ;;  %v1106_v10 = vmul.f32 %v1105_v5, %v1104_v3 }
 0x2a1   : > { %v1439_v54 = vadd.f32 %v1438_v56, %v1436_v53  ;;  %v1125_v38 = vstv %s2902_s9  ;;  %s3037_s9 = sld [smem:[#allocation5 + $0x51]] }
 0x2a2   : > { %v749_v57 = vpop.permute.xlu0 %748  ;;  %v1075_v23 = vadd.f32 %v1074_v26, %v1071_v20  ;;  %v1449_v26 = vld [vmem:[#allocation3 + $0xb2] sm:$0xff] }
 0x2a3   : > { %758 = vst.msk [vmem:[#allocation3 + $0x120] sm:$0xff] %vm540_vm6, %v749_v57  ;;  %v1094_v57 = vmul.f32 %v1093_v51, %v1092_v52  ;;  %v1442_v6 = vadd.f32 %v1441_v1, %v1439_v54  ;;  %v1450_v30 = vmul.f32 %v1449_v26, %v1085_v37  ;;  %v1453_v37 = vmul.f32 %v1452_v35, %v1089_v44  ;;  %v1458_v54 = vld [vmem:[#allocation3 + $0xb5] sm:$0xff] }
 0x2a4   : > { %v1079_v31 = vadd.f32 %v1078_v16, %v1075_v23  ;;  %v1137_v44 = vstv %s2919_s21  ;;  %s3058_s21 = sld [smem:[#allocation5 + $0x36]] }
 0x2a5   : > { %v1445_v13 = vadd.f32 %v1444_v50, %v1442_v6  ;;  %v1459_v6 = vmul.f32 %v1458_v54, %v1097_v58  ;;  %v1173_v54 = vstv %s2979_s2  ;;  %s3117_s2 = sld [smem:[#allocation5 + $0x3e]] }
 0x2a6   : > { %v1083_v28 = vadd.f32 %v1082_v34, %v1079_v31 }
 0x2a7   : > { %v1448_v16 = vadd.f32 %v1447_v22, %v1445_v13  ;;  %v1149_v13 = vstv %s2938_s17  ;;  %s3073_s17 = sld [smem:[#allocation5 + $0x44]] }
 0x2a8   : > { %v1087_v47 = vadd.f32 %v1086_v42, %v1083_v28  ;;  %v1129_v42 = vstv %s2905_s23  ;;  %s3043_s23 = sld [smem:[#allocation5 + $0x58]] }
 0x2a9   : > { %v1451_v41 = vadd.f32 %v1450_v30, %v1448_v16  ;;  %v1157_v16 = vstv %s2950_s0  ;;  %s3088_s0 = sld [smem:[#allocation5 + $0x52]] }
 0x2aa   : > { %v768_v11 = vpop.permute.xlu0 %767  ;;  %v1091_v21 = vadd.f32 %v1090_v49, %v1087_v47  ;;  %v1133_v49 = vstv %s2913_s26  ;;  %s3051_s26 = sld [smem:[#allocation5 + $0x5f]] }
 0x2ab   : > { %777 = vst.msk [vmem:[#allocation3 + $0x138] sm:$0xff] %vm540_vm6, %v768_v11  ;;  %v1454_v52 = vadd.f32 %v1453_v37, %v1451_v41  ;;  %v1134_v55 = vmul.f32 %v1133_v49, %v1132_v46  ;;  %v1165_v37 = vstv %s2964_s10  ;;  %s3109_s10 = sld [smem:[#allocation5 + $0x37]] }
 0x2ac   : > { %v1095_v61 = vadd.f32 %v1094_v57, %v1091_v21  ;;  %v1456_v57 = vmul.f32 %v1455_v48, %v1093_v51 }
 0x2ae   : > { %v1099_v11 = vadd.f32 %v1098_v0, %v1095_v61  ;;  %v1141_v61 = vstv %s2926_s28  ;;  %v1457_v1 = vadd.f32 %v1456_v57, %v1454_v52  ;;  %v1169_v52 = vstv %s2970_s18  ;;  %s3066_s28 = sld [smem:[#allocation5 + $0x3d]] }
 0x2af   : > { %s3124_s18 = sld [smem:[#allocation5 + $0x45]] }
 0x2b0   : > { %v1103_v14 = vadd.f32 %v1102_v8, %v1099_v11  ;;  %v1460_v58 = vadd.f32 %v1459_v6, %v1457_v1 }
 0x2b2   : > { %v1107_v24 = vadd.f32 %v1106_v10, %v1103_v14  ;;  %v1461_v10 = vld [vmem:[#allocation3 + $0xb6] sm:$0xff] }
 0x2c6   : > { %v675_v62 = vpop.permute.xlu2 %674 }
 0x2c7   : > { %683 = vst.msk [vmem:[#allocation3 + $0xc8] sm:$0xff] %vm540_vm6, %v675_v62 }
 0x2ce   : > { %v1108_v17 = vld [vmem:[#allocation3 + $0xc1] sm:$0xff]  ;;  %v694_v20 = vpop.permute.xlu2 %693 }
 0x2cf   : > { %v1112_v18 = vld [vmem:[#allocation3 + $0xc2] sm:$0xff]  ;;  %v1110_v25 = vmul.f32 %v1109_v9, %v1108_v17  ;;  %702 = vst.msk [vmem:[#allocation3 + $0xe0] sm:$0xff] %vm540_vm6, %v694_v20  ;;  %v1153_v20 = vstv %s2943_s29  ;;  %s3101_s29 = sld [smem:[#allocation5 + $0x60]] }
 0x2d0   : > { %v1116_v19 = vld [vmem:[#allocation3 + $0xc3] sm:$0xff]  ;;  %v1114_v32 = vmul.f32 %v1113_v15, %v1112_v18 }
 0x2d1   : > { %v1111_v23 = vadd.f32 %v1110_v25, %v1107_v24  ;;  %v1120_v29 = vld [vmem:[#allocation3 + $0xc4] sm:$0xff]  ;;  %v1118_v31 = vmul.f32 %v1117_v27, %v1116_v19  ;;  %v1462_v24 = vmul.f32 %v1461_v10, %v1101_v63 }
 0x2d2   : > { %v1124_v36 = vld [vmem:[#allocation3 + $0xc5] sm:$0xff]  ;;  %v1122_v39 = vmul.f32 %v1121_v33, %v1120_v29 }
 0x2d3   : > { %v1115_v34 = vadd.f32 %v1114_v32, %v1111_v23  ;;  %v1128_v7 = vld [vmem:[#allocation3 + $0xc6] sm:$0xff]  ;;  %v1126_v43 = vmul.f32 %v1125_v38, %v1124_v36  ;;  %v1463_v32 = vadd.f32 %v1462_v24, %v1460_v58  ;;  %v1181_v58 = vstv %s2991_s20  ;;  %s3138_s20 = sld [smem:[#allocation5 + $0x53]] }
 0x2d4   : > { %v1130_v21 = vmul.f32 %v1129_v42, %v1128_v7  ;;  %v1464_v12 = vld [vmem:[#allocation3 + $0xc8] sm:$0xff] }
 0x2d5   : > { %v1119_v28 = vadd.f32 %v1118_v31, %v1115_v34  ;;  %v1465_v25 = vmul.f32 %v1464_v12, %v1105_v5  ;;  %v1161_v34 = vstv %s2955_s1  ;;  %v1160_v31 = vld [vmem:[#allocation3 + $0xf0] sm:$0xff]  ;;  %s3094_s1 = sld [smem:[#allocation5 + $0x59]] }
 0x2d6   : > { %v713_v47 = vpop.permute.xlu2 %712  ;;  %v1136_v56 = vld [vmem:[#allocation3 + $0xd9] sm:$0xff] }
 0x2d7   : > { %v1123_v45 = vadd.f32 %v1122_v39, %v1119_v28  ;;  %721 = vst.msk [vmem:[#allocation3 + $0xf8] sm:$0xff] %vm540_vm6, %v713_v47  ;;  %v1140_v62 = vld [vmem:[#allocation3 + $0xda] sm:$0xff]  ;;  %v1138_v2 = vmul.f32 %v1137_v44, %v1136_v56  ;;  %v1466_v36 = vadd.f32 %v1465_v25, %v1463_v32  ;;  %v1162_v47 = vmul.f32 %v1161_v34, %v1160_v31 }
 0x2d8   : > { %v1144_v3 = vld [vmem:[#allocation3 + $0xdb] sm:$0xff]  ;;  %v1142_v50 = vmul.f32 %v1141_v61, %v1140_v62  ;;  %v1185_v25 = vstv %s2999_s4  ;;  %v1189_v31 = vstv %s3006_s5  ;;  %s3144_s5 = sld [smem:[#allocation5 + $0x5a]] }
 0x2d9   : > { %v1127_v53 = vadd.f32 %v1126_v43, %v1123_v45  ;;  %v1148_v14 = vld [vmem:[#allocation3 + $0xdc] sm:$0xff]  ;;  %v1146_v18 = vmul.f32 %v1145_v4, %v1144_v3  ;;  %s3151_s4 = sld [smem:[#allocation5 + $0x61]] }
 0x2da   : > { %v1152_v22 = vld [vmem:[#allocation3 + $0xdd] sm:$0xff]  ;;  %v1150_v19 = vmul.f32 %v1149_v13, %v1148_v14 }
 0x2db   : > { %v1131_v60 = vadd.f32 %v1130_v21, %v1127_v53  ;;  %v1156_v23 = vld [vmem:[#allocation3 + $0xde] sm:$0xff]  ;;  %v1154_v30 = vmul.f32 %v1153_v20, %v1152_v22 }
 0x2dc   : > { %v1158_v28 = vmul.f32 %v1157_v16, %v1156_v23 }
 0x2dd   : > { %v1135_v0 = vadd.f32 %v1134_v55, %v1131_v60 }
 0x2de   : > { %v732_v8 = vpop.permute.xlu2 %731  ;;  %v1164_v45 = vld [vmem:[#allocation3 + $0xf1] sm:$0xff] }
 0x2df   : > { %v677_v51 = vpop.permute.xlu1 %676  ;;  %v1139_v11 = vadd.f32 %v1138_v2, %v1135_v0  ;;  %740 = vst.msk [vmem:[#allocation3 + $0x110] sm:$0xff] %vm540_vm6, %v732_v8  ;;  %v1168_v53 = vld [vmem:[#allocation3 + $0xf2] sm:$0xff]  ;;  %v1166_v57 = vmul.f32 %v1165_v37, %v1164_v45 }
 0x2e0   : > { %684 = vst.msk [vmem:[#allocation3 + $0xd0] sm:$0x3f] %vm543_vm7, %v677_v51  ;;  %v1172_v62 = vld [vmem:[#allocation3 + $0xf3] sm:$0xff]  ;;  %v1170_v0 = vmul.f32 %v1169_v52, %v1168_v53  ;;  %v1177_v51 = vstv %s2984_s30  ;;  %s3131_s30 = sld [smem:[#allocation5 + $0x4c]] }
 0x2e1   : > { %v1143_v17 = vadd.f32 %v1142_v50, %v1139_v11  ;;  %v1176_v6 = vld [vmem:[#allocation3 + $0xf4] sm:$0xff]  ;;  %v1174_v8 = vmul.f32 %v1173_v54, %v1172_v62 }
 0x2e2   : > { %v1178_v22 = vmul.f32 %v1177_v51, %v1176_v6 }
 0x2e3   : > { %v1147_v26 = vadd.f32 %v1146_v18, %v1143_v17  ;;  %v1180_v17 = vld [vmem:[#allocation3 + $0xf5] sm:$0xff] }
 0x2e5   : > { %v1151_v29 = vadd.f32 %v1150_v19, %v1147_v26  ;;  %v1184_v26 = vld [vmem:[#allocation3 + $0xf6] sm:$0xff] }
 0x2e6   : > { %v751_v7 = vpop.permute.xlu2 %750 }
 0x2e7   : > { %v1467_v63 = vld [vmem:[#allocation3 + $0xc9] sm:$0xff]  ;;  %v696_v35 = vpop.permute.xlu1 %695  ;;  %v1155_v41 = vadd.f32 %v1154_v30, %v1151_v29  ;;  %759 = vst.msk [vmem:[#allocation3 + $0x128] sm:$0xff] %vm540_vm6, %v751_v7  ;;  %v1182_v29 = vmul.f32 %v1181_v58, %v1180_v17 }
 0x2e8   : > { %v1470_v5 = vld [vmem:[#allocation3 + $0xca] sm:$0xff]  ;;  %v1468_v39 = vmul.f32 %v1467_v63, %v1109_v9  ;;  %703 = vst.msk [vmem:[#allocation3 + $0xe8] sm:$0x3f] %vm543_vm7, %v696_v35  ;;  %v1186_v35 = vmul.f32 %v1185_v25, %v1184_v26 }
 0x2e9   : > { %v1473_v43 = vld [vmem:[#allocation3 + $0xcb] sm:$0xff]  ;;  %v1159_v48 = vadd.f32 %v1158_v28, %v1155_v41  ;;  %v1471_v9 = vmul.f32 %v1470_v5, %v1113_v15 }
 0x2ea   : > { %v1469_v46 = vadd.f32 %v1468_v39, %v1466_v36  ;;  %v1476_v21 = vld [vmem:[#allocation3 + $0xcc] sm:$0xff]  ;;  %v1474_v60 = vmul.f32 %v1473_v43, %v1117_v27 }
 0x2eb   : > { %v1163_v56 = vadd.f32 %v1162_v47, %v1159_v48  ;;  %v1479_v15 = vld [vmem:[#allocation3 + $0xcd] sm:$0xff]  ;;  %v1477_v3 = vmul.f32 %v1476_v21, %v1121_v33  ;;  %v1485_v33 = vld [vmem:[#allocation3 + $0xe0] sm:$0xff] }
 0x2ec   : > { %v1472_v55 = vadd.f32 %v1471_v9, %v1469_v46  ;;  %v1482_v11 = vld [vmem:[#allocation3 + $0xce] sm:$0xff]  ;;  %v1480_v12 = vmul.f32 %v1479_v15, %v1125_v38  ;;  %v1486_v23 = vmul.f32 %v1485_v33, %v1133_v49  ;;  %v1193_v49 = vstv %s3014_s25  ;;  %s3163_s25 = sld [smem:[#allocation9]] }
 0x2ed   : > { %v1167_v1 = vadd.f32 %v1166_v57, %v1163_v56  ;;  %v1483_v38 = vmul.f32 %v1482_v11, %v1129_v42  ;;  %v1188_v63 = vld [vmem:[#allocation3 + $0x108] sm:$0xff] }
 0x2ee   : > { %v1475_v2 = vadd.f32 %v1474_v60, %v1472_v55  ;;  %v770_v14 = vpop.permute.xlu2 %769  ;;  %v1192_v28 = vld [vmem:[#allocation3 + $0x109] sm:$0xff]  ;;  %v1190_v45 = vmul.f32 %v1189_v31, %v1188_v63 }
 0x2ef   : > { %v715_v27 = vpop.permute.xlu1 %714  ;;  %v1171_v50 = vadd.f32 %v1170_v0, %v1167_v1  ;;  %778 = vst.msk [vmem:[#allocation3 + $0x140] sm:$0xff] %vm540_vm6, %v770_v14  ;;  %v1488_v19 = vld [vmem:[#allocation3 + $0xe1] sm:$0xff]  ;;  %v1196_v46 = vld [vmem:[#allocation3 + $0x10a] sm:$0xff]  ;;  %v1194_v21 = vmul.f32 %v1193_v49, %v1192_v28 }
 0x2f0   : > { %v1478_v10 = vadd.f32 %v1477_v3, %v1475_v2  ;;  %722 = vst.msk [vmem:[#allocation3 + $0x100] sm:$0x3f] %vm543_vm7, %v715_v27  ;;  %v1491_v42 = vld [vmem:[#allocation3 + $0xe2] sm:$0xff]  ;;  %v1489_v41 = vmul.f32 %v1488_v19, %v1137_v44  ;;  %v1197_v44 = vstv %s3022_s8  ;;  %v1200_v55 = vld [vmem:[#allocation3 + $0x10b] sm:$0xff]  ;;  %v1205_v2 = vstv %s3037_s9  ;;  %s3170_s8 = sld [smem:[#allocation9 + $0x1]]  ;;  %s3323_s9 = smov 32  }
 0x2f1   : > { %v1175_v18 = vadd.f32 %v1174_v8, %v1171_v50  ;;  %v1494_v39 = vld [vmem:[#allocation3 + $0xe3] sm:$0xff]  ;;  %v1492_v48 = vmul.f32 %v1491_v42, %v1141_v61  ;;  %v1201_v61 = vstv %s3030_s22  ;;  %v1198_v15 = vmul.f32 %v1197_v44, %v1196_v46  ;;  %v1204_v3 = vld [vmem:[#allocation3 + $0x10c] sm:$0xff]  ;;  %v1506_v8 = vld [vmem:[#allocation3 + $0xf8] sm:$0xff]  ;;  %s3322_s22 = smov 16  }
 0x2f2   : > { %v1481_v24 = vadd.f32 %v1480_v12, %v1478_v10  ;;  %v1497_v9 = vld [vmem:[#allocation3 + $0xe4] sm:$0xff]  ;;  %v1495_v57 = vmul.f32 %v1494_v39, %v1145_v4  ;;  %v1202_v11 = vmul.f32 %v1201_v61, %v1200_v55  ;;  %v1209_v10 = vstv %s3043_s23  ;;  %v1208_v12 = vld [vmem:[#allocation3 + $0x10d] sm:$0xff]  ;;  %s3324_s23 = smov 64  }
 0x2f3   : > { %v1179_v32 = vadd.f32 %v1178_v22, %v1175_v18  ;;  %v1500_v60 = vld [vmem:[#allocation3 + $0xe5] sm:$0xff]  ;;  %v1498_v0 = vmul.f32 %v1497_v9, %v1149_v13  ;;  %v1206_v33 = vmul.f32 %v1205_v2, %v1204_v3  ;;  %v1213_v22 = vstv %s3051_s26  ;;  %s3325_s26 = smov 48  }
 0x2f4   : > { %v1484_v30 = vadd.f32 %v1483_v38, %v1481_v24  ;;  %v1503_v6 = vld [vmem:[#allocation3 + $0xe6] sm:$0xff]  ;;  %v1501_v50 = vmul.f32 %v1500_v60, %v1153_v20  ;;  %v1212_v20 = vld [vmem:[#allocation3 + $0x10e] sm:$0xff]  ;;  %v1507_v38 = vmul.f32 %v1506_v8, %v1161_v34  ;;  %v1210_v19 = vmul.f32 %v1209_v10, %v1208_v12 }
 0x2f5   : > { %v1183_v5 = vadd.f32 %v1182_v29, %v1179_v32  ;;  %v1504_v18 = vmul.f32 %v1503_v6, %v1157_v16  ;;  %v1217_v32 = vstv %s3058_s21  ;;  %v1216_v29 = vld [vmem:[#allocation3 + $0x120] sm:$0xff]  ;;  %v1214_v63 = vmul.f32 %v1213_v22, %v1212_v20  ;;  %s3326_s21 = smov 80  }
 0x2f6   : > { %v1487_v36 = vadd.f32 %v1486_v23, %v1484_v30  ;;  %v1221_v34 = vstv %s3066_s28  ;;  %s3327_s28 = smov 112  }
 0x2f7   : > { %v734_v7 = vpop.permute.xlu1 %733  ;;  %v1187_v43 = vadd.f32 %v1186_v35, %v1183_v5  ;;  %v1509_v24 = vld [vmem:[#allocation3 + $0xf9] sm:$0xff]  ;;  %v1220_v35 = vld [vmem:[#allocation3 + $0x121] sm:$0xff] }
 0x2f8   : > { %v1490_v47 = vadd.f32 %v1489_v41, %v1487_v36  ;;  %741 = vst.msk [vmem:[#allocation3 + $0x118] sm:$0x3f] %vm543_vm7, %v734_v7  ;;  %v1512_v16 = vld [vmem:[#allocation3 + $0xfa] sm:$0xff]  ;;  %v1510_v5 = vmul.f32 %v1509_v24, %v1165_v37  ;;  %v1218_v41 = vmul.f32 %v1217_v32, %v1216_v29  ;;  %v1222_v46 = vmul.f32 %v1221_v34, %v1220_v35 }
 0x2f9   : > { %v1191_v53 = vadd.f32 %v1190_v45, %v1187_v43  ;;  %v1515_v36 = vld [vmem:[#allocation3 + $0xfb] sm:$0xff]  ;;  %v1513_v7 = vmul.f32 %v1512_v16, %v1169_v52  ;;  %v1225_v45 = vstv %s3073_s17  ;;  %v1229_v52 = vstv %s3081_s24  ;;  %s3328_s17 = smov 96   ;;  %s2004_s24 = sshll.u32 %s2293_s16, 3 }
 0x2fa   : > { %v1493_v56 = vadd.f32 %v1492_v48, %v1490_v47  ;;  %v1224_v43 = vld [vmem:[#allocation3 + $0x122] sm:$0xff]  ;;  %s1777_s16 = scalar_lea.sflag [#allocation7], %s2376_s7 }
 0x2fb   : > { %v1195_v62 = vadd.f32 %v1194_v21, %v1191_v53  ;;  %v1518_v37 = vld [vmem:[#allocation3 + $0xfc] sm:$0xff]  ;;  %v1516_v53 = vmul.f32 %v1515_v36, %v1173_v54  ;;  %v1226_v55 = vmul.f32 %v1225_v45, %v1224_v43  ;;  %v1232_v54 = vld [vmem:[#allocation3 + $0x124] sm:$0xff] }
 0x2fc   : > { %v1496_v1 = vadd.f32 %v1495_v57, %v1493_v56  ;;  %v1228_v21 = vld [vmem:[#allocation3 + $0x123] sm:$0xff] }
 0x2fd   : > { %v1199_v4 = vadd.f32 %v1198_v15, %v1195_v62  ;;  %v1521_v56 = vld [vmem:[#allocation3 + $0xfd] sm:$0xff]  ;;  %v1519_v62 = vmul.f32 %v1518_v37, %v1177_v51  ;;  %v1233_v15 = vstv %s3088_s0  ;;  %v1230_v3 = vmul.f32 %v1229_v52, %v1228_v21 }
 0x2fe   : > { %v1499_v27 = vadd.f32 %v1498_v0, %v1496_v1  ;;  %v1524_v1 = vld [vmem:[#allocation3 + $0xfe] sm:$0xff]  ;;  %v1234_v8 = vmul.f32 %v1233_v15, %v1232_v54 }
 0x2ff   : > { %v753_v13 = vpop.permute.xlu1 %752  ;;  %v1203_v14 = vadd.f32 %v1202_v11, %v1199_v4  ;;  %v1522_v4 = vmul.f32 %v1521_v56, %v1181_v58  ;;  %v1527_v11 = vld [vmem:[#allocation3 + $0x110] sm:$0xff]  ;;  %v1261_v56 = vstv %s3138_s20 }
 0x300   : > { %v1502_v17 = vadd.f32 %v1501_v50, %v1499_v27  ;;  %760 = vst.msk [vmem:[#allocation3 + $0x130] sm:$0x3f] %vm543_vm7, %v753_v13  ;;  %v1237_v27 = vstv %s3094_s1  ;;  %v1236_v50 = vld [vmem:[#allocation3 + $0x125] sm:$0xff]  ;;  %v1525_v13 = vmul.f32 %v1524_v1, %v1185_v25  ;;  %v1530_v58 = vld [vmem:[#allocation3 + $0x111] sm:$0xff] }
 0x301   : > { %v1207_v26 = vadd.f32 %v1206_v33, %v1203_v14  ;;  %v1241_v14 = vstv %s3101_s29  ;;  %v1240_v33 = vld [vmem:[#allocation3 + $0x126] sm:$0xff]  ;;  %v1238_v20 = vmul.f32 %v1237_v27, %v1236_v50  ;;  %v1533_v25 = vld [vmem:[#allocation3 + $0x112] sm:$0xff]  ;;  %v1531_v16 = vmul.f32 %v1530_v58, %v1193_v49  ;;  %v1252_v49 = vld [vmem:[#allocation3 + $0x13a] sm:$0xff]  ;;  %s1788_s29 = scalar_lea.hbm %s3294_s3, %s2004_s24 }
 0x302   : > { %v1505_v23 = vadd.f32 %v1504_v18, %v1502_v17  ;;  %v1528_v17 = vmul.f32 %v1527_v11, %v1189_v31  ;;  %v1249_v31 = vstv %s3117_s2  ;;  %v1534_v36 = vmul.f32 %v1533_v25, %v1197_v44  ;;  %v1548_v1 = vld [vmem:[#allocation3 + $0x128] sm:$0xff] }
 0x303   : > { %v1211_v30 = vadd.f32 %v1210_v19, %v1207_v26  ;;  %v1244_v26 = vld [vmem:[#allocation3 + $0x138] sm:$0xff]  ;;  %v1269_v50 = vstv %s3151_s4 }
 0x304   : > { %v1508_v42 = vadd.f32 %v1507_v38, %v1505_v23  ;;  %v1245_v38 = vstv %s3109_s10  ;;  %v1242_v23 = vmul.f32 %v1241_v14, %v1240_v33  ;;  %s3329_s10 = sshll.u32 %s2376_s7, 3 }
 0x305   : > { %v1215_v28 = vadd.f32 %v1214_v63, %v1211_v30  ;;  %v1248_v30 = vld [vmem:[#allocation3 + $0x139] sm:$0xff]  ;;  %s215_s2 = scalar_lea.vmem [#allocation12], %s3329_s10 }
 0x306   : > { %v1511_v39 = vadd.f32 %v1510_v5, %v1508_v42  ;;  %v1536_v63 = vld [vmem:[#allocation3 + $0x113] sm:$0xff]  ;;  %v1246_v42 = vmul.f32 %v1245_v38, %v1244_v26  ;;  %v1272_v26 = vstv %s3163_s25  ;;  %s2177_s25 = scalar_lea.hbm %s3294_s3, 16 }
 0x307   : > { %v772_v47 = vpop.permute.xlu1 %771  ;;  %v1219_v48 = vadd.f32 %v1218_v41, %v1215_v28  ;;  %v1253_v41 = vstv %s3124_s18  ;;  %v1539_v28 = vld [vmem:[#allocation3 + $0x114] sm:$0xff]  ;;  %v1537_v37 = vmul.f32 %v1536_v63, %v1201_v61  ;;  %v1554_v58 = vld [vmem:[#allocation3 + $0x12a] sm:$0xff]  ;;  %s1790_s18 = sshll.u32 %s215_s2, 4  ;;  %s1791_s18 = int_to_ptr.vmem [resolvable:$true] %s1790_s18 }
 0x308   : > { %v1514_v9 = vadd.f32 %v1513_v7, %v1511_v39  ;;  %779 = vst.msk [vmem:[#allocation3 + $0x148] sm:$0x3f] %vm543_vm7, %v772_v47  ;;  %v1250_v7 = vmul.f32 %v1249_v31, %v1248_v30  ;;  %v1257_v47 = vstv %s3131_s30  ;;  %v1254_v44 = vmul.f32 %v1253_v41, %v1252_v49  ;;  %s1792_s30 = sshll.u32 %s1788_s29, 4  ;;  %s1793_s30 = int_to_ptr.hbm [resolvable:$true] %s1792_s30 }
 0x309   : > { %v1223_v57 = vadd.f32 %v1222_v46, %v1219_v48  ;;  %v1256_v48 = vld [vmem:[#allocation3 + $0x13b] sm:$0xff]  ;;  %v1540_v21 = vmul.f32 %v1539_v28, %v1205_v2  ;;  %vm1757_vm7 = vcmask 916480   ;;  %s2171_s20 = sshra.s32 %s1793_s30, 4  ;;  %s2172_s20 = int_to_ptr.hbm [resolvable:$true] %s2171_s20 }
 0x30a   : > { %v1517_v60 = vadd.f32 %v1516_v53, %v1514_v9  ;;  %v1542_v46 = vld [vmem:[#allocation3 + $0x115] sm:$0xff]  ;;  %p2178_p9 = scmp.lt.s32.totalorder %s2172_s20, %s3294_s3 }
 0x30b   : > { %v1227_v0 = vadd.f32 %v1226_v55, %v1223_v57  ;;  %v1260_v57 = vld [vmem:[#allocation3 + $0x13c] sm:$0xff]  ;;  %v1543_v54 = vmul.f32 %v1542_v46, %v1209_v10  ;;  %v1549_v10 = vmul.f32 %v1548_v1, %v1217_v32  ;;  %v1560_v32 = vld [vmem:[#allocation3 + $0x12c] sm:$0xff] }
 0x30c   : > { %v1520_v6 = vadd.f32 %v1519_v62, %v1517_v60  ;;  %v1545_v55 = vld [vmem:[#allocation3 + $0x116] sm:$0xff]  ;;  %v1258_v60 = vmul.f32 %v1257_v47, %v1256_v48 }
 0x30d   : > { %v1231_v51 = vadd.f32 %v1230_v3, %v1227_v0  ;;  %v1265_v0 = vstv %s3144_s5  ;;  %v1264_v3 = vld [vmem:[#allocation3 + $0x13d] sm:$0xff]  ;;  %v1546_v11 = vmul.f32 %v1545_v55, %v1213_v22  ;;  %v1557_v22 = vld [vmem:[#allocation3 + $0x12b] sm:$0xff]  ;;  %s2173_s5 = scalar_lea.hbm %s2172_s20, 8 }
 0x30e   : > { %v1523_v12 = vadd.f32 %v1522_v4, %v1520_v6  ;;  %v1262_v6 = vmul.f32 %v1261_v56, %v1260_v57  ;;  %v1558_v63 = vmul.f32 %v1557_v22, %v1229_v52  ;;  %p2174_p1 = scmp.ne.s32.totalorder %s2172_s20, %s2173_s5  ;;  %p2179_p10 = scmp.lt.s32.totalorder %s2177_s25, %s2173_s5 }
 0x30f   : > { %v1235_v18 = vadd.f32 %v1234_v8, %v1231_v51  ;;  %v1268_v51 = vld [vmem:[#allocation3 + $0x13e] sm:$0xff]  ;;  %v1551_v8 = vld [vmem:[#allocation3 + $0x129] sm:$0xff] }
 0x310   : > { %v1526_v24 = vadd.f32 %v1525_v13, %v1523_v12  ;;  %v1266_v13 = vmul.f32 %v1265_v0, %v1264_v3  ;;  %v1575_v46 = vld [vmem:[#allocation3 + $0x142] sm:$0xff]  ;;  %p2175_p4 = pnand %p2174_p1, %p2341_p5  ;;  %p2180_p2 = por %p2179_p10, %p2178_p9 }
 0x311   : > { %v1239_v19 = vadd.f32 %v1238_v20, %v1235_v18  ;;  %v1270_v18 = vmul.f32 %v1269_v50, %v1268_v51  ;;  %v1581_v55 = vld [vmem:[#allocation3 + $0x144] sm:$0xff] }
 0x312   : > { %v1529_v29 = vadd.f32 %v1528_v17, %v1526_v24  ;;  %v1552_v24 = vmul.f32 %v1551_v8, %v1221_v34  ;;  %v1561_v34 = vmul.f32 %v1560_v32, %v1233_v15  ;;  %p2176_p8 = pneg %p2175_p4 }
 0x313   : > { %v1243_v5 = vadd.f32 %v1242_v23, %v1239_v19  ;;  %v1555_v23 = vmul.f32 %v1554_v58, %v1225_v45 }
 0x314   : > { %v1532_v35 = vadd.f32 %v1531_v16, %v1529_v29  ;;  %v1274_v29 = vstv %s3170_s8  ;;  %p2181_p11 = pnand %p2180_p2, %p2176_p8 }
 0x315   : > { %v1247_v39 = vadd.f32 %v1246_v42, %v1243_v5  ;;  %v1563_v42 = vld [vmem:[#allocation3 + $0x12d] sm:$0xff] }
 0x316   : > { %v1535_v43 = vadd.f32 %v1534_v36, %v1532_v35  ;;  %v1566_v36 = vld [vmem:[#allocation3 + $0x12e] sm:$0xff]  ;;  %v1564_v45 = vmul.f32 %v1563_v42, %v1237_v27  ;;  %v1576_v27 = vmul.f32 %v1575_v46, %v1253_v41 }
 0x317   : > { %v1251_v9 = vadd.f32 %v1250_v7, %v1247_v39  ;;  %v1569_v39 = vld [vmem:[#allocation3 + $0x140] sm:$0xff] }
 0x318   : > { %v1538_v53 = vadd.f32 %v1537_v37, %v1535_v43  ;;  %v1567_v43 = vmul.f32 %v1566_v36, %v1241_v14  ;;  %v1572_v37 = vld [vmem:[#allocation3 + $0x141] sm:$0xff]  ;;  %v1570_v52 = vmul.f32 %v1569_v39, %v1245_v38  ;;  %v1582_v38 = vmul.f32 %v1581_v55, %v1261_v56 }
 0x319   : > { %v1255_v61 = vadd.f32 %v1254_v44, %v1251_v9  ;;  %v1573_v15 = vmul.f32 %v1572_v37, %v1249_v31  ;;  %v1578_v44 = vld [vmem:[#allocation3 + $0x143] sm:$0xff] }
 0x31a   : > { %v1541_v62 = vadd.f32 %v1540_v21, %v1538_v53  ;;  %v1584_v14 = vld [vmem:[#allocation3 + $0x145] sm:$0xff] }
 0x31b   : > { %v1259_v2 = vadd.f32 %v1258_v60, %v1255_v61  ;;  %v1579_v60 = vmul.f32 %v1578_v44, %v1257_v47  ;;  %v1585_v3 = vmul.f32 %v1584_v14, %v1265_v0 }
 0x31c   : > { %v1544_v4 = vadd.f32 %v1543_v54, %v1541_v62  ;;  %v1587_v54 = vld [vmem:[#allocation3 + $0x146] sm:$0xff] }
 0x31d   : > { %v1263_v12 = vadd.f32 %v1262_v6, %v1259_v2  ;;  %v1588_v31 = vmul.f32 %v1587_v54, %v1269_v50 }
 0x31e   : > { %v1547_v33 = vadd.f32 %v1546_v11, %v1544_v4 }
 0x31f   : > { %v1267_v17 = vadd.f32 %v1266_v13, %v1263_v12 }
 0x320   : > { %v1550_v20 = vadd.f32 %v1549_v10, %v1547_v33 }
 0x321   : > { %v1271_v25 = vadd.f32 %v1270_v18, %v1267_v17 }
 0x322   : > { %v1553_v19 = vadd.f32 %v1552_v24, %v1550_v20 }
 0x323   : > { %v1273_v16 = vmul.f32 %v1272_v26, %v1271_v25 }
 0x324   : > { %v1556_v30 = vadd.f32 %v1555_v23, %v1553_v19 }
 0x325   : > { %v1275_v5 = vadd.f32 %v1274_v29, %v1273_v16 }
 0x326   : > { %v1559_v35 = vadd.f32 %v1558_v63, %v1556_v30 }
 0x327   : > { %v1996_v49 = vmul.f32 -1.442695, %v1275_v5 }
 0x328   : > { %v1562_v28 = vadd.f32 %v1561_v34, %v1559_v35 }
 0x329   : > { %2089 = vpow2.f32 %v1996_v49 }
 0x32a   : > { %v1565_v7 = vadd.f32 %v1564_v45, %v1562_v28 }
 0x32c   : > { %v1568_v48 = vadd.f32 %v1567_v43, %v1565_v7 }
 0x32e   : > { %v1571_v9 = vadd.f32 %v1570_v52, %v1568_v48 }
 0x32f   : > { %v2090_v53 = vpop.eup %2089 }
 0x330   : > { %v1574_v21 = vadd.f32 %v1573_v15, %v1571_v9  ;;  %v1279_v57 = vadd.f32 1.0, %v2090_v53 }
 0x332   : > { %v1577_v61 = vadd.f32 %v1576_v27, %v1574_v21  ;;  %2091 = vrcp.f32 %v1279_v57  ;;  %v1291_v8 = vand.u32 2147483648, %v1279_v57  ;;  %v1289_v47 = vand.u32 2147483647, %v1279_v57 }
 0x333   : > { %vm1285_vm9 = vweird.f32 %v1279_v57 }
 0x334   : > { %v1580_v62 = vadd.f32 %v1579_v60, %v1577_v61  ;;  %v1292_v56 = vor.u32 1.1754944e-38, %v1291_v8  ;;  %vm1290_vm11 = vcmp.eq.f32.partialorder %v1289_v47, 8.507059e+37 }
 0x336   : > { %v1583_v1 = vadd.f32 %v1582_v38, %v1580_v62 }
 0x338   : > { %v1586_v2 = vadd.f32 %v1585_v3, %v1583_v1  ;;  %v2092_v6 = vpop.eup %2091 }
 0x339   : > { %v1281_v11 = vmul.f32 %v2092_v6, %v1279_v57  ;;  %vm1286_vm8 = vweird.f32 %v2092_v6 }
 0x33a   : > { %v1589_v4 = vadd.f32 %v1588_v31, %v1586_v2  ;;  %vm1287_vm10 = vmor %vm1285_vm9, %vm1286_vm8 }
 0x33b   : > { %v1282_v41 = vsub.f32 1.0, %v1281_v11 }
 0x33c   : > { %v1590_v51 = vmul.f32 %v1589_v4, %v1272_v26 }
 0x33d   : > { %v1283_v12 = vmul.f32 %v2092_v6, %v1282_v41 }
 0x33e   : > { %v1591_v10 = vadd.f32 %v1590_v51, %v1274_v29 }
 0x33f   : > { %v1284_v33 = vadd.f32 %v2092_v6, %v1283_v12 }
 0x340   : > { %v1997_v13 = vmul.f32 -1.442695, %v1591_v10 }
 0x341   : > { %v1288_v58 = vsel %vm1287_vm10, %v2092_v6, %v1284_v33 }
 0x342   : > { %2093 = vpow2.f32 %v1997_v13  ;;  %v1293_v0 = vsel %vm1290_vm11, %v1292_v56, %v1288_v58 }
 0x343   : > { %1295 = vst.msk [vmem:[#allocation4] sm:$0xff] %vm540_vm6, %v1293_v0 }
 0x348   : > { %v2094_v50 = vpop.eup %2093 }
 0x349   : > { %v1595_v17 = vadd.f32 1.0, %v2094_v50 }
 0x34a   : > { %v1612_v18 = vld [vmem:[#allocation4] sm:$0xff] }
 0x34b   : > { %2095 = vrcp.f32 %v1595_v17  ;;  %v1619_v20 = vperm.slane %v1612_v18, %v2426_v40  ;;  %v1607_v29 = vand.u32 2147483648, %v1595_v17  ;;  %v1605_v16 = vand.u32 2147483647, %v1595_v17 }
 0x34c   : > { %vm1601_vm13 = vweird.f32 %v1595_v17  ;;  %v1614_v7 = vrot.slane %v1612_v18, 4 }
 0x34d   : > { %v3207_v24 = vperm.slane %v1619_v20, %v2435_v59  ;;  %v1608_v63 = vor.u32 1.1754944e-38, %v1607_v29  ;;  %vm1606_vm15 = vcmp.eq.f32.partialorder %v1605_v16, 8.507059e+37  ;;  %v1624_v9 = vrot.slane %v1619_v20, 4 }
 0x34e   : > { %v1615_v15 = vsel %vm319_vm1, 0.0, %v1614_v7 }
 0x34f   : > { %v1644_v26 = vrot.slane %v3207_v24, 4  ;;  %v1625_v21 = vsel %vm319_vm1, 0.0, %v1624_v9  ;;  %v1623_v27 = vperm.slane %v1615_v15, %v2426_v40 }
 0x350   : > { %v1633_v55 = vperm.slane %v1625_v21, %v2435_v59 }
 0x351   : > { %v2096_v22 = vpop.eup %2095  ;;  %v1645_v25 = vsel %vm319_vm1, 0.0, %v1644_v26  ;;  %v1639_v60 = vperm.slane %v1623_v27, %v2435_v59  ;;  %v1634_v2 = vrot.slane %v1623_v27, 4 }
 0x352   : > { %v1597_v19 = vmul.f32 %v2096_v22, %v1595_v17  ;;  %1691 = vrot.lane.b32.xlu1 %v1645_v25, %s3322_s22  ;;  %vm1602_vm12 = vweird.f32 %v2096_v22  ;;  %v1646_v38 = vrot.slane %v1633_v55, 4 }
 0x353   : > { %vm1603_vm14 = vmor %vm1601_vm13, %vm1602_vm12  ;;  %v1648_v31 = vrot.slane %v1639_v60, 4  ;;  %v1635_v6 = vsel %vm319_vm1, 0.0, %v1634_v2 }
 0x354   : > { %v1598_v23 = vsub.f32 1.0, %v1597_v19  ;;  %v1647_v1 = vsel %vm319_vm1, 0.0, %v1646_v38  ;;  %v1643_v11 = vperm.slane %v1635_v6, %v2435_v59 }
 0x355   : > { %v1649_v4 = vsel %vm319_vm1, 0.0, %v1648_v31 }
 0x356   : > { %v1599_v32 = vmul.f32 %v2096_v22, %v1598_v23  ;;  %v1650_v51 = vrot.slane %v1643_v11, 4 }
 0x358   : > { %v1600_v30 = vadd.f32 %v2096_v22, %v1599_v32  ;;  %v1651_v41 = vsel %vm319_vm1, 0.0, %v1650_v51 }
 0x35a   : > { %v1604_v42 = vsel %vm1603_vm14, %v2096_v22, %v1600_v30 }
 0x35b   : > { %v1609_v5 = vsel %vm1606_vm15, %v1608_v63, %v1604_v42 }
 0x35c   : > { %1611 = vst.msk [vmem:[#allocation4 + $0x8] sm:$0xff] %vm540_vm6, %v1609_v5 }
 0x363   : > { %v1613_v35 = vld [vmem:[#allocation4 + $0x8] sm:$0xff] }
 0x364   : > { %v1657_v34 = vperm.slane %v1613_v35, %v2426_v40  ;;  %v1652_v36 = vrot.slane %v1613_v35, 4 }
 0x366   : > { %v1667_v49 = vperm.slane %v1657_v34, %v2435_v59  ;;  %v1662_v28 = vrot.slane %v1657_v34, 4  ;;  %v1653_v45 = vsel %vm319_vm1, 0.0, %v1652_v36 }
 0x367   : > { %v1661_v39 = vperm.slane %v1653_v45, %v2426_v40 }
 0x368   : > { %v1682_v43 = vrot.slane %v1667_v49, 4  ;;  %v1663_v37 = vsel %vm319_vm1, 0.0, %v1662_v28  ;;  %v1766_v28 = vld [vmem:[%s2382_s11] sm:$0xff] }
 0x369   : > { %v1671_v52 = vperm.slane %v1663_v37, %v2435_v59  ;;  %v1677_v48 = vperm.slane %v1661_v39, %v2435_v59  ;;  %v1672_v44 = vrot.slane %v1661_v39, 4 }
 0x36a   : > { %v1683_v46 = vsel %vm319_vm1, 0.0, %v1682_v43 }
 0x36b   : > { %1719 = vrot.lane.b32.xlu2 %v1683_v46, %s3322_s22  ;;  %1723 = vrot.lane.b32.xlu0 %v1671_v52, %s3323_s9  ;;  %v1684_v53 = vrot.slane %v1671_v52, 4  ;;  %v1673_v57 = vsel %vm319_vm1, 0.0, %v1672_v44  ;;  %v1686_v62 = vrot.slane %v1677_v48, 4 }
 0x36c   : > { %1731 = vrot.lane.b32.xlu1 %v1677_v48, %s3324_s23  ;;  %v1681_v14 = vperm.slane %v1673_v57, %v2435_v59 }
 0x36d   : > { %v1685_v61 = vsel %vm319_vm1, 0.0, %v1684_v53  ;;  %v1687_v40 = vsel %vm319_vm1, 0.0, %v1686_v62 }
 0x36e   : > { %v1688_v54 = vrot.slane %v1681_v14, 4 }
 0x370   : > { %v1689_v3 = vsel %vm319_vm1, 0.0, %v1688_v54  ;;  %vm1751_vm1 = vcmask 523264  }
 0x373   : > { %1727 = vrot.lane.b32.xlu2 %v1685_v61, %s3325_s26  ;;  %1695 = vrot.lane.b32.xlu0 %v1633_v55, %s3323_s9 }
 0x374   : > { %1703 = vrot.lane.b32.xlu1 %v1639_v60, %s3324_s23 }
 0x37b   : > { %1735 = vrot.lane.b32.xlu0 %v1687_v40, %s3326_s21  ;;  %1699 = vrot.lane.b32.xlu2 %v1647_v1, %s3325_s26 }
 0x37c   : > { %1743 = vrot.lane.b32.xlu1 %v1689_v3, %s3327_s28 }
 0x383   : > { %1739 = vrot.lane.b32.xlu2 %v1681_v14, %s3328_s17  ;;  %1707 = vrot.lane.b32.xlu0 %v1649_v4, %s3326_s21 }
 0x38b   : > { %1711 = vrot.lane.b32.xlu2 %v1643_v11, %s3328_s17  ;;  %1715 = vrot.lane.b32.xlu0 %v1651_v41, %s3327_s28 }
 0x3c4   : > { %v1692_v10 = vpop.permute.xlu1 %1691 }
 0x3c5   : > { %v1720_v8 = vpop.permute.xlu2 %1719  ;;  %v1746_v20 = vsel %vm540_vm6, %v3207_v24, %v1692_v10 }
 0x3c6   : > { %v1759_v59 = vsel %vm540_vm6, %v1667_v49, %v1720_v8 }
 0x3cd   : > { %v1728_v47 = vpop.permute.xlu2 %1727 }
 0x3d5   : > { %v1700_v56 = vpop.permute.xlu2 %1699 }
 0x3dd   : > { %v1724_v12 = vpop.permute.xlu0 %1723  ;;  %v1740_v26 = vpop.permute.xlu2 %1739 }
 0x3de   : > { %v1732_v13 = vpop.permute.xlu1 %1731  ;;  %v1760_v58 = vsel %vm1747_vm2, %v1759_v59, %v1724_v12 }
 0x3df   : > { %v1761_v17 = vsel %vm1749_vm3, %v1760_v58, %v1728_v47 }
 0x3e0   : > { %v1762_v18 = vsel %vm1751_vm1, %v1761_v17, %v1732_v13 }
 0x3e5   : > { %v1696_v33 = vpop.permute.xlu0 %1695  ;;  %v1712_v5 = vpop.permute.xlu2 %1711 }
 0x3e6   : > { %v1704_v0 = vpop.permute.xlu1 %1703  ;;  %v1748_v25 = vsel %vm1747_vm2, %v1746_v20, %v1696_v33 }
 0x3e7   : > { %v1750_v29 = vsel %vm1749_vm3, %v1748_v25, %v1700_v56 }
 0x3e8   : > { %v1752_v30 = vsel %vm1751_vm1, %v1750_v29, %v1704_v0 }
 0x3ed   : > { %v1736_v50 = vpop.permute.xlu0 %1735 }
 0x3ee   : > { %v1763_v22 = vsel %vm1753_vm4, %v1762_v18, %v1736_v50  ;;  %v1744_v32 = vpop.permute.xlu1 %1743 }
 0x3ef   : > { %v1764_v19 = vsel %vm1755_vm5, %v1763_v22, %v1740_v26 }
 0x3f0   : > { %v1765_v16 = vsel %vm1757_vm7, %v1764_v19, %v1744_v32 }
 0x3f1   : > { %v1768_v42 = vperm.slane %v1765_v16, 0 }
 0x3f3   : > { %v1771_v36 = vrot.slane %v1768_v42, 4 }
 0x3f5   : > { %v1708_v23 = vpop.permute.xlu0 %1707 }
 0x3f6   : > { %v1754_v63 = vsel %vm1753_vm4, %v1752_v30, %v1708_v23 }
 0x3f7   : > { %v1756_v24 = vsel %vm1755_vm5, %v1754_v63, %v1712_v5 }
 0x3fd   : > { %v1716_v35 = vpop.permute.xlu0 %1715 }
 0x3fe   : > { %v1758_v34 = vsel %vm1757_vm7, %v1756_v24, %v1716_v35 }
 0x3ff   : > { %v1767_v49 = vperm.slane %v1758_v34, 0 }
 0x401   : > { %v1772_v45 = vsel %vm223_vm0, %v1767_v49, %v1771_v36 }
 0x402   : > { %v1774_v39 = vmul.f32 %v1772_v45, %v1766_v28 }
 0x404   : > { %1775 = vst [vmem:[%s215_s2] sm:$0xff] %v1774_v39 }
 0x405   : > { %2184 = shalt.err (!%p2181_p11)
}
 0x406   : > { %2015 = dma.vmem_to_hbm [thread:$0]  (%p2341_p5), %s1791_s18, 128, %s1793_s30, %s1777_s16  }
 0x407 PF: > { %s1804_s7 = sand.u32 1, %s2219_s12   ;;  %p3330_p12 = scmp.ge.s32.totalorder %s2231_s15, 2 }
 0x408   : > { %s1805_s9 = scalar_lea.sflag [#allocation7], %s1804_s7 }
 0x409   : > { %p2029_p13 = pnand %p3330_p12, %p2307_p6 }
 0x40b   : > { %p2030_p0 = pneg %p2029_p13 }
 0x40d   : > { %2214 = dma.done.wait (%p2030_p0), %s1805_s9, 128  }
 0x40e   : > { %2216 = vsyncadd (%p2030_p0), %s1805_s9, 4294967168  ;;  %s3331_s23 = sld [smem:[#allocation17_spill]]  ;;  %p18_p3 = scmp.ge.s32.totalorder %s2328_s27, 4  }
 0x40f   : > { %s3332_s12 = smov %s2223_s13  ;;  %s3333_s13 = smov %s2227_s14 }
 0x410   : > { %s3335_s15 = smov %s2328_s27  ;;  %20 = sbr.rel (!%p18_p3) target bundleno = 11 (0xb), region = 100 }
 0x414   : > { %s3334_s14 = smov %s3331_s23 }
 0x415   :  { %1811 = vsyncpa [#allocation6], 1 }
 0x416   :  { %1813 = vsyncpa [#allocation6 + $0x1], 1 }
 0x417   :  { %1814 = vsyncpa [#allocation7], 1 }
 0x418   :  { %1816 = vsyncpa [#allocation7 + $0x1], 1 }
 0x419   :  { %1817 = vsyncpa [#allocation8], 1 }
 0x41a   :  { %1819 = vsyncpa [#allocation8 + $0x1], 1 }
 0x41b   :  { %1820 = vsyncpa [#allocation10], 1 }

</bundles_post_ra>
